<compile_context>
chip_gen: v7x
topology: tpu7x:2x2x1
jax: 0.10.0
libtpu: 0.0.40
codegen_flags: <defaults>
</compile_context>

<pallas_src>
import functools

import jax
import jax.numpy as jnp
from jax import lax
from jax.experimental import pallas as pl
from jax.experimental.pallas import tpu as pltpu


MXU_DTYPE = jnp.bfloat16   # matmul inputs + activation I/O; all accumulation / BN / act math in f32


def _round_up(x, m):
    return ((x + m - 1) // m) * m


def _channel_block(cout_p):
    """Output-channel tile: multiple of 8; >=2 blocks when possible (v7x megacore)."""
    if cout_p <= 8:
        return cout_p
    for cb in (128, 64, 32, 16, 8):
        if cb < cout_p and cout_p % cb == 0:
            return cb
    return cout_p


def _vmem_limit_bytes(block_bytes):
    """Per-generation VMEM budget with headroom (v7x: ~48 MiB, v5e/v6e: ~96 MiB)."""
    try:
        cap = int(pltpu.get_tpu_info().vmem_capacity_bytes)
    except Exception:
        cap = 128 << 20
    budget = min((cap * 3) // 4, 100 << 20)
    want = max(2 * int(block_bytes) + (8 << 20), 32 << 20)
    return int(min(want, budget))


# ----------------------------------------------------------------------------
# Pallas kernel: in-kernel im2col (9 shifted-view matmuls) + BN/bias + act
# ----------------------------------------------------------------------------
def _conv_block_kernel(x_ref, w_ref, gamma_ref, beta_ref, alpha_ref, mask_ref, o_ref,
                       *, taps, norm, act, inv_n):
    L = o_ref.shape[1]

    # conv3x3 as nine shifted lane-views of the flat padded grid, K=Cin each,
    # accumulated in f32.  `taps` is a static tuple of (phase, lane_offset).
    acc = None
    for k, (ph, off) in enumerate(taps):
        xk = x_ref[ph, :, pl.ds(off, L)]                     # (Cin, L) bf16 shifted view
        wk = w_ref[k]                                        # (CB, Cin) bf16
        d = jnp.dot(wk, xk, preferred_element_type=jnp.float32)
        acc = d if acc is None else acc + d

    if norm == 'bn':
        # Training-mode batch stats per channel (= per sublane row), computed
        # only over valid conv outputs (mask kills wrapped-tap / pad columns).
        # Two-pass (mean, then centered sum-of-squares) to avoid cancellation.
        mask = mask_ref[...]                                 # (1, L) f32 of {0,1}
        mu = jnp.sum(acc * mask, axis=1, keepdims=True) * inv_n
        cen = (acc - mu) * mask
        var = jnp.sum(cen * cen, axis=1, keepdims=True) * inv_n
        y = (acc - mu) * lax.rsqrt(var + 1e-5)
        y = y * gamma_ref[...] + beta_ref[...]
    else:  # 'bias': norm_type='none' => Conv2d carries a bias
        y = acc + beta_ref[...]

    if act == 'prelu':
        y = jnp.where(y >= 0, y, alpha_ref[...] * y)
    elif act == 'sigmoid':
        y = jax.nn.sigmoid(y)
    # act == 'none': passthrough

    o_ref[...] = y.astype(o_ref.dtype)


def pallas_conv_block(x, p, *, scale='none', norm='bn', act='prelu'):
    """One ConvLayer: [up?] -> reflect pad -> conv3x3 (stride 1|2) -> BN|bias -> PReLU|sigmoid.

    Activations are (C, N, H, W) bf16; in-kernel the layout is (C, L) with the
    flat padded-grid spatial axis L (multiple of 128) on the lane axis.
    """
    x = x.astype(MXU_DTYPE)
    if scale == 'up':
        # TODO(synk): fuse nearest-upsample into the kernel read path.
        x = jnp.repeat(jnp.repeat(x, 2, axis=2), 2, axis=3)
    # TODO(synk): fold the reflection pad into the kernel via halo reads.
    xpad = jnp.pad(x, ((0, 0), (0, 0), (1, 1), (1, 1)), mode='reflect')
    Cin, N, Hp, Wp = xpad.shape

    if scale == 'down':
        # stride-2 conv == stride-1 shifted-view conv over a 2x2 space-to-batch phase split.
        assert Hp % 2 == 0 and Wp % 2 == 0, "odd-size 'down' path not implemented"
        P, Hg, Wg = 4, Hp // 2, Wp // 2
        Ho, Wo = Hg - 1, Wg - 1
        xg = xpad.reshape(Cin, N, Hg, 2, Wg, 2).transpose(3, 5, 0, 1, 2, 4)
        xg = xg.reshape(P, Cin, N * Hg * Wg)
        taps = tuple(((dh % 2) * 2 + (dw % 2), (dh // 2) * Wg + (dw // 2))
                     for dh in range(3) for dw in range(3))
    else:  # stride 1
        P, Hg, Wg = 1, Hp, Wp
        Ho, Wo = Hp - 2, Wp - 2
        xg = xpad.reshape(P, Cin, N * Hg * Wg)
        taps = tuple((0, dh * Wg + dw) for dh in range(3) for dw in range(3))

    Lgrid = N * Hg * Wg
    Lout = _round_up(Lgrid, 128)            # lane-dense, unmasked output stores
    max_off = max(off for _, off in taps)
    Lin = Lout + max_off                    # tail pad keeps all shifted views in bounds
    xg = jnp.pad(xg, ((0, 0), (0, 0), (0, Lin - Lgrid)))

    # Validity mask over the flat padded grid (excludes wrapped taps / lane pad).
    pos = jnp.arange(Lout, dtype=jnp.int32)
    valid = (pos < Lgrid) & ((pos % Wg) < Wo) & (((pos // Wg) % Hg) < Ho)
    mask = valid.astype(jnp.float32).reshape(1, Lout)

    w9 = p['w9']                            # (9, Cout_p, Cin) bf16, Cout padded to x8
    Cout_p = w9.shape[1]
    Cout = p['w'].shape[-1]
    gamma, beta, alpha = p['gamma_p'], p['beta_p'], p['alpha_p']   # (Cout_p, 1) f32

    CB = _channel_block(Cout_p)
    grid = (Cout_p // CB,)
    inv_n = 1.0 / float(N * Ho * Wo)

    in_specs = [
        # Whole padded input resident across the channel grid (index never changes).
        # TODO(synk): mark single-buffered (pl.Buffered(1)) to halve its VMEM on v7x.
        pl.BlockSpec((P, Cin, Lin), lambda c: (0, 0, 0)),
        pl.BlockSpec((9, CB, Cin), lambda c: (0, c, 0)),
        pl.BlockSpec((CB, 1), lambda c: (c, 0)),
        pl.BlockSpec((CB, 1), lambda c: (c, 0)),
        pl.BlockSpec((CB, 1), lambda c: (c, 0)),
        pl.BlockSpec((1, Lout), lambda c: (0, 0)),
    ]
    args = (xg, w9, gamma, beta, alpha, mask)

    block_bytes = (P * Cin * Lin * 2 + 9 * CB * Cin * 2 + 3 * CB * 4
                   + Lout * 4 + 2 * CB * Lout * 2)
    in_bytes = sum(int(a.size) * int(a.dtype.itemsize) for a in args)
    out_bytes = Cout_p * Lout * 2

    kern = functools.partial(_conv_block_kernel, taps=taps, norm=norm, act=act,
                             inv_n=inv_n)
    out = pl.pallas_call(
        kern,
        grid=grid,
        in_specs=in_specs,
        out_specs=pl.BlockSpec((CB, Lout), lambda c: (c, 0)),
        out_shape=jax.ShapeDtypeStruct((Cout_p, Lout), MXU_DTYPE),
        compiler_params=pltpu.CompilerParams(
            dimension_semantics=("parallel",),
            vmem_limit_bytes=_vmem_limit_bytes(block_bytes)),
        cost_estimate=pl.CostEstimate(
            flops=2 * Cout_p * Lout * 9 * Cin,
            transcendentals=(Cout_p * Lout if act == 'sigmoid' else Cout_p),
            bytes_accessed=in_bytes + out_bytes),
    )(*args)

    # Drop padded channels / garbage grid columns (XLA fuses this with consumers).
    out = out[:Cout, :Lgrid].reshape(Cout, N, Hg, Wg)[:, :, :Ho, :Wo]
    return out


# ----------------------------------------------------------------------------
# Pure-JAX reference (same bf16 activation / f32-accumulation policy)
# ----------------------------------------------------------------------------
def ref_conv_block(x, p, *, scale='none', norm='bn', act='prelu'):
    x = x.astype(MXU_DTYPE)
    xn = jnp.transpose(x, (1, 2, 3, 0))            # (C,N,H,W) -> NHWC
    if scale == 'up':
        xn = jnp.repeat(jnp.repeat(xn, 2, axis=1), 2, axis=2)
    stride = 2 if scale == 'down' else 1
    xp = jnp.pad(xn, ((0, 0), (1, 1), (1, 1), (0, 0)), mode='reflect')
    Cout = p['w'].shape[-1]
    y = lax.conv_general_dilated(
        xp, p['w'].astype(MXU_DTYPE), (stride, stride), 'VALID',
        dimension_numbers=('NHWC', 'HWIO', 'NHWC'),
        preferred_element_type=jnp.float32)
    if norm == 'bn':
        mu = jnp.mean(y, axis=(0, 1, 2), keepdims=True)
        var = jnp.mean((y - mu) ** 2, axis=(0, 1, 2), keepdims=True)
        y = (y - mu) * lax.rsqrt(var + 1e-5)
        y = y * p['gamma'].reshape(1, 1, 1, Cout) + p['beta'].reshape(1, 1, 1, Cout)
    else:
        y = y + p['beta'].reshape(1, 1, 1, Cout)
    if act == 'prelu':
        y = jnp.where(y >= 0, y, p['alpha'].reshape(1, 1, 1, Cout) * y)
    elif act == 'sigmoid':
        y = jax.nn.sigmoid(y)
    return jnp.transpose(y, (3, 0, 1, 2)).astype(MXU_DTYPE)


# ----------------------------------------------------------------------------
# HourGlassBlock forward
# ----------------------------------------------------------------------------
def hourglass_forward(params, x_cnhw, depth, conv_fn):
    if depth == 0:
        return x_cnhw

    def level(lv, inp):
        up1 = conv_fn(inp, params[f'b1_{lv}'], scale='none', norm='bn', act='prelu')
        low1 = conv_fn(inp, params[f'b2_{lv}'], scale='down', norm='bn', act='prelu')
        if lv > 1:
            low2 = level(lv - 1, low1)
        else:
            low2 = conv_fn(low1, params[f'b2_plus_{lv}'], scale='none',
                           norm='bn', act='prelu')
        up2 = conv_fn(low2, params[f'b3_{lv}'], scale='up', norm='bn', act='prelu')
        # TODO(synk): odd-size F.interpolate fallback when up1/up2 spatial dims mismatch.
        assert up1.shape == up2.shape
        return up1 + up2                   # bf16 residual add (XLA fuses with slices)

    feat = level(depth, x_cnhw)
    # out_block = Conv(c_mid -> c_out, bias, no norm/relu) + Sigmoid, then x * att
    att = conv_fn(feat, params['out'], scale='none', norm='bias', act='sigmoid')
    return x_cnhw * att.astype(x_cnhw.dtype)


def init_params(key, depth, c_in, c_mid, c_out):
    def conv_p(k, cin, cout):
        k1, k2, k3 = jax.random.split(k, 3)
        w = jax.random.normal(k1, (3, 3, cin, cout), jnp.float32) / (9.0 * cin) ** 0.5
        gamma = 1.0 + 0.1 * jax.random.normal(k2, (cout,), jnp.float32)
        beta = 0.1 * jax.random.normal(k3, (cout,), jnp.float32)
        alpha = jnp.full((cout,), 0.25, jnp.float32)     # nn.PReLU(channels) default
        cout_p = _round_up(cout, 8)                      # full-sublane output stores
        pad_c = cout_p - cout
        w9 = jnp.transpose(w.reshape(9, cin, cout), (0, 2, 1))       # (9, Cout, Cin)
        w9 = jnp.pad(w9, ((0, 0), (0, pad_c), (0, 0))).astype(MXU_DTYPE)

        def padp(v):
            return jnp.pad(v, (0, pad_c)).reshape(cout_p, 1)

        return dict(w=w, gamma=gamma, beta=beta, alpha=alpha, w9=w9,
                    gamma_p=padp(gamma), beta_p=padp(beta), alpha_p=padp(alpha))

    layers = []
    for lv in range(depth, 0, -1):
        cin = c_in if lv == depth else c_mid
        layers.append((f'b1_{lv}', cin, c_mid))
        layers.append((f'b2_{lv}', cin, c_mid))
        if lv == 1:
            layers.append((f'b2_plus_{lv}', c_mid, c_mid))
        layers.append((f'b3_{lv}', c_mid, c_mid))
    layers.append(('out', c_mid, c_out))

    keys = jax.random.split(key, len(layers))
    return {name: conv_p(k, cin, cout)
            for (name, cin, cout), k in zip(layers, keys)}


if __name__ == "__main__":
    depth, c_in, c_mid, c_out = 2, 4, 8, 4   # c_out == c_in so x * att broadcasts
    N, H, W = 2, 16, 16

    key = jax.random.PRNGKey(0)
    kp, kx = jax.random.split(key)
    params = init_params(kp, depth, c_in, c_mid, c_out)

    x_nchw = jax.random.normal(kx, (N, c_in, H, W), jnp.float32)   # PyTorch NCHW
    x_cnhw = jnp.transpose(x_nchw, (1, 0, 2, 3))                   # kernel layout

    fwd = jax.jit(lambda prm, xx: hourglass_forward(prm, xx, depth, pallas_conv_block))
    out_cnhw = fwd(params, x_cnhw)
    jax.block_until_ready(out_cnhw)

    ref_cnhw = hourglass_forward(params, x_cnhw, depth, ref_conv_block)
    err = float(jnp.max(jnp.abs(out_cnhw - ref_cnhw)))
    assert out_cnhw.shape == (c_in, N, H, W)
    assert err < 5e-2, f"max abs err {err}"
    print("KERNEL_OK")
</pallas_src>

<mosaic_0001>
module attributes {stable_mosaic.version = 11 : i64} {
  func.func @_conv_block_kernel(%arg0: i32, %arg1: memref<4x4x266xbf16, #tpu.memory_space<vmem>>, %arg2: memref<9x8x4xbf16, #tpu.memory_space<vmem>>, %arg3: memref<8x1xf32, #tpu.memory_space<vmem>>, %arg4: memref<8x1xf32, #tpu.memory_space<vmem>>, %arg5: memref<8x1xf32, #tpu.memory_space<vmem>>, %arg6: memref<1x256xf32, #tpu.memory_space<vmem>>, %arg7: memref<8x256xbf16, #tpu.memory_space<vmem>>) attributes {dimension_semantics = [#tpu.dimension_semantics<parallel>], iteration_bounds = array<i64: 1>, scalar_prefetch = 0 : i64, scratch_operands = 0 : i64, tpu.core_type = #tpu.core_type<tc>, window_params = [{pipeline_mode = #tpu.pipeline_mode<synchronous>, transform_indices = @transform_0, window_bounds = array<i64: 4, 4, 266>}, {transform_indices = @transform_1, window_bounds = array<i64: 9, 8, 4>}, {transform_indices = @transform_2, window_bounds = array<i64: 8, 1>}, {transform_indices = @transform_3, window_bounds = array<i64: 8, 1>}, {transform_indices = @transform_4, window_bounds = array<i64: 8, 1>}, {pipeline_mode = #tpu.pipeline_mode<synchronous>, transform_indices = @transform_5, window_bounds = array<i64: 1, 256>}, {transform_indices = @transform_6, window_bounds = array<i64: 8, 256>}]} {
    %c0 = arith.constant 0 : index
    %c0_0 = arith.constant 0 : index
    %c0_1 = arith.constant 0 : index
    %0 = vector.load %arg1[%c0, %c0_0, %c0_1] : memref<4x4x266xbf16, #tpu.memory_space<vmem>>, vector<1x4x256xbf16>
    %1 = vector.shape_cast %0 : vector<1x4x256xbf16> to vector<4x256xbf16>
    %c0_2 = arith.constant 0 : index
    %c0_3 = arith.constant 0 : index
    %c0_4 = arith.constant 0 : index
    %2 = vector.load %arg2[%c0_2, %c0_3, %c0_4] : memref<9x8x4xbf16, #tpu.memory_space<vmem>>, vector<1x8x4xbf16>
    %3 = vector.shape_cast %2 : vector<1x8x4xbf16> to vector<8x4xbf16>
    %cst = arith.constant dense<0.000000e+00> : vector<8x256xf32>
    %4 = tpu.matmul %3, %1, %cst {dimension_numbers = #tpu.dot_dimension_numbers<[1], [0], [0], [1], [0, 0, 1, 1], [], []>} : vector<8x4xbf16>, vector<4x256xbf16>, vector<8x256xf32> -> vector<8x256xf32>
    %c1 = arith.constant 1 : index
    %c0_5 = arith.constant 0 : index
    %c0_6 = arith.constant 0 : index
    %5 = vector.load %arg1[%c1, %c0_5, %c0_6] : memref<4x4x266xbf16, #tpu.memory_space<vmem>>, vector<1x4x256xbf16>
    %6 = vector.shape_cast %5 : vector<1x4x256xbf16> to vector<4x256xbf16>
    %c1_7 = arith.constant 1 : index
    %c0_8 = arith.constant 0 : index
    %c0_9 = arith.constant 0 : index
    %7 = vector.load %arg2[%c1_7, %c0_8, %c0_9] : memref<9x8x4xbf16, #tpu.memory_space<vmem>>, vector<1x8x4xbf16>
    %8 = vector.shape_cast %7 : vector<1x8x4xbf16> to vector<8x4xbf16>
    %cst_10 = arith.constant dense<0.000000e+00> : vector<8x256xf32>
    %9 = tpu.matmul %8, %6, %cst_10 {dimension_numbers = #tpu.dot_dimension_numbers<[1], [0], [0], [1], [0, 0, 1, 1], [], []>} : vector<8x4xbf16>, vector<4x256xbf16>, vector<8x256xf32> -> vector<8x256xf32>
    %10 = arith.addf %4, %9 : vector<8x256xf32>
    %c0_11 = arith.constant 0 : index
    %c0_12 = arith.constant 0 : index
    %c1_13 = arith.constant 1 : index
    %11 = vector.load %arg1[%c0_11, %c0_12, %c1_13] : memref<4x4x266xbf16, #tpu.memory_space<vmem>>, vector<1x4x256xbf16>
    %12 = vector.shape_cast %11 : vector<1x4x256xbf16> to vector<4x256xbf16>
    %c2 = arith.constant 2 : index
    %c0_14 = arith.constant 0 : index
    %c0_15 = arith.constant 0 : index
    %13 = vector.load %arg2[%c2, %c0_14, %c0_15] : memref<9x8x4xbf16, #tpu.memory_space<vmem>>, vector<1x8x4xbf16>
    %14 = vector.shape_cast %13 : vector<1x8x4xbf16> to vector<8x4xbf16>
    %cst_16 = arith.constant dense<0.000000e+00> : vector<8x256xf32>
    %15 = tpu.matmul %14, %12, %cst_16 {dimension_numbers = #tpu.dot_dimension_numbers<[1], [0], [0], [1], [0, 0, 1, 1], [], []>} : vector<8x4xbf16>, vector<4x256xbf16>, vector<8x256xf32> -> vector<8x256xf32>
    %16 = arith.addf %10, %15 : vector<8x256xf32>
    %c2_17 = arith.constant 2 : index
    %c0_18 = arith.constant 0 : index
    %c0_19 = arith.constant 0 : index
    %17 = vector.load %arg1[%c2_17, %c0_18, %c0_19] : memref<4x4x266xbf16, #tpu.memory_space<vmem>>, vector<1x4x256xbf16>
    %18 = vector.shape_cast %17 : vector<1x4x256xbf16> to vector<4x256xbf16>
    %c3 = arith.constant 3 : index
    %c0_20 = arith.constant 0 : index
    %c0_21 = arith.constant 0 : index
    %19 = vector.load %arg2[%c3, %c0_20, %c0_21] : memref<9x8x4xbf16, #tpu.memory_space<vmem>>, vector<1x8x4xbf16>
    %20 = vector.shape_cast %19 : vector<1x8x4xbf16> to vector<8x4xbf16>
    %cst_22 = arith.constant dense<0.000000e+00> : vector<8x256xf32>
    %21 = tpu.matmul %20, %18, %cst_22 {dimension_numbers = #tpu.dot_dimension_numbers<[1], [0], [0], [1], [0, 0, 1, 1], [], []>} : vector<8x4xbf16>, vector<4x256xbf16>, vector<8x256xf32> -> vector<8x256xf32>
    %22 = arith.addf %16, %21 : vector<8x256xf32>
    %c3_23 = arith.constant 3 : index
    %c0_24 = arith.constant 0 : index
    %c0_25 = arith.constant 0 : index
    %23 = vector.load %arg1[%c3_23, %c0_24, %c0_25] : memref<4x4x266xbf16, #tpu.memory_space<vmem>>, vector<1x4x256xbf16>
    %24 = vector.shape_cast %23 : vector<1x4x256xbf16> to vector<4x256xbf16>
    %c4 = arith.constant 4 : index
    %c0_26 = arith.constant 0 : index
    %c0_27 = arith.constant 0 : index
    %25 = vector.load %arg2[%c4, %c0_26, %c0_27] : memref<9x8x4xbf16, #tpu.memory_space<vmem>>, vector<1x8x4xbf16>
    %26 = vector.shape_cast %25 : vector<1x8x4xbf16> to vector<8x4xbf16>
    %cst_28 = arith.constant dense<0.000000e+00> : vector<8x256xf32>
    %27 = tpu.matmul %26, %24, %cst_28 {dimension_numbers = #tpu.dot_dimension_numbers<[1], [0], [0], [1], [0, 0, 1, 1], [], []>} : vector<8x4xbf16>, vector<4x256xbf16>, vector<8x256xf32> -> vector<8x256xf32>
    %28 = arith.addf %22, %27 : vector<8x256xf32>
    %c2_29 = arith.constant 2 : index
    %c0_30 = arith.constant 0 : index
    %c1_31 = arith.constant 1 : index
    %29 = vector.load %arg1[%c2_29, %c0_30, %c1_31] : memref<4x4x266xbf16, #tpu.memory_space<vmem>>, vector<1x4x256xbf16>
    %30 = vector.shape_cast %29 : vector<1x4x256xbf16> to vector<4x256xbf16>
    %c5 = arith.constant 5 : index
    %c0_32 = arith.constant 0 : index
    %c0_33 = arith.constant 0 : index
    %31 = vector.load %arg2[%c5, %c0_32, %c0_33] : memref<9x8x4xbf16, #tpu.memory_space<vmem>>, vector<1x8x4xbf16>
    %32 = vector.shape_cast %31 : vector<1x8x4xbf16> to vector<8x4xbf16>
    %cst_34 = arith.constant dense<0.000000e+00> : vector<8x256xf32>
    %33 = tpu.matmul %32, %30, %cst_34 {dimension_numbers = #tpu.dot_dimension_numbers<[1], [0], [0], [1], [0, 0, 1, 1], [], []>} : vector<8x4xbf16>, vector<4x256xbf16>, vector<8x256xf32> -> vector<8x256xf32>
    %34 = arith.addf %28, %33 : vector<8x256xf32>
    %c0_35 = arith.constant 0 : index
    %c0_36 = arith.constant 0 : index
    %c9 = arith.constant 9 : index
    %35 = vector.load %arg1[%c0_35, %c0_36, %c9] : memref<4x4x266xbf16, #tpu.memory_space<vmem>>, vector<1x4x256xbf16>
    %36 = vector.shape_cast %35 : vector<1x4x256xbf16> to vector<4x256xbf16>
    %c6 = arith.constant 6 : index
    %c0_37 = arith.constant 0 : index
    %c0_38 = arith.constant 0 : index
    %37 = vector.load %arg2[%c6, %c0_37, %c0_38] : memref<9x8x4xbf16, #tpu.memory_space<vmem>>, vector<1x8x4xbf16>
    %38 = vector.shape_cast %37 : vector<1x8x4xbf16> to vector<8x4xbf16>
    %cst_39 = arith.constant dense<0.000000e+00> : vector<8x256xf32>
    %39 = tpu.matmul %38, %36, %cst_39 {dimension_numbers = #tpu.dot_dimension_numbers<[1], [0], [0], [1], [0, 0, 1, 1], [], []>} : vector<8x4xbf16>, vector<4x256xbf16>, vector<8x256xf32> -> vector<8x256xf32>
    %40 = arith.addf %34, %39 : vector<8x256xf32>
    %c1_40 = arith.constant 1 : index
    %c0_41 = arith.constant 0 : index
    %c9_42 = arith.constant 9 : index
    %41 = vector.load %arg1[%c1_40, %c0_41, %c9_42] : memref<4x4x266xbf16, #tpu.memory_space<vmem>>, vector<1x4x256xbf16>
    %42 = vector.shape_cast %41 : vector<1x4x256xbf16> to vector<4x256xbf16>
    %c7 = arith.constant 7 : index
    %c0_43 = arith.constant 0 : index
    %c0_44 = arith.constant 0 : index
    %43 = vector.load %arg2[%c7, %c0_43, %c0_44] : memref<9x8x4xbf16, #tpu.memory_space<vmem>>, vector<1x8x4xbf16>
    %44 = vector.shape_cast %43 : vector<1x8x4xbf16> to vector<8x4xbf16>
    %cst_45 = arith.constant dense<0.000000e+00> : vector<8x256xf32>
    %45 = tpu.matmul %44, %42, %cst_45 {dimension_numbers = #tpu.dot_dimension_numbers<[1], [0], [0], [1], [0, 0, 1, 1], [], []>} : vector<8x4xbf16>, vector<4x256xbf16>, vector<8x256xf32> -> vector<8x256xf32>
    %46 = arith.addf %40, %45 : vector<8x256xf32>
    %c0_46 = arith.constant 0 : index
    %c0_47 = arith.constant 0 : index
    %c10 = arith.constant 10 : index
    %47 = vector.load %arg1[%c0_46, %c0_47, %c10] : memref<4x4x266xbf16, #tpu.memory_space<vmem>>, vector<1x4x256xbf16>
    %48 = vector.shape_cast %47 : vector<1x4x256xbf16> to vector<4x256xbf16>
    %c8 = arith.constant 8 : index
    %c0_48 = arith.constant 0 : index
    %c0_49 = arith.constant 0 : index
    %49 = vector.load %arg2[%c8, %c0_48, %c0_49] : memref<9x8x4xbf16, #tpu.memory_space<vmem>>, vector<1x8x4xbf16>
    %50 = vector.shape_cast %49 : vector<1x8x4xbf16> to vector<8x4xbf16>
    %cst_50 = arith.constant dense<0.000000e+00> : vector<8x256xf32>
    %51 = tpu.matmul %50, %48, %cst_50 {dimension_numbers = #tpu.dot_dimension_numbers<[1], [0], [0], [1], [0, 0, 1, 1], [], []>} : vector<8x4xbf16>, vector<4x256xbf16>, vector<8x256xf32> -> vector<8x256xf32>
    %52 = arith.addf %46, %51 : vector<8x256xf32>
    %c0_51 = arith.constant 0 : index
    %c0_52 = arith.constant 0 : index
    %53 = vector.load %arg6[%c0_51, %c0_52] : memref<1x256xf32, #tpu.memory_space<vmem>>, vector<1x256xf32>
    %54 = vector.broadcast %53 : vector<1x256xf32> to vector<8x256xf32>
    %55 = arith.mulf %52, %54 : vector<8x256xf32>
    %cst_53 = arith.constant dense<0.000000e+00> : vector<8xf32>
    %56 = vector.multi_reduction <add>, %55, %cst_53 [1] : vector<8x256xf32> to vector<8xf32>
    %57 = vector.shape_cast %56 : vector<8xf32> to vector<8x1xf32>
    %cst_54 = arith.constant 7.812500e-03 : f32
    %58 = vector.broadcast %cst_54 : f32 to vector<8x1xf32>
    %59 = arith.mulf %57, %58 : vector<8x1xf32>
    %60 = vector.broadcast %59 : vector<8x1xf32> to vector<8x256xf32>
    %61 = arith.subf %52, %60 : vector<8x256xf32>
    %62 = vector.broadcast %53 : vector<1x256xf32> to vector<8x256xf32>
    %63 = arith.mulf %61, %62 : vector<8x256xf32>
    %64 = arith.mulf %63, %63 : vector<8x256xf32>
    %cst_55 = arith.constant dense<0.000000e+00> : vector<8xf32>
    %65 = vector.multi_reduction <add>, %64, %cst_55 [1] : vector<8x256xf32> to vector<8xf32>
    %66 = vector.shape_cast %65 : vector<8xf32> to vector<8x1xf32>
    %cst_56 = arith.constant 7.812500e-03 : f32
    %67 = vector.broadcast %cst_56 : f32 to vector<8x1xf32>
    %68 = arith.mulf %66, %67 : vector<8x1xf32>
    %69 = vector.broadcast %59 : vector<8x1xf32> to vector<8x256xf32>
    %70 = arith.subf %52, %69 : vector<8x256xf32>
    %cst_57 = arith.constant 9.99999974E-6 : f32
    %71 = vector.broadcast %cst_57 : f32 to vector<8x1xf32>
    %72 = arith.addf %68, %71 : vector<8x1xf32>
    %73 = math.rsqrt %72 : vector<8x1xf32>
    %74 = vector.broadcast %73 : vector<8x1xf32> to vector<8x256xf32>
    %75 = arith.mulf %70, %74 : vector<8x256xf32>
    %c0_58 = arith.constant 0 : index
    %c0_59 = arith.constant 0 : index
    %76 = vector.load %arg3[%c0_58, %c0_59] : memref<8x1xf32, #tpu.memory_space<vmem>>, vector<8x1xf32>
    %77 = vector.broadcast %76 : vector<8x1xf32> to vector<8x256xf32>
    %78 = arith.mulf %75, %77 : vector<8x256xf32>
    %c0_60 = arith.constant 0 : index
    %c0_61 = arith.constant 0 : index
    %79 = vector.load %arg4[%c0_60, %c0_61] : memref<8x1xf32, #tpu.memory_space<vmem>>, vector<8x1xf32>
    %80 = vector.broadcast %79 : vector<8x1xf32> to vector<8x256xf32>
    %81 = arith.addf %78, %80 : vector<8x256xf32>
    %cst_62 = arith.constant 0.000000e+00 : f32
    %82 = vector.broadcast %cst_62 : f32 to vector<8x256xf32>
    %83 = arith.cmpf oge, %81, %82 : vector<8x256xf32>
    %c0_63 = arith.constant 0 : index
    %c0_64 = arith.constant 0 : index
    %84 = vector.load %arg5[%c0_63, %c0_64] : memref<8x1xf32, #tpu.memory_space<vmem>>, vector<8x1xf32>
    %85 = vector.broadcast %84 : vector<8x1xf32> to vector<8x256xf32>
    %86 = arith.mulf %85, %81 : vector<8x256xf32>
    %87 = arith.select %83, %81, %86 : vector<8x256xi1>, vector<8x256xf32>
    %88 = arith.truncf %87 : vector<8x256xf32> to vector<8x256xbf16>
    %c0_65 = arith.constant 0 : index
    %c0_66 = arith.constant 0 : index
    %89 = vector.load %arg7[%c0_65, %c0_66] : memref<8x256xbf16, #tpu.memory_space<vmem>>, vector<8x256xbf16>
    tpu.vector_store %arg7[%c0_65, %c0_66], %88 {strides = array<i32>} : memref<8x256xbf16, #tpu.memory_space<vmem>>, vector<8x256xbf16>,
    return
  }
  func.func @transform_0(%arg0: i32) -> (i32, i32, i32) {
    %c0_i32 = arith.constant 0 : i32
    %c0_i32_0 = arith.constant 0 : i32
    %c0_i32_1 = arith.constant 0 : i32
    %c0_i32_2 = arith.constant 0 : i32
    return %c0_i32, %c0_i32_0, %c0_i32_1 : i32, i32, i32
  }
  func.func @transform_1(%arg0: i32) -> (i32, i32, i32) {
    %c0_i32 = arith.constant 0 : i32
    %c0_i32_0 = arith.constant 0 : i32
    %c0_i32_1 = arith.constant 0 : i32
    return %c0_i32, %arg0, %c0_i32_0 : i32, i32, i32
  }
  func.func @transform_2(%arg0: i32) -> (i32, i32) {
    %c0_i32 = arith.constant 0 : i32
    %c0_i32_0 = arith.constant 0 : i32
    return %arg0, %c0_i32 : i32, i32
  }
  func.func @transform_3(%arg0: i32) -> (i32, i32) {
    %c0_i32 = arith.constant 0 : i32
    %c0_i32_0 = arith.constant 0 : i32
    return %arg0, %c0_i32 : i32, i32
  }
  func.func @transform_4(%arg0: i32) -> (i32, i32) {
    %c0_i32 = arith.constant 0 : i32
    %c0_i32_0 = arith.constant 0 : i32
    return %arg0, %c0_i32 : i32, i32
  }
  func.func @transform_5(%arg0: i32) -> (i32, i32) {
    %c0_i32 = arith.constant 0 : i32
    %c0_i32_0 = arith.constant 0 : i32
    %c0_i32_1 = arith.constant 0 : i32
    return %c0_i32, %c0_i32_0 : i32, i32
  }
  func.func @transform_6(%arg0: i32) -> (i32, i32) {
    %c0_i32 = arith.constant 0 : i32
    %c0_i32_0 = arith.constant 0 : i32
    return %arg0, %c0_i32 : i32, i32
  }
}

module attributes {stable_mosaic.version = 11 : i64} {
  func.func @_conv_block_kernel(%arg0: i32, %arg1: memref<4x8x134xbf16, #tpu.memory_space<vmem>>, %arg2: memref<9x8x8xbf16, #tpu.memory_space<vmem>>, %arg3: memref<8x1xf32, #tpu.memory_space<vmem>>, %arg4: memref<8x1xf32, #tpu.memory_space<vmem>>, %arg5: memref<8x1xf32, #tpu.memory_space<vmem>>, %arg6: memref<1x128xf32, #tpu.memory_space<vmem>>, %arg7: memref<8x128xbf16, #tpu.memory_space<vmem>>) attributes {dimension_semantics = [#tpu.dimension_semantics<parallel>], iteration_bounds = array<i64: 1>, scalar_prefetch = 0 : i64, scratch_operands = 0 : i64, tpu.core_type = #tpu.core_type<tc>, window_params = [{pipeline_mode = #tpu.pipeline_mode<synchronous>, transform_indices = @transform_0, window_bounds = array<i64: 4, 8, 134>}, {transform_indices = @transform_1, window_bounds = array<i64: 9, 8, 8>}, {transform_indices = @transform_2, window_bounds = array<i64: 8, 1>}, {transform_indices = @transform_3, window_bounds = array<i64: 8, 1>}, {transform_indices = @transform_4, window_bounds = array<i64: 8, 1>}, {pipeline_mode = #tpu.pipeline_mode<synchronous>, transform_indices = @transform_5, window_bounds = array<i64: 1, 128>}, {transform_indices = @transform_6, window_bounds = array<i64: 8, 128>}]} {
    %c0 = arith.constant 0 : index
    %c0_0 = arith.constant 0 : index
    %c0_1 = arith.constant 0 : index
    %0 = vector.load %arg1[%c0, %c0_0, %c0_1] : memref<4x8x134xbf16, #tpu.memory_space<vmem>>, vector<1x8x128xbf16>
    %1 = vector.shape_cast %0 : vector<1x8x128xbf16> to vector<8x128xbf16>
    %c0_2 = arith.constant 0 : index
    %c0_3 = arith.constant 0 : index
    %c0_4 = arith.constant 0 : index
    %2 = vector.load %arg2[%c0_2, %c0_3, %c0_4] : memref<9x8x8xbf16, #tpu.memory_space<vmem>>, vector<1x8x8xbf16>
    %3 = vector.shape_cast %2 : vector<1x8x8xbf16> to vector<8x8xbf16>
    %cst = arith.constant dense<0.000000e+00> : vector<8x128xf32>
    %4 = tpu.matmul %3, %1, %cst {dimension_numbers = #tpu.dot_dimension_numbers<[1], [0], [0], [1], [0, 0, 1, 1], [], []>} : vector<8x8xbf16>, vector<8x128xbf16>, vector<8x128xf32> -> vector<8x128xf32>
    %c1 = arith.constant 1 : index
    %c0_5 = arith.constant 0 : index
    %c0_6 = arith.constant 0 : index
    %5 = vector.load %arg1[%c1, %c0_5, %c0_6] : memref<4x8x134xbf16, #tpu.memory_space<vmem>>, vector<1x8x128xbf16>
    %6 = vector.shape_cast %5 : vector<1x8x128xbf16> to vector<8x128xbf16>
    %c1_7 = arith.constant 1 : index
    %c0_8 = arith.constant 0 : index
    %c0_9 = arith.constant 0 : index
    %7 = vector.load %arg2[%c1_7, %c0_8, %c0_9] : memref<9x8x8xbf16, #tpu.memory_space<vmem>>, vector<1x8x8xbf16>
    %8 = vector.shape_cast %7 : vector<1x8x8xbf16> to vector<8x8xbf16>
    %cst_10 = arith.constant dense<0.000000e+00> : vector<8x128xf32>
    %9 = tpu.matmul %8, %6, %cst_10 {dimension_numbers = #tpu.dot_dimension_numbers<[1], [0], [0], [1], [0, 0, 1, 1], [], []>} : vector<8x8xbf16>, vector<8x128xbf16>, vector<8x128xf32> -> vector<8x128xf32>
    %10 = arith.addf %4, %9 : vector<8x128xf32>
    %c0_11 = arith.constant 0 : index
    %c0_12 = arith.constant 0 : index
    %c1_13 = arith.constant 1 : index
    %11 = vector.load %arg1[%c0_11, %c0_12, %c1_13] : memref<4x8x134xbf16, #tpu.memory_space<vmem>>, vector<1x8x128xbf16>
    %12 = vector.shape_cast %11 : vector<1x8x128xbf16> to vector<8x128xbf16>
    %c2 = arith.constant 2 : index
    %c0_14 = arith.constant 0 : index
    %c0_15 = arith.constant 0 : index
    %13 = vector.load %arg2[%c2, %c0_14, %c0_15] : memref<9x8x8xbf16, #tpu.memory_space<vmem>>, vector<1x8x8xbf16>
    %14 = vector.shape_cast %13 : vector<1x8x8xbf16> to vector<8x8xbf16>
    %cst_16 = arith.constant dense<0.000000e+00> : vector<8x128xf32>
    %15 = tpu.matmul %14, %12, %cst_16 {dimension_numbers = #tpu.dot_dimension_numbers<[1], [0], [0], [1], [0, 0, 1, 1], [], []>} : vector<8x8xbf16>, vector<8x128xbf16>, vector<8x128xf32> -> vector<8x128xf32>
    %16 = arith.addf %10, %15 : vector<8x128xf32>
    %c2_17 = arith.constant 2 : index
    %c0_18 = arith.constant 0 : index
    %c0_19 = arith.constant 0 : index
    %17 = vector.load %arg1[%c2_17, %c0_18, %c0_19] : memref<4x8x134xbf16, #tpu.memory_space<vmem>>, vector<1x8x128xbf16>
    %18 = vector.shape_cast %17 : vector<1x8x128xbf16> to vector<8x128xbf16>
    %c3 = arith.constant 3 : index
    %c0_20 = arith.constant 0 : index
    %c0_21 = arith.constant 0 : index
    %19 = vector.load %arg2[%c3, %c0_20, %c0_21] : memref<9x8x8xbf16, #tpu.memory_space<vmem>>, vector<1x8x8xbf16>
    %20 = vector.shape_cast %19 : vector<1x8x8xbf16> to vector<8x8xbf16>
    %cst_22 = arith.constant dense<0.000000e+00> : vector<8x128xf32>
    %21 = tpu.matmul %20, %18, %cst_22 {dimension_numbers = #tpu.dot_dimension_numbers<[1], [0], [0], [1], [0, 0, 1, 1], [], []>} : vector<8x8xbf16>, vector<8x128xbf16>, vector<8x128xf32> -> vector<8x128xf32>
    %22 = arith.addf %16, %21 : vector<8x128xf32>
    %c3_23 = arith.constant 3 : index
    %c0_24 = arith.constant 0 : index
    %c0_25 = arith.constant 0 : index
    %23 = vector.load %arg1[%c3_23, %c0_24, %c0_25] : memref<4x8x134xbf16, #tpu.memory_space<vmem>>, vector<1x8x128xbf16>
    %24 = vector.shape_cast %23 : vector<1x8x128xbf16> to vector<8x128xbf16>
    %c4 = arith.constant 4 : index
    %c0_26 = arith.constant 0 : index
    %c0_27 = arith.constant 0 : index
    %25 = vector.load %arg2[%c4, %c0_26, %c0_27] : memref<9x8x8xbf16, #tpu.memory_space<vmem>>, vector<1x8x8xbf16>
    %26 = vector.shape_cast %25 : vector<1x8x8xbf16> to vector<8x8xbf16>
    %cst_28 = arith.constant dense<0.000000e+00> : vector<8x128xf32>
    %27 = tpu.matmul %26, %24, %cst_28 {dimension_numbers = #tpu.dot_dimension_numbers<[1], [0], [0], [1], [0, 0, 1, 1], [], []>} : vector<8x8xbf16>, vector<8x128xbf16>, vector<8x128xf32> -> vector<8x128xf32>
    %28 = arith.addf %22, %27 : vector<8x128xf32>
    %c2_29 = arith.constant 2 : index
    %c0_30 = arith.constant 0 : index
    %c1_31 = arith.constant 1 : index
    %29 = vector.load %arg1[%c2_29, %c0_30, %c1_31] : memref<4x8x134xbf16, #tpu.memory_space<vmem>>, vector<1x8x128xbf16>
    %30 = vector.shape_cast %29 : vector<1x8x128xbf16> to vector<8x128xbf16>
    %c5 = arith.constant 5 : index
    %c0_32 = arith.constant 0 : index
    %c0_33 = arith.constant 0 : index
    %31 = vector.load %arg2[%c5, %c0_32, %c0_33] : memref<9x8x8xbf16, #tpu.memory_space<vmem>>, vector<1x8x8xbf16>
    %32 = vector.shape_cast %31 : vector<1x8x8xbf16> to vector<8x8xbf16>
    %cst_34 = arith.constant dense<0.000000e+00> : vector<8x128xf32>
    %33 = tpu.matmul %32, %30, %cst_34 {dimension_numbers = #tpu.dot_dimension_numbers<[1], [0], [0], [1], [0, 0, 1, 1], [], []>} : vector<8x8xbf16>, vector<8x128xbf16>, vector<8x128xf32> -> vector<8x128xf32>
    %34 = arith.addf %28, %33 : vector<8x128xf32>
    %c0_35 = arith.constant 0 : index
    %c0_36 = arith.constant 0 : index
    %c5_37 = arith.constant 5 : index
    %35 = vector.load %arg1[%c0_35, %c0_36, %c5_37] : memref<4x8x134xbf16, #tpu.memory_space<vmem>>, vector<1x8x128xbf16>
    %36 = vector.shape_cast %35 : vector<1x8x128xbf16> to vector<8x128xbf16>
    %c6 = arith.constant 6 : index
    %c0_38 = arith.constant 0 : index
    %c0_39 = arith.constant 0 : index
    %37 = vector.load %arg2[%c6, %c0_38, %c0_39] : memref<9x8x8xbf16, #tpu.memory_space<vmem>>, vector<1x8x8xbf16>
    %38 = vector.shape_cast %37 : vector<1x8x8xbf16> to vector<8x8xbf16>
    %cst_40 = arith.constant dense<0.000000e+00> : vector<8x128xf32>
    %39 = tpu.matmul %38, %36, %cst_40 {dimension_numbers = #tpu.dot_dimension_numbers<[1], [0], [0], [1], [0, 0, 1, 1], [], []>} : vector<8x8xbf16>, vector<8x128xbf16>, vector<8x128xf32> -> vector<8x128xf32>
    %40 = arith.addf %34, %39 : vector<8x128xf32>
    %c1_41 = arith.constant 1 : index
    %c0_42 = arith.constant 0 : index
    %c5_43 = arith.constant 5 : index
    %41 = vector.load %arg1[%c1_41, %c0_42, %c5_43] : memref<4x8x134xbf16, #tpu.memory_space<vmem>>, vector<1x8x128xbf16>
    %42 = vector.shape_cast %41 : vector<1x8x128xbf16> to vector<8x128xbf16>
    %c7 = arith.constant 7 : index
    %c0_44 = arith.constant 0 : index
    %c0_45 = arith.constant 0 : index
    %43 = vector.load %arg2[%c7, %c0_44, %c0_45] : memref<9x8x8xbf16, #tpu.memory_space<vmem>>, vector<1x8x8xbf16>
    %44 = vector.shape_cast %43 : vector<1x8x8xbf16> to vector<8x8xbf16>
    %cst_46 = arith.constant dense<0.000000e+00> : vector<8x128xf32>
    %45 = tpu.matmul %44, %42, %cst_46 {dimension_numbers = #tpu.dot_dimension_numbers<[1], [0], [0], [1], [0, 0, 1, 1], [], []>} : vector<8x8xbf16>, vector<8x128xbf16>, vector<8x128xf32> -> vector<8x128xf32>
    %46 = arith.addf %40, %45 : vector<8x128xf32>
    %c0_47 = arith.constant 0 : index
    %c0_48 = arith.constant 0 : index
    %c6_49 = arith.constant 6 : index
    %47 = vector.load %arg1[%c0_47, %c0_48, %c6_49] : memref<4x8x134xbf16, #tpu.memory_space<vmem>>, vector<1x8x128xbf16>
    %48 = vector.shape_cast %47 : vector<1x8x128xbf16> to vector<8x128xbf16>
    %c8 = arith.constant 8 : index
    %c0_50 = arith.constant 0 : index
    %c0_51 = arith.constant 0 : index
    %49 = vector.load %arg2[%c8, %c0_50, %c0_51] : memref<9x8x8xbf16, #tpu.memory_space<vmem>>, vector<1x8x8xbf16>
    %50 = vector.shape_cast %49 : vector<1x8x8xbf16> to vector<8x8xbf16>
    %cst_52 = arith.constant dense<0.000000e+00> : vector<8x128xf32>
    %51 = tpu.matmul %50, %48, %cst_52 {dimension_numbers = #tpu.dot_dimension_numbers<[1], [0], [0], [1], [0, 0, 1, 1], [], []>} : vector<8x8xbf16>, vector<8x128xbf16>, vector<8x128xf32> -> vector<8x128xf32>
    %52 = arith.addf %46, %51 : vector<8x128xf32>
    %c0_53 = arith.constant 0 : index
    %c0_54 = arith.constant 0 : index
    %53 = vector.load %arg6[%c0_53, %c0_54] : memref<1x128xf32, #tpu.memory_space<vmem>>, vector<1x128xf32>
    %54 = vector.broadcast %53 : vector<1x128xf32> to vector<8x128xf32>
    %55 = arith.mulf %52, %54 : vector<8x128xf32>
    %cst_55 = arith.constant dense<0.000000e+00> : vector<8xf32>
    %56 = vector.multi_reduction <add>, %55, %cst_55 [1] : vector<8x128xf32> to vector<8xf32>
    %57 = vector.shape_cast %56 : vector<8xf32> to vector<8x1xf32>
    %cst_56 = arith.constant 3.125000e-02 : f32
    %58 = vector.broadcast %cst_56 : f32 to vector<8x1xf32>
    %59 = arith.mulf %57, %58 : vector<8x1xf32>
    %60 = vector.broadcast %59 : vector<8x1xf32> to vector<8x128xf32>
    %61 = arith.subf %52, %60 : vector<8x128xf32>
    %62 = vector.broadcast %53 : vector<1x128xf32> to vector<8x128xf32>
    %63 = arith.mulf %61, %62 : vector<8x128xf32>
    %64 = arith.mulf %63, %63 : vector<8x128xf32>
    %cst_57 = arith.constant dense<0.000000e+00> : vector<8xf32>
    %65 = vector.multi_reduction <add>, %64, %cst_57 [1] : vector<8x128xf32> to vector<8xf32>
    %66 = vector.shape_cast %65 : vector<8xf32> to vector<8x1xf32>
    %cst_58 = arith.constant 3.125000e-02 : f32
    %67 = vector.broadcast %cst_58 : f32 to vector<8x1xf32>
    %68 = arith.mulf %66, %67 : vector<8x1xf32>
    %69 = vector.broadcast %59 : vector<8x1xf32> to vector<8x128xf32>
    %70 = arith.subf %52, %69 : vector<8x128xf32>
    %cst_59 = arith.constant 9.99999974E-6 : f32
    %71 = vector.broadcast %cst_59 : f32 to vector<8x1xf32>
    %72 = arith.addf %68, %71 : vector<8x1xf32>
    %73 = math.rsqrt %72 : vector<8x1xf32>
    %74 = vector.broadcast %73 : vector<8x1xf32> to vector<8x128xf32>
    %75 = arith.mulf %70, %74 : vector<8x128xf32>
    %c0_60 = arith.constant 0 : index
    %c0_61 = arith.constant 0 : index
    %76 = vector.load %arg3[%c0_60, %c0_61] : memref<8x1xf32, #tpu.memory_space<vmem>>, vector<8x1xf32>
    %77 = vector.broadcast %76 : vector<8x1xf32> to vector<8x128xf32>
    %78 = arith.mulf %75, %77 : vector<8x128xf32>
    %c0_62 = arith.constant 0 : index
    %c0_63 = arith.constant 0 : index
    %79 = vector.load %arg4[%c0_62, %c0_63] : memref<8x1xf32, #tpu.memory_space<vmem>>, vector<8x1xf32>
    %80 = vector.broadcast %79 : vector<8x1xf32> to vector<8x128xf32>
    %81 = arith.addf %78, %80 : vector<8x128xf32>
    %cst_64 = arith.constant 0.000000e+00 : f32
    %82 = vector.broadcast %cst_64 : f32 to vector<8x128xf32>
    %83 = arith.cmpf oge, %81, %82 : vector<8x128xf32>
    %c0_65 = arith.constant 0 : index
    %c0_66 = arith.constant 0 : index
    %84 = vector.load %arg5[%c0_65, %c0_66] : memref<8x1xf32, #tpu.memory_space<vmem>>, vector<8x1xf32>
    %85 = vector.broadcast %84 : vector<8x1xf32> to vector<8x128xf32>
    %86 = arith.mulf %85, %81 : vector<8x128xf32>
    %87 = arith.select %83, %81, %86 : vector<8x128xi1>, vector<8x128xf32>
    %88 = arith.truncf %87 : vector<8x128xf32> to vector<8x128xbf16>
    %c0_67 = arith.constant 0 : index
    %c0_68 = arith.constant 0 : index
    %89 = vector.load %arg7[%c0_67, %c0_68] : memref<8x128xbf16, #tpu.memory_space<vmem>>, vector<8x128xbf16>
    tpu.vector_store %arg7[%c0_67, %c0_68], %88 {strides = array<i32>} : memref<8x128xbf16, #tpu.memory_space<vmem>>, vector<8x128xbf16>,
    return
  }
  func.func @transform_0(%arg0: i32) -> (i32, i32, i32) {
    %c0_i32 = arith.constant 0 : i32
    %c0_i32_0 = arith.constant 0 : i32
    %c0_i32_1 = arith.constant 0 : i32
    %c0_i32_2 = arith.constant 0 : i32
    return %c0_i32, %c0_i32_0, %c0_i32_1 : i32, i32, i32
  }
  func.func @transform_1(%arg0: i32) -> (i32, i32, i32) {
    %c0_i32 = arith.constant 0 : i32
    %c0_i32_0 = arith.constant 0 : i32
    %c0_i32_1 = arith.constant 0 : i32
    return %c0_i32, %arg0, %c0_i32_0 : i32, i32, i32
  }
  func.func @transform_2(%arg0: i32) -> (i32, i32) {
    %c0_i32 = arith.constant 0 : i32
    %c0_i32_0 = arith.constant 0 : i32
    return %arg0, %c0_i32 : i32, i32
  }
  func.func @transform_3(%arg0: i32) -> (i32, i32) {
    %c0_i32 = arith.constant 0 : i32
    %c0_i32_0 = arith.constant 0 : i32
    return %arg0, %c0_i32 : i32, i32
  }
  func.func @transform_4(%arg0: i32) -> (i32, i32) {
    %c0_i32 = arith.constant 0 : i32
    %c0_i32_0 = arith.constant 0 : i32
    return %arg0, %c0_i32 : i32, i32
  }
  func.func @transform_5(%arg0: i32) -> (i32, i32) {
    %c0_i32 = arith.constant 0 : i32
    %c0_i32_0 = arith.constant 0 : i32
    %c0_i32_1 = arith.constant 0 : i32
    return %c0_i32, %c0_i32_0 : i32, i32
  }
  func.func @transform_6(%arg0: i32) -> (i32, i32) {
    %c0_i32 = arith.constant 0 : i32
    %c0_i32_0 = arith.constant 0 : i32
    return %arg0, %c0_i32 : i32, i32
  }
}

module attributes {stable_mosaic.version = 11 : i64} {
  func.func @_conv_block_kernel(%arg0: i32, %arg1: memref<1x8x142xbf16, #tpu.memory_space<vmem>>, %arg2: memref<9x8x8xbf16, #tpu.memory_space<vmem>>, %arg3: memref<8x1xf32, #tpu.memory_space<vmem>>, %arg4: memref<8x1xf32, #tpu.memory_space<vmem>>, %arg5: memref<8x1xf32, #tpu.memory_space<vmem>>, %arg6: memref<1x128xf32, #tpu.memory_space<vmem>>, %arg7: memref<8x128xbf16, #tpu.memory_space<vmem>>) attributes {dimension_semantics = [#tpu.dimension_semantics<parallel>], iteration_bounds = array<i64: 1>, scalar_prefetch = 0 : i64, scratch_operands = 0 : i64, tpu.core_type = #tpu.core_type<tc>, window_params = [{pipeline_mode = #tpu.pipeline_mode<synchronous>, transform_indices = @transform_0, window_bounds = array<i64: 1, 8, 142>}, {transform_indices = @transform_1, window_bounds = array<i64: 9, 8, 8>}, {transform_indices = @transform_2, window_bounds = array<i64: 8, 1>}, {transform_indices = @transform_3, window_bounds = array<i64: 8, 1>}, {transform_indices = @transform_4, window_bounds = array<i64: 8, 1>}, {pipeline_mode = #tpu.pipeline_mode<synchronous>, transform_indices = @transform_5, window_bounds = array<i64: 1, 128>}, {transform_indices = @transform_6, window_bounds = array<i64: 8, 128>}]} {
    %c0 = arith.constant 0 : index
    %c0_0 = arith.constant 0 : index
    %c0_1 = arith.constant 0 : index
    %0 = vector.load %arg1[%c0, %c0_0, %c0_1] : memref<1x8x142xbf16, #tpu.memory_space<vmem>>, vector<1x8x128xbf16>
    %1 = vector.shape_cast %0 : vector<1x8x128xbf16> to vector<8x128xbf16>
    %c0_2 = arith.constant 0 : index
    %c0_3 = arith.constant 0 : index
    %c0_4 = arith.constant 0 : index
    %2 = vector.load %arg2[%c0_2, %c0_3, %c0_4] : memref<9x8x8xbf16, #tpu.memory_space<vmem>>, vector<1x8x8xbf16>
    %3 = vector.shape_cast %2 : vector<1x8x8xbf16> to vector<8x8xbf16>
    %cst = arith.constant dense<0.000000e+00> : vector<8x128xf32>
    %4 = tpu.matmul %3, %1, %cst {dimension_numbers = #tpu.dot_dimension_numbers<[1], [0], [0], [1], [0, 0, 1, 1], [], []>} : vector<8x8xbf16>, vector<8x128xbf16>, vector<8x128xf32> -> vector<8x128xf32>
    %c0_5 = arith.constant 0 : index
    %c0_6 = arith.constant 0 : index
    %c1 = arith.constant 1 : index
    %5 = vector.load %arg1[%c0_5, %c0_6, %c1] : memref<1x8x142xbf16, #tpu.memory_space<vmem>>, vector<1x8x128xbf16>
    %6 = vector.shape_cast %5 : vector<1x8x128xbf16> to vector<8x128xbf16>
    %c1_7 = arith.constant 1 : index
    %c0_8 = arith.constant 0 : index
    %c0_9 = arith.constant 0 : index
    %7 = vector.load %arg2[%c1_7, %c0_8, %c0_9] : memref<9x8x8xbf16, #tpu.memory_space<vmem>>, vector<1x8x8xbf16>
    %8 = vector.shape_cast %7 : vector<1x8x8xbf16> to vector<8x8xbf16>
    %cst_10 = arith.constant dense<0.000000e+00> : vector<8x128xf32>
    %9 = tpu.matmul %8, %6, %cst_10 {dimension_numbers = #tpu.dot_dimension_numbers<[1], [0], [0], [1], [0, 0, 1, 1], [], []>} : vector<8x8xbf16>, vector<8x128xbf16>, vector<8x128xf32> -> vector<8x128xf32>
    %10 = arith.addf %4, %9 : vector<8x128xf32>
    %c0_11 = arith.constant 0 : index
    %c0_12 = arith.constant 0 : index
    %c2 = arith.constant 2 : index
    %11 = vector.load %arg1[%c0_11, %c0_12, %c2] : memref<1x8x142xbf16, #tpu.memory_space<vmem>>, vector<1x8x128xbf16>
    %12 = vector.shape_cast %11 : vector<1x8x128xbf16> to vector<8x128xbf16>
    %c2_13 = arith.constant 2 : index
    %c0_14 = arith.constant 0 : index
    %c0_15 = arith.constant 0 : index
    %13 = vector.load %arg2[%c2_13, %c0_14, %c0_15] : memref<9x8x8xbf16, #tpu.memory_space<vmem>>, vector<1x8x8xbf16>
    %14 = vector.shape_cast %13 : vector<1x8x8xbf16> to vector<8x8xbf16>
    %cst_16 = arith.constant dense<0.000000e+00> : vector<8x128xf32>
    %15 = tpu.matmul %14, %12, %cst_16 {dimension_numbers = #tpu.dot_dimension_numbers<[1], [0], [0], [1], [0, 0, 1, 1], [], []>} : vector<8x8xbf16>, vector<8x128xbf16>, vector<8x128xf32> -> vector<8x128xf32>
    %16 = arith.addf %10, %15 : vector<8x128xf32>
    %c0_17 = arith.constant 0 : index
    %c0_18 = arith.constant 0 : index
    %c6 = arith.constant 6 : index
    %17 = vector.load %arg1[%c0_17, %c0_18, %c6] : memref<1x8x142xbf16, #tpu.memory_space<vmem>>, vector<1x8x128xbf16>
    %18 = vector.shape_cast %17 : vector<1x8x128xbf16> to vector<8x128xbf16>
    %c3 = arith.constant 3 : index
    %c0_19 = arith.constant 0 : index
    %c0_20 = arith.constant 0 : index
    %19 = vector.load %arg2[%c3, %c0_19, %c0_20] : memref<9x8x8xbf16, #tpu.memory_space<vmem>>, vector<1x8x8xbf16>
    %20 = vector.shape_cast %19 : vector<1x8x8xbf16> to vector<8x8xbf16>
    %cst_21 = arith.constant dense<0.000000e+00> : vector<8x128xf32>
    %21 = tpu.matmul %20, %18, %cst_21 {dimension_numbers = #tpu.dot_dimension_numbers<[1], [0], [0], [1], [0, 0, 1, 1], [], []>} : vector<8x8xbf16>, vector<8x128xbf16>, vector<8x128xf32> -> vector<8x128xf32>
    %22 = arith.addf %16, %21 : vector<8x128xf32>
    %c0_22 = arith.constant 0 : index
    %c0_23 = arith.constant 0 : index
    %c7 = arith.constant 7 : index
    %23 = vector.load %arg1[%c0_22, %c0_23, %c7] : memref<1x8x142xbf16, #tpu.memory_space<vmem>>, vector<1x8x128xbf16>
    %24 = vector.shape_cast %23 : vector<1x8x128xbf16> to vector<8x128xbf16>
    %c4 = arith.constant 4 : index
    %c0_24 = arith.constant 0 : index
    %c0_25 = arith.constant 0 : index
    %25 = vector.load %arg2[%c4, %c0_24, %c0_25] : memref<9x8x8xbf16, #tpu.memory_space<vmem>>, vector<1x8x8xbf16>
    %26 = vector.shape_cast %25 : vector<1x8x8xbf16> to vector<8x8xbf16>
    %cst_26 = arith.constant dense<0.000000e+00> : vector<8x128xf32>
    %27 = tpu.matmul %26, %24, %cst_26 {dimension_numbers = #tpu.dot_dimension_numbers<[1], [0], [0], [1], [0, 0, 1, 1], [], []>} : vector<8x8xbf16>, vector<8x128xbf16>, vector<8x128xf32> -> vector<8x128xf32>
    %28 = arith.addf %22, %27 : vector<8x128xf32>
    %c0_27 = arith.constant 0 : index
    %c0_28 = arith.constant 0 : index
    %c8 = arith.constant 8 : index
    %29 = vector.load %arg1[%c0_27, %c0_28, %c8] : memref<1x8x142xbf16, #tpu.memory_space<vmem>>, vector<1x8x128xbf16>
    %30 = vector.shape_cast %29 : vector<1x8x128xbf16> to vector<8x128xbf16>
    %c5 = arith.constant 5 : index
    %c0_29 = arith.constant 0 : index
    %c0_30 = arith.constant 0 : index
    %31 = vector.load %arg2[%c5, %c0_29, %c0_30] : memref<9x8x8xbf16, #tpu.memory_space<vmem>>, vector<1x8x8xbf16>
    %32 = vector.shape_cast %31 : vector<1x8x8xbf16> to vector<8x8xbf16>
    %cst_31 = arith.constant dense<0.000000e+00> : vector<8x128xf32>
    %33 = tpu.matmul %32, %30, %cst_31 {dimension_numbers = #tpu.dot_dimension_numbers<[1], [0], [0], [1], [0, 0, 1, 1], [], []>} : vector<8x8xbf16>, vector<8x128xbf16>, vector<8x128xf32> -> vector<8x128xf32>
    %34 = arith.addf %28, %33 : vector<8x128xf32>
    %c0_32 = arith.constant 0 : index
    %c0_33 = arith.constant 0 : index
    %c12 = arith.constant 12 : index
    %35 = vector.load %arg1[%c0_32, %c0_33, %c12] : memref<1x8x142xbf16, #tpu.memory_space<vmem>>, vector<1x8x128xbf16>
    %36 = vector.shape_cast %35 : vector<1x8x128xbf16> to vector<8x128xbf16>
    %c6_34 = arith.constant 6 : index
    %c0_35 = arith.constant 0 : index
    %c0_36 = arith.constant 0 : index
    %37 = vector.load %arg2[%c6_34, %c0_35, %c0_36] : memref<9x8x8xbf16, #tpu.memory_space<vmem>>, vector<1x8x8xbf16>
    %38 = vector.shape_cast %37 : vector<1x8x8xbf16> to vector<8x8xbf16>
    %cst_37 = arith.constant dense<0.000000e+00> : vector<8x128xf32>
    %39 = tpu.matmul %38, %36, %cst_37 {dimension_numbers = #tpu.dot_dimension_numbers<[1], [0], [0], [1], [0, 0, 1, 1], [], []>} : vector<8x8xbf16>, vector<8x128xbf16>, vector<8x128xf32> -> vector<8x128xf32>
    %40 = arith.addf %34, %39 : vector<8x128xf32>
    %c0_38 = arith.constant 0 : index
    %c0_39 = arith.constant 0 : index
    %c13 = arith.constant 13 : index
    %41 = vector.load %arg1[%c0_38, %c0_39, %c13] : memref<1x8x142xbf16, #tpu.memory_space<vmem>>, vector<1x8x128xbf16>
    %42 = vector.shape_cast %41 : vector<1x8x128xbf16> to vector<8x128xbf16>
    %c7_40 = arith.constant 7 : index
    %c0_41 = arith.constant 0 : index
    %c0_42 = arith.constant 0 : index
    %43 = vector.load %arg2[%c7_40, %c0_41, %c0_42] : memref<9x8x8xbf16, #tpu.memory_space<vmem>>, vector<1x8x8xbf16>
    %44 = vector.shape_cast %43 : vector<1x8x8xbf16> to vector<8x8xbf16>
    %cst_43 = arith.constant dense<0.000000e+00> : vector<8x128xf32>
    %45 = tpu.matmul %44, %42, %cst_43 {dimension_numbers = #tpu.dot_dimension_numbers<[1], [0], [0], [1], [0, 0, 1, 1], [], []>} : vector<8x8xbf16>, vector<8x128xbf16>, vector<8x128xf32> -> vector<8x128xf32>
    %46 = arith.addf %40, %45 : vector<8x128xf32>
    %c0_44 = arith.constant 0 : index
    %c0_45 = arith.constant 0 : index
    %c14 = arith.constant 14 : index
    %47 = vector.load %arg1[%c0_44, %c0_45, %c14] : memref<1x8x142xbf16, #tpu.memory_space<vmem>>, vector<1x8x128xbf16>
    %48 = vector.shape_cast %47 : vector<1x8x128xbf16> to vector<8x128xbf16>
    %c8_46 = arith.constant 8 : index
    %c0_47 = arith.constant 0 : index
    %c0_48 = arith.constant 0 : index
    %49 = vector.load %arg2[%c8_46, %c0_47, %c0_48] : memref<9x8x8xbf16, #tpu.memory_space<vmem>>, vector<1x8x8xbf16>
    %50 = vector.shape_cast %49 : vector<1x8x8xbf16> to vector<8x8xbf16>
    %cst_49 = arith.constant dense<0.000000e+00> : vector<8x128xf32>
    %51 = tpu.matmul %50, %48, %cst_49 {dimension_numbers = #tpu.dot_dimension_numbers<[1], [0], [0], [1], [0, 0, 1, 1], [], []>} : vector<8x8xbf16>, vector<8x128xbf16>, vector<8x128xf32> -> vector<8x128xf32>
    %52 = arith.addf %46, %51 : vector<8x128xf32>
    %c0_50 = arith.constant 0 : index
    %c0_51 = arith.constant 0 : index
    %53 = vector.load %arg6[%c0_50, %c0_51] : memref<1x128xf32, #tpu.memory_space<vmem>>, vector<1x128xf32>
    %54 = vector.broadcast %53 : vector<1x128xf32> to vector<8x128xf32>
    %55 = arith.mulf %52, %54 : vector<8x128xf32>
    %cst_52 = arith.constant dense<0.000000e+00> : vector<8xf32>
    %56 = vector.multi_reduction <add>, %55, %cst_52 [1] : vector<8x128xf32> to vector<8xf32>
    %57 = vector.shape_cast %56 : vector<8xf32> to vector<8x1xf32>
    %cst_53 = arith.constant 3.125000e-02 : f32
    %58 = vector.broadcast %cst_53 : f32 to vector<8x1xf32>
    %59 = arith.mulf %57, %58 : vector<8x1xf32>
    %60 = vector.broadcast %59 : vector<8x1xf32> to vector<8x128xf32>
    %61 = arith.subf %52, %60 : vector<8x128xf32>
    %62 = vector.broadcast %53 : vector<1x128xf32> to vector<8x128xf32>
    %63 = arith.mulf %61, %62 : vector<8x128xf32>
    %64 = arith.mulf %63, %63 : vector<8x128xf32>
    %cst_54 = arith.constant dense<0.000000e+00> : vector<8xf32>
    %65 = vector.multi_reduction <add>, %64, %cst_54 [1] : vector<8x128xf32> to vector<8xf32>
    %66 = vector.shape_cast %65 : vector<8xf32> to vector<8x1xf32>
    %cst_55 = arith.constant 3.125000e-02 : f32
    %67 = vector.broadcast %cst_55 : f32 to vector<8x1xf32>
    %68 = arith.mulf %66, %67 : vector<8x1xf32>
    %69 = vector.broadcast %59 : vector<8x1xf32> to vector<8x128xf32>
    %70 = arith.subf %52, %69 : vector<8x128xf32>
    %cst_56 = arith.constant 9.99999974E-6 : f32
    %71 = vector.broadcast %cst_56 : f32 to vector<8x1xf32>
    %72 = arith.addf %68, %71 : vector<8x1xf32>
    %73 = math.rsqrt %72 : vector<8x1xf32>
    %74 = vector.broadcast %73 : vector<8x1xf32> to vector<8x128xf32>
    %75 = arith.mulf %70, %74 : vector<8x128xf32>
    %c0_57 = arith.constant 0 : index
    %c0_58 = arith.constant 0 : index
    %76 = vector.load %arg3[%c0_57, %c0_58] : memref<8x1xf32, #tpu.memory_space<vmem>>, vector<8x1xf32>
    %77 = vector.broadcast %76 : vector<8x1xf32> to vector<8x128xf32>
    %78 = arith.mulf %75, %77 : vector<8x128xf32>
    %c0_59 = arith.constant 0 : index
    %c0_60 = arith.constant 0 : index
    %79 = vector.load %arg4[%c0_59, %c0_60] : memref<8x1xf32, #tpu.memory_space<vmem>>, vector<8x1xf32>
    %80 = vector.broadcast %79 : vector<8x1xf32> to vector<8x128xf32>
    %81 = arith.addf %78, %80 : vector<8x128xf32>
    %cst_61 = arith.constant 0.000000e+00 : f32
    %82 = vector.broadcast %cst_61 : f32 to vector<8x128xf32>
    %83 = arith.cmpf oge, %81, %82 : vector<8x128xf32>
    %c0_62 = arith.constant 0 : index
    %c0_63 = arith.constant 0 : index
    %84 = vector.load %arg5[%c0_62, %c0_63] : memref<8x1xf32, #tpu.memory_space<vmem>>, vector<8x1xf32>
    %85 = vector.broadcast %84 : vector<8x1xf32> to vector<8x128xf32>
    %86 = arith.mulf %85, %81 : vector<8x128xf32>
    %87 = arith.select %83, %81, %86 : vector<8x128xi1>, vector<8x128xf32>
    %88 = arith.truncf %87 : vector<8x128xf32> to vector<8x128xbf16>
    %c0_64 = arith.constant 0 : index
    %c0_65 = arith.constant 0 : index
    %89 = vector.load %arg7[%c0_64, %c0_65] : memref<8x128xbf16, #tpu.memory_space<vmem>>, vector<8x128xbf16>
    tpu.vector_store %arg7[%c0_64, %c0_65], %88 {strides = array<i32>} : memref<8x128xbf16, #tpu.memory_space<vmem>>, vector<8x128xbf16>,
    return
  }
  func.func @transform_0(%arg0: i32) -> (i32, i32, i32) {
    %c0_i32 = arith.constant 0 : i32
    %c0_i32_0 = arith.constant 0 : i32
    %c0_i32_1 = arith.constant 0 : i32
    %c0_i32_2 = arith.constant 0 : i32
    return %c0_i32, %c0_i32_0, %c0_i32_1 : i32, i32, i32
  }
  func.func @transform_1(%arg0: i32) -> (i32, i32, i32) {
    %c0_i32 = arith.constant 0 : i32
    %c0_i32_0 = arith.constant 0 : i32
    %c0_i32_1 = arith.constant 0 : i32
    return %c0_i32, %arg0, %c0_i32_0 : i32, i32, i32
  }
  func.func @transform_2(%arg0: i32) -> (i32, i32) {
    %c0_i32 = arith.constant 0 : i32
    %c0_i32_0 = arith.constant 0 : i32
    return %arg0, %c0_i32 : i32, i32
  }
  func.func @transform_3(%arg0: i32) -> (i32, i32) {
    %c0_i32 = arith.constant 0 : i32
    %c0_i32_0 = arith.constant 0 : i32
    return %arg0, %c0_i32 : i32, i32
  }
  func.func @transform_4(%arg0: i32) -> (i32, i32) {
    %c0_i32 = arith.constant 0 : i32
    %c0_i32_0 = arith.constant 0 : i32
    return %arg0, %c0_i32 : i32, i32
  }
  func.func @transform_5(%arg0: i32) -> (i32, i32) {
    %c0_i32 = arith.constant 0 : i32
    %c0_i32_0 = arith.constant 0 : i32
    %c0_i32_1 = arith.constant 0 : i32
    return %c0_i32, %c0_i32_0 : i32, i32
  }
  func.func @transform_6(%arg0: i32) -> (i32, i32) {
    %c0_i32 = arith.constant 0 : i32
    %c0_i32_0 = arith.constant 0 : i32
    return %arg0, %c0_i32 : i32, i32
  }
}

module attributes {stable_mosaic.version = 11 : i64} {
  func.func @_conv_block_kernel(%arg0: i32, %arg1: memref<1x8x278xbf16, #tpu.memory_space<vmem>>, %arg2: memref<9x8x8xbf16, #tpu.memory_space<vmem>>, %arg3: memref<8x1xf32, #tpu.memory_space<vmem>>, %arg4: memref<8x1xf32, #tpu.memory_space<vmem>>, %arg5: memref<8x1xf32, #tpu.memory_space<vmem>>, %arg6: memref<1x256xf32, #tpu.memory_space<vmem>>, %arg7: memref<8x256xbf16, #tpu.memory_space<vmem>>) attributes {dimension_semantics = [#tpu.dimension_semantics<parallel>], iteration_bounds = array<i64: 1>, scalar_prefetch = 0 : i64, scratch_operands = 0 : i64, tpu.core_type = #tpu.core_type<tc>, window_params = [{pipeline_mode = #tpu.pipeline_mode<synchronous>, transform_indices = @transform_0, window_bounds = array<i64: 1, 8, 278>}, {transform_indices = @transform_1, window_bounds = array<i64: 9, 8, 8>}, {transform_indices = @transform_2, window_bounds = array<i64: 8, 1>}, {transform_indices = @transform_3, window_bounds = array<i64: 8, 1>}, {transform_indices = @transform_4, window_bounds = array<i64: 8, 1>}, {pipeline_mode = #tpu.pipeline_mode<synchronous>, transform_indices = @transform_5, window_bounds = array<i64: 1, 256>}, {transform_indices = @transform_6, window_bounds = array<i64: 8, 256>}]} {
    %c0 = arith.constant 0 : index
    %c0_0 = arith.constant 0 : index
    %c0_1 = arith.constant 0 : index
    %0 = vector.load %arg1[%c0, %c0_0, %c0_1] : memref<1x8x278xbf16, #tpu.memory_space<vmem>>, vector<1x8x256xbf16>
    %1 = vector.shape_cast %0 : vector<1x8x256xbf16> to vector<8x256xbf16>
    %c0_2 = arith.constant 0 : index
    %c0_3 = arith.constant 0 : index
    %c0_4 = arith.constant 0 : index
    %2 = vector.load %arg2[%c0_2, %c0_3, %c0_4] : memref<9x8x8xbf16, #tpu.memory_space<vmem>>, vector<1x8x8xbf16>
    %3 = vector.shape_cast %2 : vector<1x8x8xbf16> to vector<8x8xbf16>
    %cst = arith.constant dense<0.000000e+00> : vector<8x256xf32>
    %4 = tpu.matmul %3, %1, %cst {dimension_numbers = #tpu.dot_dimension_numbers<[1], [0], [0], [1], [0, 0, 1, 1], [], []>} : vector<8x8xbf16>, vector<8x256xbf16>, vector<8x256xf32> -> vector<8x256xf32>
    %c0_5 = arith.constant 0 : index
    %c0_6 = arith.constant 0 : index
    %c1 = arith.constant 1 : index
    %5 = vector.load %arg1[%c0_5, %c0_6, %c1] : memref<1x8x278xbf16, #tpu.memory_space<vmem>>, vector<1x8x256xbf16>
    %6 = vector.shape_cast %5 : vector<1x8x256xbf16> to vector<8x256xbf16>
    %c1_7 = arith.constant 1 : index
    %c0_8 = arith.constant 0 : index
    %c0_9 = arith.constant 0 : index
    %7 = vector.load %arg2[%c1_7, %c0_8, %c0_9] : memref<9x8x8xbf16, #tpu.memory_space<vmem>>, vector<1x8x8xbf16>
    %8 = vector.shape_cast %7 : vector<1x8x8xbf16> to vector<8x8xbf16>
    %cst_10 = arith.constant dense<0.000000e+00> : vector<8x256xf32>
    %9 = tpu.matmul %8, %6, %cst_10 {dimension_numbers = #tpu.dot_dimension_numbers<[1], [0], [0], [1], [0, 0, 1, 1], [], []>} : vector<8x8xbf16>, vector<8x256xbf16>, vector<8x256xf32> -> vector<8x256xf32>
    %10 = arith.addf %4, %9 : vector<8x256xf32>
    %c0_11 = arith.constant 0 : index
    %c0_12 = arith.constant 0 : index
    %c2 = arith.constant 2 : index
    %11 = vector.load %arg1[%c0_11, %c0_12, %c2] : memref<1x8x278xbf16, #tpu.memory_space<vmem>>, vector<1x8x256xbf16>
    %12 = vector.shape_cast %11 : vector<1x8x256xbf16> to vector<8x256xbf16>
    %c2_13 = arith.constant 2 : index
    %c0_14 = arith.constant 0 : index
    %c0_15 = arith.constant 0 : index
    %13 = vector.load %arg2[%c2_13, %c0_14, %c0_15] : memref<9x8x8xbf16, #tpu.memory_space<vmem>>, vector<1x8x8xbf16>
    %14 = vector.shape_cast %13 : vector<1x8x8xbf16> to vector<8x8xbf16>
    %cst_16 = arith.constant dense<0.000000e+00> : vector<8x256xf32>
    %15 = tpu.matmul %14, %12, %cst_16 {dimension_numbers = #tpu.dot_dimension_numbers<[1], [0], [0], [1], [0, 0, 1, 1], [], []>} : vector<8x8xbf16>, vector<8x256xbf16>, vector<8x256xf32> -> vector<8x256xf32>
    %16 = arith.addf %10, %15 : vector<8x256xf32>
    %c0_17 = arith.constant 0 : index
    %c0_18 = arith.constant 0 : index
    %c10 = arith.constant 10 : index
    %17 = vector.load %arg1[%c0_17, %c0_18, %c10] : memref<1x8x278xbf16, #tpu.memory_space<vmem>>, vector<1x8x256xbf16>
    %18 = vector.shape_cast %17 : vector<1x8x256xbf16> to vector<8x256xbf16>
    %c3 = arith.constant 3 : index
    %c0_19 = arith.constant 0 : index
    %c0_20 = arith.constant 0 : index
    %19 = vector.load %arg2[%c3, %c0_19, %c0_20] : memref<9x8x8xbf16, #tpu.memory_space<vmem>>, vector<1x8x8xbf16>
    %20 = vector.shape_cast %19 : vector<1x8x8xbf16> to vector<8x8xbf16>
    %cst_21 = arith.constant dense<0.000000e+00> : vector<8x256xf32>
    %21 = tpu.matmul %20, %18, %cst_21 {dimension_numbers = #tpu.dot_dimension_numbers<[1], [0], [0], [1], [0, 0, 1, 1], [], []>} : vector<8x8xbf16>, vector<8x256xbf16>, vector<8x256xf32> -> vector<8x256xf32>
    %22 = arith.addf %16, %21 : vector<8x256xf32>
    %c0_22 = arith.constant 0 : index
    %c0_23 = arith.constant 0 : index
    %c11 = arith.constant 11 : index
    %23 = vector.load %arg1[%c0_22, %c0_23, %c11] : memref<1x8x278xbf16, #tpu.memory_space<vmem>>, vector<1x8x256xbf16>
    %24 = vector.shape_cast %23 : vector<1x8x256xbf16> to vector<8x256xbf16>
    %c4 = arith.constant 4 : index
    %c0_24 = arith.constant 0 : index
    %c0_25 = arith.constant 0 : index
    %25 = vector.load %arg2[%c4, %c0_24, %c0_25] : memref<9x8x8xbf16, #tpu.memory_space<vmem>>, vector<1x8x8xbf16>
    %26 = vector.shape_cast %25 : vector<1x8x8xbf16> to vector<8x8xbf16>
    %cst_26 = arith.constant dense<0.000000e+00> : vector<8x256xf32>
    %27 = tpu.matmul %26, %24, %cst_26 {dimension_numbers = #tpu.dot_dimension_numbers<[1], [0], [0], [1], [0, 0, 1, 1], [], []>} : vector<8x8xbf16>, vector<8x256xbf16>, vector<8x256xf32> -> vector<8x256xf32>
    %28 = arith.addf %22, %27 : vector<8x256xf32>
    %c0_27 = arith.constant 0 : index
    %c0_28 = arith.constant 0 : index
    %c12 = arith.constant 12 : index
    %29 = vector.load %arg1[%c0_27, %c0_28, %c12] : memref<1x8x278xbf16, #tpu.memory_space<vmem>>, vector<1x8x256xbf16>
    %30 = vector.shape_cast %29 : vector<1x8x256xbf16> to vector<8x256xbf16>
    %c5 = arith.constant 5 : index
    %c0_29 = arith.constant 0 : index
    %c0_30 = arith.constant 0 : index
    %31 = vector.load %arg2[%c5, %c0_29, %c0_30] : memref<9x8x8xbf16, #tpu.memory_space<vmem>>, vector<1x8x8xbf16>
    %32 = vector.shape_cast %31 : vector<1x8x8xbf16> to vector<8x8xbf16>
    %cst_31 = arith.constant dense<0.000000e+00> : vector<8x256xf32>
    %33 = tpu.matmul %32, %30, %cst_31 {dimension_numbers = #tpu.dot_dimension_numbers<[1], [0], [0], [1], [0, 0, 1, 1], [], []>} : vector<8x8xbf16>, vector<8x256xbf16>, vector<8x256xf32> -> vector<8x256xf32>
    %34 = arith.addf %28, %33 : vector<8x256xf32>
    %c0_32 = arith.constant 0 : index
    %c0_33 = arith.constant 0 : index
    %c20 = arith.constant 20 : index
    %35 = vector.load %arg1[%c0_32, %c0_33, %c20] : memref<1x8x278xbf16, #tpu.memory_space<vmem>>, vector<1x8x256xbf16>
    %36 = vector.shape_cast %35 : vector<1x8x256xbf16> to vector<8x256xbf16>
    %c6 = arith.constant 6 : index
    %c0_34 = arith.constant 0 : index
    %c0_35 = arith.constant 0 : index
    %37 = vector.load %arg2[%c6, %c0_34, %c0_35] : memref<9x8x8xbf16, #tpu.memory_space<vmem>>, vector<1x8x8xbf16>
    %38 = vector.shape_cast %37 : vector<1x8x8xbf16> to vector<8x8xbf16>
    %cst_36 = arith.constant dense<0.000000e+00> : vector<8x256xf32>
    %39 = tpu.matmul %38, %36, %cst_36 {dimension_numbers = #tpu.dot_dimension_numbers<[1], [0], [0], [1], [0, 0, 1, 1], [], []>} : vector<8x8xbf16>, vector<8x256xbf16>, vector<8x256xf32> -> vector<8x256xf32>
    %40 = arith.addf %34, %39 : vector<8x256xf32>
    %c0_37 = arith.constant 0 : index
    %c0_38 = arith.constant 0 : index
    %c21 = arith.constant 21 : index
    %41 = vector.load %arg1[%c0_37, %c0_38, %c21] : memref<1x8x278xbf16, #tpu.memory_space<vmem>>, vector<1x8x256xbf16>
    %42 = vector.shape_cast %41 : vector<1x8x256xbf16> to vector<8x256xbf16>
    %c7 = arith.constant 7 : index
    %c0_39 = arith.constant 0 : index
    %c0_40 = arith.constant 0 : index
    %43 = vector.load %arg2[%c7, %c0_39, %c0_40] : memref<9x8x8xbf16, #tpu.memory_space<vmem>>, vector<1x8x8xbf16>
    %44 = vector.shape_cast %43 : vector<1x8x8xbf16> to vector<8x8xbf16>
    %cst_41 = arith.constant dense<0.000000e+00> : vector<8x256xf32>
    %45 = tpu.matmul %44, %42, %cst_41 {dimension_numbers = #tpu.dot_dimension_numbers<[1], [0], [0], [1], [0, 0, 1, 1], [], []>} : vector<8x8xbf16>, vector<8x256xbf16>, vector<8x256xf32> -> vector<8x256xf32>
    %46 = arith.addf %40, %45 : vector<8x256xf32>
    %c0_42 = arith.constant 0 : index
    %c0_43 = arith.constant 0 : index
    %c22 = arith.constant 22 : index
    %47 = vector.load %arg1[%c0_42, %c0_43, %c22] : memref<1x8x278xbf16, #tpu.memory_space<vmem>>, vector<1x8x256xbf16>
    %48 = vector.shape_cast %47 : vector<1x8x256xbf16> to vector<8x256xbf16>
    %c8 = arith.constant 8 : index
    %c0_44 = arith.constant 0 : index
    %c0_45 = arith.constant 0 : index
    %49 = vector.load %arg2[%c8, %c0_44, %c0_45] : memref<9x8x8xbf16, #tpu.memory_space<vmem>>, vector<1x8x8xbf16>
    %50 = vector.shape_cast %49 : vector<1x8x8xbf16> to vector<8x8xbf16>
    %cst_46 = arith.constant dense<0.000000e+00> : vector<8x256xf32>
    %51 = tpu.matmul %50, %48, %cst_46 {dimension_numbers = #tpu.dot_dimension_numbers<[1], [0], [0], [1], [0, 0, 1, 1], [], []>} : vector<8x8xbf16>, vector<8x256xbf16>, vector<8x256xf32> -> vector<8x256xf32>
    %52 = arith.addf %46, %51 : vector<8x256xf32>
    %c0_47 = arith.constant 0 : index
    %c0_48 = arith.constant 0 : index
    %53 = vector.load %arg6[%c0_47, %c0_48] : memref<1x256xf32, #tpu.memory_space<vmem>>, vector<1x256xf32>
    %54 = vector.broadcast %53 : vector<1x256xf32> to vector<8x256xf32>
    %55 = arith.mulf %52, %54 : vector<8x256xf32>
    %cst_49 = arith.constant dense<0.000000e+00> : vector<8xf32>
    %56 = vector.multi_reduction <add>, %55, %cst_49 [1] : vector<8x256xf32> to vector<8xf32>
    %57 = vector.shape_cast %56 : vector<8xf32> to vector<8x1xf32>
    %cst_50 = arith.constant 7.812500e-03 : f32
    %58 = vector.broadcast %cst_50 : f32 to vector<8x1xf32>
    %59 = arith.mulf %57, %58 : vector<8x1xf32>
    %60 = vector.broadcast %59 : vector<8x1xf32> to vector<8x256xf32>
    %61 = arith.subf %52, %60 : vector<8x256xf32>
    %62 = vector.broadcast %53 : vector<1x256xf32> to vector<8x256xf32>
    %63 = arith.mulf %61, %62 : vector<8x256xf32>
    %64 = arith.mulf %63, %63 : vector<8x256xf32>
    %cst_51 = arith.constant dense<0.000000e+00> : vector<8xf32>
    %65 = vector.multi_reduction <add>, %64, %cst_51 [1] : vector<8x256xf32> to vector<8xf32>
    %66 = vector.shape_cast %65 : vector<8xf32> to vector<8x1xf32>
    %cst_52 = arith.constant 7.812500e-03 : f32
    %67 = vector.broadcast %cst_52 : f32 to vector<8x1xf32>
    %68 = arith.mulf %66, %67 : vector<8x1xf32>
    %69 = vector.broadcast %59 : vector<8x1xf32> to vector<8x256xf32>
    %70 = arith.subf %52, %69 : vector<8x256xf32>
    %cst_53 = arith.constant 9.99999974E-6 : f32
    %71 = vector.broadcast %cst_53 : f32 to vector<8x1xf32>
    %72 = arith.addf %68, %71 : vector<8x1xf32>
    %73 = math.rsqrt %72 : vector<8x1xf32>
    %74 = vector.broadcast %73 : vector<8x1xf32> to vector<8x256xf32>
    %75 = arith.mulf %70, %74 : vector<8x256xf32>
    %c0_54 = arith.constant 0 : index
    %c0_55 = arith.constant 0 : index
    %76 = vector.load %arg3[%c0_54, %c0_55] : memref<8x1xf32, #tpu.memory_space<vmem>>, vector<8x1xf32>
    %77 = vector.broadcast %76 : vector<8x1xf32> to vector<8x256xf32>
    %78 = arith.mulf %75, %77 : vector<8x256xf32>
    %c0_56 = arith.constant 0 : index
    %c0_57 = arith.constant 0 : index
    %79 = vector.load %arg4[%c0_56, %c0_57] : memref<8x1xf32, #tpu.memory_space<vmem>>, vector<8x1xf32>
    %80 = vector.broadcast %79 : vector<8x1xf32> to vector<8x256xf32>
    %81 = arith.addf %78, %80 : vector<8x256xf32>
    %cst_58 = arith.constant 0.000000e+00 : f32
    %82 = vector.broadcast %cst_58 : f32 to vector<8x256xf32>
    %83 = arith.cmpf oge, %81, %82 : vector<8x256xf32>
    %c0_59 = arith.constant 0 : index
    %c0_60 = arith.constant 0 : index
    %84 = vector.load %arg5[%c0_59, %c0_60] : memref<8x1xf32, #tpu.memory_space<vmem>>, vector<8x1xf32>
    %85 = vector.broadcast %84 : vector<8x1xf32> to vector<8x256xf32>
    %86 = arith.mulf %85, %81 : vector<8x256xf32>
    %87 = arith.select %83, %81, %86 : vector<8x256xi1>, vector<8x256xf32>
    %88 = arith.truncf %87 : vector<8x256xf32> to vector<8x256xbf16>
    %c0_61 = arith.constant 0 : index
    %c0_62 = arith.constant 0 : index
    %89 = vector.load %arg7[%c0_61, %c0_62] : memref<8x256xbf16, #tpu.memory_space<vmem>>, vector<8x256xbf16>
    tpu.vector_store %arg7[%c0_61, %c0_62], %88 {strides = array<i32>} : memref<8x256xbf16, #tpu.memory_space<vmem>>, vector<8x256xbf16>,
    return
  }
  func.func @transform_0(%arg0: i32) -> (i32, i32, i32) {
    %c0_i32 = arith.constant 0 : i32
    %c0_i32_0 = arith.constant 0 : i32
    %c0_i32_1 = arith.constant 0 : i32
    %c0_i32_2 = arith.constant 0 : i32
    return %c0_i32, %c0_i32_0, %c0_i32_1 : i32, i32, i32
  }
  func.func @transform_1(%arg0: i32) -> (i32, i32, i32) {
    %c0_i32 = arith.constant 0 : i32
    %c0_i32_0 = arith.constant 0 : i32
    %c0_i32_1 = arith.constant 0 : i32
    return %c0_i32, %arg0, %c0_i32_0 : i32, i32, i32
  }
  func.func @transform_2(%arg0: i32) -> (i32, i32) {
    %c0_i32 = arith.constant 0 : i32
    %c0_i32_0 = arith.constant 0 : i32
    return %arg0, %c0_i32 : i32, i32
  }
  func.func @transform_3(%arg0: i32) -> (i32, i32) {
    %c0_i32 = arith.constant 0 : i32
    %c0_i32_0 = arith.constant 0 : i32
    return %arg0, %c0_i32 : i32, i32
  }
  func.func @transform_4(%arg0: i32) -> (i32, i32) {
    %c0_i32 = arith.constant 0 : i32
    %c0_i32_0 = arith.constant 0 : i32
    return %arg0, %c0_i32 : i32, i32
  }
  func.func @transform_5(%arg0: i32) -> (i32, i32) {
    %c0_i32 = arith.constant 0 : i32
    %c0_i32_0 = arith.constant 0 : i32
    %c0_i32_1 = arith.constant 0 : i32
    return %c0_i32, %c0_i32_0 : i32, i32
  }
  func.func @transform_6(%arg0: i32) -> (i32, i32) {
    %c0_i32 = arith.constant 0 : i32
    %c0_i32_0 = arith.constant 0 : i32
    return %arg0, %c0_i32 : i32, i32
  }
}

module attributes {stable_mosaic.version = 11 : i64} {
  func.func @_conv_block_kernel(%arg0: i32, %arg1: memref<1x8x806xbf16, #tpu.memory_space<vmem>>, %arg2: memref<9x8x8xbf16, #tpu.memory_space<vmem>>, %arg3: memref<8x1xf32, #tpu.memory_space<vmem>>, %arg4: memref<8x1xf32, #tpu.memory_space<vmem>>, %arg5: memref<8x1xf32, #tpu.memory_space<vmem>>, %arg6: memref<1x768xf32, #tpu.memory_space<vmem>>, %arg7: memref<8x768xbf16, #tpu.memory_space<vmem>>) attributes {dimension_semantics = [#tpu.dimension_semantics<parallel>], iteration_bounds = array<i64: 1>, scalar_prefetch = 0 : i64, scratch_operands = 0 : i64, tpu.core_type = #tpu.core_type<tc>, window_params = [{pipeline_mode = #tpu.pipeline_mode<synchronous>, transform_indices = @transform_0, window_bounds = array<i64: 1, 8, 806>}, {transform_indices = @transform_1, window_bounds = array<i64: 9, 8, 8>}, {transform_indices = @transform_2, window_bounds = array<i64: 8, 1>}, {transform_indices = @transform_3, window_bounds = array<i64: 8, 1>}, {transform_indices = @transform_4, window_bounds = array<i64: 8, 1>}, {pipeline_mode = #tpu.pipeline_mode<synchronous>, transform_indices = @transform_5, window_bounds = array<i64: 1, 768>}, {transform_indices = @transform_6, window_bounds = array<i64: 8, 768>}]} {
    %c0 = arith.constant 0 : index
    %c0_0 = arith.constant 0 : index
    %c0_1 = arith.constant 0 : index
    %0 = vector.load %arg1[%c0, %c0_0, %c0_1] : memref<1x8x806xbf16, #tpu.memory_space<vmem>>, vector<1x8x768xbf16>
    %1 = vector.shape_cast %0 : vector<1x8x768xbf16> to vector<8x768xbf16>
    %c0_2 = arith.constant 0 : index
    %c0_3 = arith.constant 0 : index
    %c0_4 = arith.constant 0 : index
    %2 = vector.load %arg2[%c0_2, %c0_3, %c0_4] : memref<9x8x8xbf16, #tpu.memory_space<vmem>>, vector<1x8x8xbf16>
    %3 = vector.shape_cast %2 : vector<1x8x8xbf16> to vector<8x8xbf16>
    %cst = arith.constant dense<0.000000e+00> : vector<8x768xf32>
    %4 = tpu.matmul %3, %1, %cst {dimension_numbers = #tpu.dot_dimension_numbers<[1], [0], [0], [1], [0, 0, 1, 1], [], []>} : vector<8x8xbf16>, vector<8x768xbf16>, vector<8x768xf32> -> vector<8x768xf32>
    %c0_5 = arith.constant 0 : index
    %c0_6 = arith.constant 0 : index
    %c1 = arith.constant 1 : index
    %5 = vector.load %arg1[%c0_5, %c0_6, %c1] : memref<1x8x806xbf16, #tpu.memory_space<vmem>>, vector<1x8x768xbf16>
    %6 = vector.shape_cast %5 : vector<1x8x768xbf16> to vector<8x768xbf16>
    %c1_7 = arith.constant 1 : index
    %c0_8 = arith.constant 0 : index
    %c0_9 = arith.constant 0 : index
    %7 = vector.load %arg2[%c1_7, %c0_8, %c0_9] : memref<9x8x8xbf16, #tpu.memory_space<vmem>>, vector<1x8x8xbf16>
    %8 = vector.shape_cast %7 : vector<1x8x8xbf16> to vector<8x8xbf16>
    %cst_10 = arith.constant dense<0.000000e+00> : vector<8x768xf32>
    %9 = tpu.matmul %8, %6, %cst_10 {dimension_numbers = #tpu.dot_dimension_numbers<[1], [0], [0], [1], [0, 0, 1, 1], [], []>} : vector<8x8xbf16>, vector<8x768xbf16>, vector<8x768xf32> -> vector<8x768xf32>
    %10 = arith.addf %4, %9 : vector<8x768xf32>
    %c0_11 = arith.constant 0 : index
    %c0_12 = arith.constant 0 : index
    %c2 = arith.constant 2 : index
    %11 = vector.load %arg1[%c0_11, %c0_12, %c2] : memref<1x8x806xbf16, #tpu.memory_space<vmem>>, vector<1x8x768xbf16>
    %12 = vector.shape_cast %11 : vector<1x8x768xbf16> to vector<8x768xbf16>
    %c2_13 = arith.constant 2 : index
    %c0_14 = arith.constant 0 : index
    %c0_15 = arith.constant 0 : index
    %13 = vector.load %arg2[%c2_13, %c0_14, %c0_15] : memref<9x8x8xbf16, #tpu.memory_space<vmem>>, vector<1x8x8xbf16>
    %14 = vector.shape_cast %13 : vector<1x8x8xbf16> to vector<8x8xbf16>
    %cst_16 = arith.constant dense<0.000000e+00> : vector<8x768xf32>
    %15 = tpu.matmul %14, %12, %cst_16 {dimension_numbers = #tpu.dot_dimension_numbers<[1], [0], [0], [1], [0, 0, 1, 1], [], []>} : vector<8x8xbf16>, vector<8x768xbf16>, vector<8x768xf32> -> vector<8x768xf32>
    %16 = arith.addf %10, %15 : vector<8x768xf32>
    %c0_17 = arith.constant 0 : index
    %c0_18 = arith.constant 0 : index
    %c18 = arith.constant 18 : index
    %17 = vector.load %arg1[%c0_17, %c0_18, %c18] : memref<1x8x806xbf16, #tpu.memory_space<vmem>>, vector<1x8x768xbf16>
    %18 = vector.shape_cast %17 : vector<1x8x768xbf16> to vector<8x768xbf16>
    %c3 = arith.constant 3 : index
    %c0_19 = arith.constant 0 : index
    %c0_20 = arith.constant 0 : index
    %19 = vector.load %arg2[%c3, %c0_19, %c0_20] : memref<9x8x8xbf16, #tpu.memory_space<vmem>>, vector<1x8x8xbf16>
    %20 = vector.shape_cast %19 : vector<1x8x8xbf16> to vector<8x8xbf16>
    %cst_21 = arith.constant dense<0.000000e+00> : vector<8x768xf32>
    %21 = tpu.matmul %20, %18, %cst_21 {dimension_numbers = #tpu.dot_dimension_numbers<[1], [0], [0], [1], [0, 0, 1, 1], [], []>} : vector<8x8xbf16>, vector<8x768xbf16>, vector<8x768xf32> -> vector<8x768xf32>
    %22 = arith.addf %16, %21 : vector<8x768xf32>
    %c0_22 = arith.constant 0 : index
    %c0_23 = arith.constant 0 : index
    %c19 = arith.constant 19 : index
    %23 = vector.load %arg1[%c0_22, %c0_23, %c19] : memref<1x8x806xbf16, #tpu.memory_space<vmem>>, vector<1x8x768xbf16>
    %24 = vector.shape_cast %23 : vector<1x8x768xbf16> to vector<8x768xbf16>
    %c4 = arith.constant 4 : index
    %c0_24 = arith.constant 0 : index
    %c0_25 = arith.constant 0 : index
    %25 = vector.load %arg2[%c4, %c0_24, %c0_25] : memref<9x8x8xbf16, #tpu.memory_space<vmem>>, vector<1x8x8xbf16>
    %26 = vector.shape_cast %25 : vector<1x8x8xbf16> to vector<8x8xbf16>
    %cst_26 = arith.constant dense<0.000000e+00> : vector<8x768xf32>
    %27 = tpu.matmul %26, %24, %cst_26 {dimension_numbers = #tpu.dot_dimension_numbers<[1], [0], [0], [1], [0, 0, 1, 1], [], []>} : vector<8x8xbf16>, vector<8x768xbf16>, vector<8x768xf32> -> vector<8x768xf32>
    %28 = arith.addf %22, %27 : vector<8x768xf32>
    %c0_27 = arith.constant 0 : index
    %c0_28 = arith.constant 0 : index
    %c20 = arith.constant 20 : index
    %29 = vector.load %arg1[%c0_27, %c0_28, %c20] : memref<1x8x806xbf16, #tpu.memory_space<vmem>>, vector<1x8x768xbf16>
    %30 = vector.shape_cast %29 : vector<1x8x768xbf16> to vector<8x768xbf16>
    %c5 = arith.constant 5 : index
    %c0_29 = arith.constant 0 : index
    %c0_30 = arith.constant 0 : index
    %31 = vector.load %arg2[%c5, %c0_29, %c0_30] : memref<9x8x8xbf16, #tpu.memory_space<vmem>>, vector<1x8x8xbf16>
    %32 = vector.shape_cast %31 : vector<1x8x8xbf16> to vector<8x8xbf16>
    %cst_31 = arith.constant dense<0.000000e+00> : vector<8x768xf32>
    %33 = tpu.matmul %32, %30, %cst_31 {dimension_numbers = #tpu.dot_dimension_numbers<[1], [0], [0], [1], [0, 0, 1, 1], [], []>} : vector<8x8xbf16>, vector<8x768xbf16>, vector<8x768xf32> -> vector<8x768xf32>
    %34 = arith.addf %28, %33 : vector<8x768xf32>
    %c0_32 = arith.constant 0 : index
    %c0_33 = arith.constant 0 : index
    %c36 = arith.constant 36 : index
    %35 = vector.load %arg1[%c0_32, %c0_33, %c36] : memref<1x8x806xbf16, #tpu.memory_space<vmem>>, vector<1x8x768xbf16>
    %36 = vector.shape_cast %35 : vector<1x8x768xbf16> to vector<8x768xbf16>
    %c6 = arith.constant 6 : index
    %c0_34 = arith.constant 0 : index
    %c0_35 = arith.constant 0 : index
    %37 = vector.load %arg2[%c6, %c0_34, %c0_35] : memref<9x8x8xbf16, #tpu.memory_space<vmem>>, vector<1x8x8xbf16>
    %38 = vector.shape_cast %37 : vector<1x8x8xbf16> to vector<8x8xbf16>
    %cst_36 = arith.constant dense<0.000000e+00> : vector<8x768xf32>
    %39 = tpu.matmul %38, %36, %cst_36 {dimension_numbers = #tpu.dot_dimension_numbers<[1], [0], [0], [1], [0, 0, 1, 1], [], []>} : vector<8x8xbf16>, vector<8x768xbf16>, vector<8x768xf32> -> vector<8x768xf32>
    %40 = arith.addf %34, %39 : vector<8x768xf32>
    %c0_37 = arith.constant 0 : index
    %c0_38 = arith.constant 0 : index
    %c37 = arith.constant 37 : index
    %41 = vector.load %arg1[%c0_37, %c0_38, %c37] : memref<1x8x806xbf16, #tpu.memory_space<vmem>>, vector<1x8x768xbf16>
    %42 = vector.shape_cast %41 : vector<1x8x768xbf16> to vector<8x768xbf16>
    %c7 = arith.constant 7 : index
    %c0_39 = arith.constant 0 : index
    %c0_40 = arith.constant 0 : index
    %43 = vector.load %arg2[%c7, %c0_39, %c0_40] : memref<9x8x8xbf16, #tpu.memory_space<vmem>>, vector<1x8x8xbf16>
    %44 = vector.shape_cast %43 : vector<1x8x8xbf16> to vector<8x8xbf16>
    %cst_41 = arith.constant dense<0.000000e+00> : vector<8x768xf32>
    %45 = tpu.matmul %44, %42, %cst_41 {dimension_numbers = #tpu.dot_dimension_numbers<[1], [0], [0], [1], [0, 0, 1, 1], [], []>} : vector<8x8xbf16>, vector<8x768xbf16>, vector<8x768xf32> -> vector<8x768xf32>
    %46 = arith.addf %40, %45 : vector<8x768xf32>
    %c0_42 = arith.constant 0 : index
    %c0_43 = arith.constant 0 : index
    %c38 = arith.constant 38 : index
    %47 = vector.load %arg1[%c0_42, %c0_43, %c38] : memref<1x8x806xbf16, #tpu.memory_space<vmem>>, vector<1x8x768xbf16>
    %48 = vector.shape_cast %47 : vector<1x8x768xbf16> to vector<8x768xbf16>
    %c8 = arith.constant 8 : index
    %c0_44 = arith.constant 0 : index
    %c0_45 = arith.constant 0 : index
    %49 = vector.load %arg2[%c8, %c0_44, %c0_45] : memref<9x8x8xbf16, #tpu.memory_space<vmem>>, vector<1x8x8xbf16>
    %50 = vector.shape_cast %49 : vector<1x8x8xbf16> to vector<8x8xbf16>
    %cst_46 = arith.constant dense<0.000000e+00> : vector<8x768xf32>
    %51 = tpu.matmul %50, %48, %cst_46 {dimension_numbers = #tpu.dot_dimension_numbers<[1], [0], [0], [1], [0, 0, 1, 1], [], []>} : vector<8x8xbf16>, vector<8x768xbf16>, vector<8x768xf32> -> vector<8x768xf32>
    %52 = arith.addf %46, %51 : vector<8x768xf32>
    %c0_47 = arith.constant 0 : index
    %c0_48 = arith.constant 0 : index
    %53 = vector.load %arg6[%c0_47, %c0_48] : memref<1x768xf32, #tpu.memory_space<vmem>>, vector<1x768xf32>
    %54 = vector.broadcast %53 : vector<1x768xf32> to vector<8x768xf32>
    %55 = arith.mulf %52, %54 : vector<8x768xf32>
    %cst_49 = arith.constant dense<0.000000e+00> : vector<8xf32>
    %56 = vector.multi_reduction <add>, %55, %cst_49 [1] : vector<8x768xf32> to vector<8xf32>
    %57 = vector.shape_cast %56 : vector<8xf32> to vector<8x1xf32>
    %cst_50 = arith.constant 0.001953125 : f32
    %58 = vector.broadcast %cst_50 : f32 to vector<8x1xf32>
    %59 = arith.mulf %57, %58 : vector<8x1xf32>
    %60 = vector.broadcast %59 : vector<8x1xf32> to vector<8x768xf32>
    %61 = arith.subf %52, %60 : vector<8x768xf32>
    %62 = vector.broadcast %53 : vector<1x768xf32> to vector<8x768xf32>
    %63 = arith.mulf %61, %62 : vector<8x768xf32>
    %64 = arith.mulf %63, %63 : vector<8x768xf32>
    %cst_51 = arith.constant dense<0.000000e+00> : vector<8xf32>
    %65 = vector.multi_reduction <add>, %64, %cst_51 [1] : vector<8x768xf32> to vector<8xf32>
    %66 = vector.shape_cast %65 : vector<8xf32> to vector<8x1xf32>
    %cst_52 = arith.constant 0.001953125 : f32
    %67 = vector.broadcast %cst_52 : f32 to vector<8x1xf32>
    %68 = arith.mulf %66, %67 : vector<8x1xf32>
    %69 = vector.broadcast %59 : vector<8x1xf32> to vector<8x768xf32>
    %70 = arith.subf %52, %69 : vector<8x768xf32>
    %cst_53 = arith.constant 9.99999974E-6 : f32
    %71 = vector.broadcast %cst_53 : f32 to vector<8x1xf32>
    %72 = arith.addf %68, %71 : vector<8x1xf32>
    %73 = math.rsqrt %72 : vector<8x1xf32>
    %74 = vector.broadcast %73 : vector<8x1xf32> to vector<8x768xf32>
    %75 = arith.mulf %70, %74 : vector<8x768xf32>
    %c0_54 = arith.constant 0 : index
    %c0_55 = arith.constant 0 : index
    %76 = vector.load %arg3[%c0_54, %c0_55] : memref<8x1xf32, #tpu.memory_space<vmem>>, vector<8x1xf32>
    %77 = vector.broadcast %76 : vector<8x1xf32> to vector<8x768xf32>
    %78 = arith.mulf %75, %77 : vector<8x768xf32>
    %c0_56 = arith.constant 0 : index
    %c0_57 = arith.constant 0 : index
    %79 = vector.load %arg4[%c0_56, %c0_57] : memref<8x1xf32, #tpu.memory_space<vmem>>, vector<8x1xf32>
    %80 = vector.broadcast %79 : vector<8x1xf32> to vector<8x768xf32>
    %81 = arith.addf %78, %80 : vector<8x768xf32>
    %cst_58 = arith.constant 0.000000e+00 : f32
    %82 = vector.broadcast %cst_58 : f32 to vector<8x768xf32>
    %83 = arith.cmpf oge, %81, %82 : vector<8x768xf32>
    %c0_59 = arith.constant 0 : index
    %c0_60 = arith.constant 0 : index
    %84 = vector.load %arg5[%c0_59, %c0_60] : memref<8x1xf32, #tpu.memory_space<vmem>>, vector<8x1xf32>
    %85 = vector.broadcast %84 : vector<8x1xf32> to vector<8x768xf32>
    %86 = arith.mulf %85, %81 : vector<8x768xf32>
    %87 = arith.select %83, %81, %86 : vector<8x768xi1>, vector<8x768xf32>
    %88 = arith.truncf %87 : vector<8x768xf32> to vector<8x768xbf16>
    %c0_61 = arith.constant 0 : index
    %c0_62 = arith.constant 0 : index
    %89 = vector.load %arg7[%c0_61, %c0_62] : memref<8x768xbf16, #tpu.memory_space<vmem>>, vector<8x768xbf16>
    tpu.vector_store %arg7[%c0_61, %c0_62], %88 {strides = array<i32>} : memref<8x768xbf16, #tpu.memory_space<vmem>>, vector<8x768xbf16>,
    return
  }
  func.func @transform_0(%arg0: i32) -> (i32, i32, i32) {
    %c0_i32 = arith.constant 0 : i32
    %c0_i32_0 = arith.constant 0 : i32
    %c0_i32_1 = arith.constant 0 : i32
    %c0_i32_2 = arith.constant 0 : i32
    return %c0_i32, %c0_i32_0, %c0_i32_1 : i32, i32, i32
  }
  func.func @transform_1(%arg0: i32) -> (i32, i32, i32) {
    %c0_i32 = arith.constant 0 : i32
    %c0_i32_0 = arith.constant 0 : i32
    %c0_i32_1 = arith.constant 0 : i32
    return %c0_i32, %arg0, %c0_i32_0 : i32, i32, i32
  }
  func.func @transform_2(%arg0: i32) -> (i32, i32) {
    %c0_i32 = arith.constant 0 : i32
    %c0_i32_0 = arith.constant 0 : i32
    return %arg0, %c0_i32 : i32, i32
  }
  func.func @transform_3(%arg0: i32) -> (i32, i32) {
    %c0_i32 = arith.constant 0 : i32
    %c0_i32_0 = arith.constant 0 : i32
    return %arg0, %c0_i32 : i32, i32
  }
  func.func @transform_4(%arg0: i32) -> (i32, i32) {
    %c0_i32 = arith.constant 0 : i32
    %c0_i32_0 = arith.constant 0 : i32
    return %arg0, %c0_i32 : i32, i32
  }
  func.func @transform_5(%arg0: i32) -> (i32, i32) {
    %c0_i32 = arith.constant 0 : i32
    %c0_i32_0 = arith.constant 0 : i32
    %c0_i32_1 = arith.constant 0 : i32
    return %c0_i32, %c0_i32_0 : i32, i32
  }
  func.func @transform_6(%arg0: i32) -> (i32, i32) {
    %c0_i32 = arith.constant 0 : i32
    %c0_i32_0 = arith.constant 0 : i32
    return %arg0, %c0_i32 : i32, i32
  }
}

module attributes {stable_mosaic.version = 11 : i64} {
  func.func @_conv_block_kernel(%arg0: i32, %arg1: memref<1x4x806xbf16, #tpu.memory_space<vmem>>, %arg2: memref<9x8x4xbf16, #tpu.memory_space<vmem>>, %arg3: memref<8x1xf32, #tpu.memory_space<vmem>>, %arg4: memref<8x1xf32, #tpu.memory_space<vmem>>, %arg5: memref<8x1xf32, #tpu.memory_space<vmem>>, %arg6: memref<1x768xf32, #tpu.memory_space<vmem>>, %arg7: memref<8x768xbf16, #tpu.memory_space<vmem>>) attributes {dimension_semantics = [#tpu.dimension_semantics<parallel>], iteration_bounds = array<i64: 1>, scalar_prefetch = 0 : i64, scratch_operands = 0 : i64, tpu.core_type = #tpu.core_type<tc>, window_params = [{pipeline_mode = #tpu.pipeline_mode<synchronous>, transform_indices = @transform_0, window_bounds = array<i64: 1, 4, 806>}, {transform_indices = @transform_1, window_bounds = array<i64: 9, 8, 4>}, {transform_indices = @transform_2, window_bounds = array<i64: 8, 1>}, {transform_indices = @transform_3, window_bounds = array<i64: 8, 1>}, {transform_indices = @transform_4, window_bounds = array<i64: 8, 1>}, {pipeline_mode = #tpu.pipeline_mode<synchronous>, transform_indices = @transform_5, window_bounds = array<i64: 1, 768>}, {transform_indices = @transform_6, window_bounds = array<i64: 8, 768>}]} {
    %c0 = arith.constant 0 : index
    %c0_0 = arith.constant 0 : index
    %c0_1 = arith.constant 0 : index
    %0 = vector.load %arg1[%c0, %c0_0, %c0_1] : memref<1x4x806xbf16, #tpu.memory_space<vmem>>, vector<1x4x768xbf16>
    %1 = vector.shape_cast %0 : vector<1x4x768xbf16> to vector<4x768xbf16>
    %c0_2 = arith.constant 0 : index
    %c0_3 = arith.constant 0 : index
    %c0_4 = arith.constant 0 : index
    %2 = vector.load %arg2[%c0_2, %c0_3, %c0_4] : memref<9x8x4xbf16, #tpu.memory_space<vmem>>, vector<1x8x4xbf16>
    %3 = vector.shape_cast %2 : vector<1x8x4xbf16> to vector<8x4xbf16>
    %cst = arith.constant dense<0.000000e+00> : vector<8x768xf32>
    %4 = tpu.matmul %3, %1, %cst {dimension_numbers = #tpu.dot_dimension_numbers<[1], [0], [0], [1], [0, 0, 1, 1], [], []>} : vector<8x4xbf16>, vector<4x768xbf16>, vector<8x768xf32> -> vector<8x768xf32>
    %c0_5 = arith.constant 0 : index
    %c0_6 = arith.constant 0 : index
    %c1 = arith.constant 1 : index
    %5 = vector.load %arg1[%c0_5, %c0_6, %c1] : memref<1x4x806xbf16, #tpu.memory_space<vmem>>, vector<1x4x768xbf16>
    %6 = vector.shape_cast %5 : vector<1x4x768xbf16> to vector<4x768xbf16>
    %c1_7 = arith.constant 1 : index
    %c0_8 = arith.constant 0 : index
    %c0_9 = arith.constant 0 : index
    %7 = vector.load %arg2[%c1_7, %c0_8, %c0_9] : memref<9x8x4xbf16, #tpu.memory_space<vmem>>, vector<1x8x4xbf16>
    %8 = vector.shape_cast %7 : vector<1x8x4xbf16> to vector<8x4xbf16>
    %cst_10 = arith.constant dense<0.000000e+00> : vector<8x768xf32>
    %9 = tpu.matmul %8, %6, %cst_10 {dimension_numbers = #tpu.dot_dimension_numbers<[1], [0], [0], [1], [0, 0, 1, 1], [], []>} : vector<8x4xbf16>, vector<4x768xbf16>, vector<8x768xf32> -> vector<8x768xf32>
    %10 = arith.addf %4, %9 : vector<8x768xf32>
    %c0_11 = arith.constant 0 : index
    %c0_12 = arith.constant 0 : index
    %c2 = arith.constant 2 : index
    %11 = vector.load %arg1[%c0_11, %c0_12, %c2] : memref<1x4x806xbf16, #tpu.memory_space<vmem>>, vector<1x4x768xbf16>
    %12 = vector.shape_cast %11 : vector<1x4x768xbf16> to vector<4x768xbf16>
    %c2_13 = arith.constant 2 : index
    %c0_14 = arith.constant 0 : index
    %c0_15 = arith.constant 0 : index
    %13 = vector.load %arg2[%c2_13, %c0_14, %c0_15] : memref<9x8x4xbf16, #tpu.memory_space<vmem>>, vector<1x8x4xbf16>
    %14 = vector.shape_cast %13 : vector<1x8x4xbf16> to vector<8x4xbf16>
    %cst_16 = arith.constant dense<0.000000e+00> : vector<8x768xf32>
    %15 = tpu.matmul %14, %12, %cst_16 {dimension_numbers = #tpu.dot_dimension_numbers<[1], [0], [0], [1], [0, 0, 1, 1], [], []>} : vector<8x4xbf16>, vector<4x768xbf16>, vector<8x768xf32> -> vector<8x768xf32>
    %16 = arith.addf %10, %15 : vector<8x768xf32>
    %c0_17 = arith.constant 0 : index
    %c0_18 = arith.constant 0 : index
    %c18 = arith.constant 18 : index
    %17 = vector.load %arg1[%c0_17, %c0_18, %c18] : memref<1x4x806xbf16, #tpu.memory_space<vmem>>, vector<1x4x768xbf16>
    %18 = vector.shape_cast %17 : vector<1x4x768xbf16> to vector<4x768xbf16>
    %c3 = arith.constant 3 : index
    %c0_19 = arith.constant 0 : index
    %c0_20 = arith.constant 0 : index
    %19 = vector.load %arg2[%c3, %c0_19, %c0_20] : memref<9x8x4xbf16, #tpu.memory_space<vmem>>, vector<1x8x4xbf16>
    %20 = vector.shape_cast %19 : vector<1x8x4xbf16> to vector<8x4xbf16>
    %cst_21 = arith.constant dense<0.000000e+00> : vector<8x768xf32>
    %21 = tpu.matmul %20, %18, %cst_21 {dimension_numbers = #tpu.dot_dimension_numbers<[1], [0], [0], [1], [0, 0, 1, 1], [], []>} : vector<8x4xbf16>, vector<4x768xbf16>, vector<8x768xf32> -> vector<8x768xf32>
    %22 = arith.addf %16, %21 : vector<8x768xf32>
    %c0_22 = arith.constant 0 : index
    %c0_23 = arith.constant 0 : index
    %c19 = arith.constant 19 : index
    %23 = vector.load %arg1[%c0_22, %c0_23, %c19] : memref<1x4x806xbf16, #tpu.memory_space<vmem>>, vector<1x4x768xbf16>
    %24 = vector.shape_cast %23 : vector<1x4x768xbf16> to vector<4x768xbf16>
    %c4 = arith.constant 4 : index
    %c0_24 = arith.constant 0 : index
    %c0_25 = arith.constant 0 : index
    %25 = vector.load %arg2[%c4, %c0_24, %c0_25] : memref<9x8x4xbf16, #tpu.memory_space<vmem>>, vector<1x8x4xbf16>
    %26 = vector.shape_cast %25 : vector<1x8x4xbf16> to vector<8x4xbf16>
    %cst_26 = arith.constant dense<0.000000e+00> : vector<8x768xf32>
    %27 = tpu.matmul %26, %24, %cst_26 {dimension_numbers = #tpu.dot_dimension_numbers<[1], [0], [0], [1], [0, 0, 1, 1], [], []>} : vector<8x4xbf16>, vector<4x768xbf16>, vector<8x768xf32> -> vector<8x768xf32>
    %28 = arith.addf %22, %27 : vector<8x768xf32>
    %c0_27 = arith.constant 0 : index
    %c0_28 = arith.constant 0 : index
    %c20 = arith.constant 20 : index
    %29 = vector.load %arg1[%c0_27, %c0_28, %c20] : memref<1x4x806xbf16, #tpu.memory_space<vmem>>, vector<1x4x768xbf16>
    %30 = vector.shape_cast %29 : vector<1x4x768xbf16> to vector<4x768xbf16>
    %c5 = arith.constant 5 : index
    %c0_29 = arith.constant 0 : index
    %c0_30 = arith.constant 0 : index
    %31 = vector.load %arg2[%c5, %c0_29, %c0_30] : memref<9x8x4xbf16, #tpu.memory_space<vmem>>, vector<1x8x4xbf16>
    %32 = vector.shape_cast %31 : vector<1x8x4xbf16> to vector<8x4xbf16>
    %cst_31 = arith.constant dense<0.000000e+00> : vector<8x768xf32>
    %33 = tpu.matmul %32, %30, %cst_31 {dimension_numbers = #tpu.dot_dimension_numbers<[1], [0], [0], [1], [0, 0, 1, 1], [], []>} : vector<8x4xbf16>, vector<4x768xbf16>, vector<8x768xf32> -> vector<8x768xf32>
    %34 = arith.addf %28, %33 : vector<8x768xf32>
    %c0_32 = arith.constant 0 : index
    %c0_33 = arith.constant 0 : index
    %c36 = arith.constant 36 : index
    %35 = vector.load %arg1[%c0_32, %c0_33, %c36] : memref<1x4x806xbf16, #tpu.memory_space<vmem>>, vector<1x4x768xbf16>
    %36 = vector.shape_cast %35 : vector<1x4x768xbf16> to vector<4x768xbf16>
    %c6 = arith.constant 6 : index
    %c0_34 = arith.constant 0 : index
    %c0_35 = arith.constant 0 : index
    %37 = vector.load %arg2[%c6, %c0_34, %c0_35] : memref<9x8x4xbf16, #tpu.memory_space<vmem>>, vector<1x8x4xbf16>
    %38 = vector.shape_cast %37 : vector<1x8x4xbf16> to vector<8x4xbf16>
    %cst_36 = arith.constant dense<0.000000e+00> : vector<8x768xf32>
    %39 = tpu.matmul %38, %36, %cst_36 {dimension_numbers = #tpu.dot_dimension_numbers<[1], [0], [0], [1], [0, 0, 1, 1], [], []>} : vector<8x4xbf16>, vector<4x768xbf16>, vector<8x768xf32> -> vector<8x768xf32>
    %40 = arith.addf %34, %39 : vector<8x768xf32>
    %c0_37 = arith.constant 0 : index
    %c0_38 = arith.constant 0 : index
    %c37 = arith.constant 37 : index
    %41 = vector.load %arg1[%c0_37, %c0_38, %c37] : memref<1x4x806xbf16, #tpu.memory_space<vmem>>, vector<1x4x768xbf16>
    %42 = vector.shape_cast %41 : vector<1x4x768xbf16> to vector<4x768xbf16>
    %c7 = arith.constant 7 : index
    %c0_39 = arith.constant 0 : index
    %c0_40 = arith.constant 0 : index
    %43 = vector.load %arg2[%c7, %c0_39, %c0_40] : memref<9x8x4xbf16, #tpu.memory_space<vmem>>, vector<1x8x4xbf16>
    %44 = vector.shape_cast %43 : vector<1x8x4xbf16> to vector<8x4xbf16>
    %cst_41 = arith.constant dense<0.000000e+00> : vector<8x768xf32>
    %45 = tpu.matmul %44, %42, %cst_41 {dimension_numbers = #tpu.dot_dimension_numbers<[1], [0], [0], [1], [0, 0, 1, 1], [], []>} : vector<8x4xbf16>, vector<4x768xbf16>, vector<8x768xf32> -> vector<8x768xf32>
    %46 = arith.addf %40, %45 : vector<8x768xf32>
    %c0_42 = arith.constant 0 : index
    %c0_43 = arith.constant 0 : index
    %c38 = arith.constant 38 : index
    %47 = vector.load %arg1[%c0_42, %c0_43, %c38] : memref<1x4x806xbf16, #tpu.memory_space<vmem>>, vector<1x4x768xbf16>
    %48 = vector.shape_cast %47 : vector<1x4x768xbf16> to vector<4x768xbf16>
    %c8 = arith.constant 8 : index
    %c0_44 = arith.constant 0 : index
    %c0_45 = arith.constant 0 : index
    %49 = vector.load %arg2[%c8, %c0_44, %c0_45] : memref<9x8x4xbf16, #tpu.memory_space<vmem>>, vector<1x8x4xbf16>
    %50 = vector.shape_cast %49 : vector<1x8x4xbf16> to vector<8x4xbf16>
    %cst_46 = arith.constant dense<0.000000e+00> : vector<8x768xf32>
    %51 = tpu.matmul %50, %48, %cst_46 {dimension_numbers = #tpu.dot_dimension_numbers<[1], [0], [0], [1], [0, 0, 1, 1], [], []>} : vector<8x4xbf16>, vector<4x768xbf16>, vector<8x768xf32> -> vector<8x768xf32>
    %52 = arith.addf %46, %51 : vector<8x768xf32>
    %c0_47 = arith.constant 0 : index
    %c0_48 = arith.constant 0 : index
    %53 = vector.load %arg6[%c0_47, %c0_48] : memref<1x768xf32, #tpu.memory_space<vmem>>, vector<1x768xf32>
    %54 = vector.broadcast %53 : vector<1x768xf32> to vector<8x768xf32>
    %55 = arith.mulf %52, %54 : vector<8x768xf32>
    %cst_49 = arith.constant dense<0.000000e+00> : vector<8xf32>
    %56 = vector.multi_reduction <add>, %55, %cst_49 [1] : vector<8x768xf32> to vector<8xf32>
    %57 = vector.shape_cast %56 : vector<8xf32> to vector<8x1xf32>
    %cst_50 = arith.constant 0.001953125 : f32
    %58 = vector.broadcast %cst_50 : f32 to vector<8x1xf32>
    %59 = arith.mulf %57, %58 : vector<8x1xf32>
    %60 = vector.broadcast %59 : vector<8x1xf32> to vector<8x768xf32>
    %61 = arith.subf %52, %60 : vector<8x768xf32>
    %62 = vector.broadcast %53 : vector<1x768xf32> to vector<8x768xf32>
    %63 = arith.mulf %61, %62 : vector<8x768xf32>
    %64 = arith.mulf %63, %63 : vector<8x768xf32>
    %cst_51 = arith.constant dense<0.000000e+00> : vector<8xf32>
    %65 = vector.multi_reduction <add>, %64, %cst_51 [1] : vector<8x768xf32> to vector<8xf32>
    %66 = vector.shape_cast %65 : vector<8xf32> to vector<8x1xf32>
    %cst_52 = arith.constant 0.001953125 : f32
    %67 = vector.broadcast %cst_52 : f32 to vector<8x1xf32>
    %68 = arith.mulf %66, %67 : vector<8x1xf32>
    %69 = vector.broadcast %59 : vector<8x1xf32> to vector<8x768xf32>
    %70 = arith.subf %52, %69 : vector<8x768xf32>
    %cst_53 = arith.constant 9.99999974E-6 : f32
    %71 = vector.broadcast %cst_53 : f32 to vector<8x1xf32>
    %72 = arith.addf %68, %71 : vector<8x1xf32>
    %73 = math.rsqrt %72 : vector<8x1xf32>
    %74 = vector.broadcast %73 : vector<8x1xf32> to vector<8x768xf32>
    %75 = arith.mulf %70, %74 : vector<8x768xf32>
    %c0_54 = arith.constant 0 : index
    %c0_55 = arith.constant 0 : index
    %76 = vector.load %arg3[%c0_54, %c0_55] : memref<8x1xf32, #tpu.memory_space<vmem>>, vector<8x1xf32>
    %77 = vector.broadcast %76 : vector<8x1xf32> to vector<8x768xf32>
    %78 = arith.mulf %75, %77 : vector<8x768xf32>
    %c0_56 = arith.constant 0 : index
    %c0_57 = arith.constant 0 : index
    %79 = vector.load %arg4[%c0_56, %c0_57] : memref<8x1xf32, #tpu.memory_space<vmem>>, vector<8x1xf32>
    %80 = vector.broadcast %79 : vector<8x1xf32> to vector<8x768xf32>
    %81 = arith.addf %78, %80 : vector<8x768xf32>
    %cst_58 = arith.constant 0.000000e+00 : f32
    %82 = vector.broadcast %cst_58 : f32 to vector<8x768xf32>
    %83 = arith.cmpf oge, %81, %82 : vector<8x768xf32>
    %c0_59 = arith.constant 0 : index
    %c0_60 = arith.constant 0 : index
    %84 = vector.load %arg5[%c0_59, %c0_60] : memref<8x1xf32, #tpu.memory_space<vmem>>, vector<8x1xf32>
    %85 = vector.broadcast %84 : vector<8x1xf32> to vector<8x768xf32>
    %86 = arith.mulf %85, %81 : vector<8x768xf32>
    %87 = arith.select %83, %81, %86 : vector<8x768xi1>, vector<8x768xf32>
    %88 = arith.truncf %87 : vector<8x768xf32> to vector<8x768xbf16>
    %c0_61 = arith.constant 0 : index
    %c0_62 = arith.constant 0 : index
    %89 = vector.load %arg7[%c0_61, %c0_62] : memref<8x768xbf16, #tpu.memory_space<vmem>>, vector<8x768xbf16>
    tpu.vector_store %arg7[%c0_61, %c0_62], %88 {strides = array<i32>} : memref<8x768xbf16, #tpu.memory_space<vmem>>, vector<8x768xbf16>,
    return
  }
  func.func @transform_0(%arg0: i32) -> (i32, i32, i32) {
    %c0_i32 = arith.constant 0 : i32
    %c0_i32_0 = arith.constant 0 : i32
    %c0_i32_1 = arith.constant 0 : i32
    %c0_i32_2 = arith.constant 0 : i32
    return %c0_i32, %c0_i32_0, %c0_i32_1 : i32, i32, i32
  }
  func.func @transform_1(%arg0: i32) -> (i32, i32, i32) {
    %c0_i32 = arith.constant 0 : i32
    %c0_i32_0 = arith.constant 0 : i32
    %c0_i32_1 = arith.constant 0 : i32
    return %c0_i32, %arg0, %c0_i32_0 : i32, i32, i32
  }
  func.func @transform_2(%arg0: i32) -> (i32, i32) {
    %c0_i32 = arith.constant 0 : i32
    %c0_i32_0 = arith.constant 0 : i32
    return %arg0, %c0_i32 : i32, i32
  }
  func.func @transform_3(%arg0: i32) -> (i32, i32) {
    %c0_i32 = arith.constant 0 : i32
    %c0_i32_0 = arith.constant 0 : i32
    return %arg0, %c0_i32 : i32, i32
  }
  func.func @transform_4(%arg0: i32) -> (i32, i32) {
    %c0_i32 = arith.constant 0 : i32
    %c0_i32_0 = arith.constant 0 : i32
    return %arg0, %c0_i32 : i32, i32
  }
  func.func @transform_5(%arg0: i32) -> (i32, i32) {
    %c0_i32 = arith.constant 0 : i32
    %c0_i32_0 = arith.constant 0 : i32
    %c0_i32_1 = arith.constant 0 : i32
    return %c0_i32, %c0_i32_0 : i32, i32
  }
  func.func @transform_6(%arg0: i32) -> (i32, i32) {
    %c0_i32 = arith.constant 0 : i32
    %c0_i32_0 = arith.constant 0 : i32
    return %arg0, %c0_i32 : i32, i32
  }
}

module attributes {stable_mosaic.version = 11 : i64} {
  func.func @_conv_block_kernel(%arg0: i32, %arg1: memref<1x8x806xbf16, #tpu.memory_space<vmem>>, %arg2: memref<9x8x8xbf16, #tpu.memory_space<vmem>>, %arg3: memref<8x1xf32, #tpu.memory_space<vmem>>, %arg4: memref<8x1xf32, #tpu.memory_space<vmem>>, %arg5: memref<8x1xf32, #tpu.memory_space<vmem>>, %arg6: memref<1x768xf32, #tpu.memory_space<vmem>>, %arg7: memref<8x768xbf16, #tpu.memory_space<vmem>>) attributes {dimension_semantics = [#tpu.dimension_semantics<parallel>], iteration_bounds = array<i64: 1>, scalar_prefetch = 0 : i64, scratch_operands = 0 : i64, tpu.core_type = #tpu.core_type<tc>, window_params = [{pipeline_mode = #tpu.pipeline_mode<synchronous>, transform_indices = @transform_0, window_bounds = array<i64: 1, 8, 806>}, {transform_indices = @transform_1, window_bounds = array<i64: 9, 8, 8>}, {transform_indices = @transform_2, window_bounds = array<i64: 8, 1>}, {transform_indices = @transform_3, window_bounds = array<i64: 8, 1>}, {transform_indices = @transform_4, window_bounds = array<i64: 8, 1>}, {pipeline_mode = #tpu.pipeline_mode<synchronous>, transform_indices = @transform_5, window_bounds = array<i64: 1, 768>}, {transform_indices = @transform_6, window_bounds = array<i64: 8, 768>}]} {
    %c0 = arith.constant 0 : index
    %c0_0 = arith.constant 0 : index
    %c0_1 = arith.constant 0 : index
    %0 = vector.load %arg1[%c0, %c0_0, %c0_1] : memref<1x8x806xbf16, #tpu.memory_space<vmem>>, vector<1x8x768xbf16>
    %1 = vector.shape_cast %0 : vector<1x8x768xbf16> to vector<8x768xbf16>
    %c0_2 = arith.constant 0 : index
    %c0_3 = arith.constant 0 : index
    %c0_4 = arith.constant 0 : index
    %2 = vector.load %arg2[%c0_2, %c0_3, %c0_4] : memref<9x8x8xbf16, #tpu.memory_space<vmem>>, vector<1x8x8xbf16>
    %3 = vector.shape_cast %2 : vector<1x8x8xbf16> to vector<8x8xbf16>
    %cst = arith.constant dense<0.000000e+00> : vector<8x768xf32>
    %4 = tpu.matmul %3, %1, %cst {dimension_numbers = #tpu.dot_dimension_numbers<[1], [0], [0], [1], [0, 0, 1, 1], [], []>} : vector<8x8xbf16>, vector<8x768xbf16>, vector<8x768xf32> -> vector<8x768xf32>
    %c0_5 = arith.constant 0 : index
    %c0_6 = arith.constant 0 : index
    %c1 = arith.constant 1 : index
    %5 = vector.load %arg1[%c0_5, %c0_6, %c1] : memref<1x8x806xbf16, #tpu.memory_space<vmem>>, vector<1x8x768xbf16>
    %6 = vector.shape_cast %5 : vector<1x8x768xbf16> to vector<8x768xbf16>
    %c1_7 = arith.constant 1 : index
    %c0_8 = arith.constant 0 : index
    %c0_9 = arith.constant 0 : index
    %7 = vector.load %arg2[%c1_7, %c0_8, %c0_9] : memref<9x8x8xbf16, #tpu.memory_space<vmem>>, vector<1x8x8xbf16>
    %8 = vector.shape_cast %7 : vector<1x8x8xbf16> to vector<8x8xbf16>
    %cst_10 = arith.constant dense<0.000000e+00> : vector<8x768xf32>
    %9 = tpu.matmul %8, %6, %cst_10 {dimension_numbers = #tpu.dot_dimension_numbers<[1], [0], [0], [1], [0, 0, 1, 1], [], []>} : vector<8x8xbf16>, vector<8x768xbf16>, vector<8x768xf32> -> vector<8x768xf32>
    %10 = arith.addf %4, %9 : vector<8x768xf32>
    %c0_11 = arith.constant 0 : index
    %c0_12 = arith.constant 0 : index
    %c2 = arith.constant 2 : index
    %11 = vector.load %arg1[%c0_11, %c0_12, %c2] : memref<1x8x806xbf16, #tpu.memory_space<vmem>>, vector<1x8x768xbf16>
    %12 = vector.shape_cast %11 : vector<1x8x768xbf16> to vector<8x768xbf16>
    %c2_13 = arith.constant 2 : index
    %c0_14 = arith.constant 0 : index
    %c0_15 = arith.constant 0 : index
    %13 = vector.load %arg2[%c2_13, %c0_14, %c0_15] : memref<9x8x8xbf16, #tpu.memory_space<vmem>>, vector<1x8x8xbf16>
    %14 = vector.shape_cast %13 : vector<1x8x8xbf16> to vector<8x8xbf16>
    %cst_16 = arith.constant dense<0.000000e+00> : vector<8x768xf32>
    %15 = tpu.matmul %14, %12, %cst_16 {dimension_numbers = #tpu.dot_dimension_numbers<[1], [0], [0], [1], [0, 0, 1, 1], [], []>} : vector<8x8xbf16>, vector<8x768xbf16>, vector<8x768xf32> -> vector<8x768xf32>
    %16 = arith.addf %10, %15 : vector<8x768xf32>
    %c0_17 = arith.constant 0 : index
    %c0_18 = arith.constant 0 : index
    %c18 = arith.constant 18 : index
    %17 = vector.load %arg1[%c0_17, %c0_18, %c18] : memref<1x8x806xbf16, #tpu.memory_space<vmem>>, vector<1x8x768xbf16>
    %18 = vector.shape_cast %17 : vector<1x8x768xbf16> to vector<8x768xbf16>
    %c3 = arith.constant 3 : index
    %c0_19 = arith.constant 0 : index
    %c0_20 = arith.constant 0 : index
    %19 = vector.load %arg2[%c3, %c0_19, %c0_20] : memref<9x8x8xbf16, #tpu.memory_space<vmem>>, vector<1x8x8xbf16>
    %20 = vector.shape_cast %19 : vector<1x8x8xbf16> to vector<8x8xbf16>
    %cst_21 = arith.constant dense<0.000000e+00> : vector<8x768xf32>
    %21 = tpu.matmul %20, %18, %cst_21 {dimension_numbers = #tpu.dot_dimension_numbers<[1], [0], [0], [1], [0, 0, 1, 1], [], []>} : vector<8x8xbf16>, vector<8x768xbf16>, vector<8x768xf32> -> vector<8x768xf32>
    %22 = arith.addf %16, %21 : vector<8x768xf32>
    %c0_22 = arith.constant 0 : index
    %c0_23 = arith.constant 0 : index
    %c19 = arith.constant 19 : index
    %23 = vector.load %arg1[%c0_22, %c0_23, %c19] : memref<1x8x806xbf16, #tpu.memory_space<vmem>>, vector<1x8x768xbf16>
    %24 = vector.shape_cast %23 : vector<1x8x768xbf16> to vector<8x768xbf16>
    %c4 = arith.constant 4 : index
    %c0_24 = arith.constant 0 : index
    %c0_25 = arith.constant 0 : index
    %25 = vector.load %arg2[%c4, %c0_24, %c0_25] : memref<9x8x8xbf16, #tpu.memory_space<vmem>>, vector<1x8x8xbf16>
    %26 = vector.shape_cast %25 : vector<1x8x8xbf16> to vector<8x8xbf16>
    %cst_26 = arith.constant dense<0.000000e+00> : vector<8x768xf32>
    %27 = tpu.matmul %26, %24, %cst_26 {dimension_numbers = #tpu.dot_dimension_numbers<[1], [0], [0], [1], [0, 0, 1, 1], [], []>} : vector<8x8xbf16>, vector<8x768xbf16>, vector<8x768xf32> -> vector<8x768xf32>
    %28 = arith.addf %22, %27 : vector<8x768xf32>
    %c0_27 = arith.constant 0 : index
    %c0_28 = arith.constant 0 : index
    %c20 = arith.constant 20 : index
    %29 = vector.load %arg1[%c0_27, %c0_28, %c20] : memref<1x8x806xbf16, #tpu.memory_space<vmem>>, vector<1x8x768xbf16>
    %30 = vector.shape_cast %29 : vector<1x8x768xbf16> to vector<8x768xbf16>
    %c5 = arith.constant 5 : index
    %c0_29 = arith.constant 0 : index
    %c0_30 = arith.constant 0 : index
    %31 = vector.load %arg2[%c5, %c0_29, %c0_30] : memref<9x8x8xbf16, #tpu.memory_space<vmem>>, vector<1x8x8xbf16>
    %32 = vector.shape_cast %31 : vector<1x8x8xbf16> to vector<8x8xbf16>
    %cst_31 = arith.constant dense<0.000000e+00> : vector<8x768xf32>
    %33 = tpu.matmul %32, %30, %cst_31 {dimension_numbers = #tpu.dot_dimension_numbers<[1], [0], [0], [1], [0, 0, 1, 1], [], []>} : vector<8x8xbf16>, vector<8x768xbf16>, vector<8x768xf32> -> vector<8x768xf32>
    %34 = arith.addf %28, %33 : vector<8x768xf32>
    %c0_32 = arith.constant 0 : index
    %c0_33 = arith.constant 0 : index
    %c36 = arith.constant 36 : index
    %35 = vector.load %arg1[%c0_32, %c0_33, %c36] : memref<1x8x806xbf16, #tpu.memory_space<vmem>>, vector<1x8x768xbf16>
    %36 = vector.shape_cast %35 : vector<1x8x768xbf16> to vector<8x768xbf16>
    %c6 = arith.constant 6 : index
    %c0_34 = arith.constant 0 : index
    %c0_35 = arith.constant 0 : index
    %37 = vector.load %arg2[%c6, %c0_34, %c0_35] : memref<9x8x8xbf16, #tpu.memory_space<vmem>>, vector<1x8x8xbf16>
    %38 = vector.shape_cast %37 : vector<1x8x8xbf16> to vector<8x8xbf16>
    %cst_36 = arith.constant dense<0.000000e+00> : vector<8x768xf32>
    %39 = tpu.matmul %38, %36, %cst_36 {dimension_numbers = #tpu.dot_dimension_numbers<[1], [0], [0], [1], [0, 0, 1, 1], [], []>} : vector<8x8xbf16>, vector<8x768xbf16>, vector<8x768xf32> -> vector<8x768xf32>
    %40 = arith.addf %34, %39 : vector<8x768xf32>
    %c0_37 = arith.constant 0 : index
    %c0_38 = arith.constant 0 : index
    %c37 = arith.constant 37 : index
    %41 = vector.load %arg1[%c0_37, %c0_38, %c37] : memref<1x8x806xbf16, #tpu.memory_space<vmem>>, vector<1x8x768xbf16>
    %42 = vector.shape_cast %41 : vector<1x8x768xbf16> to vector<8x768xbf16>
    %c7 = arith.constant 7 : index
    %c0_39 = arith.constant 0 : index
    %c0_40 = arith.constant 0 : index
    %43 = vector.load %arg2[%c7, %c0_39, %c0_40] : memref<9x8x8xbf16, #tpu.memory_space<vmem>>, vector<1x8x8xbf16>
    %44 = vector.shape_cast %43 : vector<1x8x8xbf16> to vector<8x8xbf16>
    %cst_41 = arith.constant dense<0.000000e+00> : vector<8x768xf32>
    %45 = tpu.matmul %44, %42, %cst_41 {dimension_numbers = #tpu.dot_dimension_numbers<[1], [0], [0], [1], [0, 0, 1, 1], [], []>} : vector<8x8xbf16>, vector<8x768xbf16>, vector<8x768xf32> -> vector<8x768xf32>
    %46 = arith.addf %40, %45 : vector<8x768xf32>
    %c0_42 = arith.constant 0 : index
    %c0_43 = arith.constant 0 : index
    %c38 = arith.constant 38 : index
    %47 = vector.load %arg1[%c0_42, %c0_43, %c38] : memref<1x8x806xbf16, #tpu.memory_space<vmem>>, vector<1x8x768xbf16>
    %48 = vector.shape_cast %47 : vector<1x8x768xbf16> to vector<8x768xbf16>
    %c8 = arith.constant 8 : index
    %c0_44 = arith.constant 0 : index
    %c0_45 = arith.constant 0 : index
    %49 = vector.load %arg2[%c8, %c0_44, %c0_45] : memref<9x8x8xbf16, #tpu.memory_space<vmem>>, vector<1x8x8xbf16>
    %50 = vector.shape_cast %49 : vector<1x8x8xbf16> to vector<8x8xbf16>
    %cst_46 = arith.constant dense<0.000000e+00> : vector<8x768xf32>
    %51 = tpu.matmul %50, %48, %cst_46 {dimension_numbers = #tpu.dot_dimension_numbers<[1], [0], [0], [1], [0, 0, 1, 1], [], []>} : vector<8x8xbf16>, vector<8x768xbf16>, vector<8x768xf32> -> vector<8x768xf32>
    %52 = arith.addf %46, %51 : vector<8x768xf32>
    %c0_47 = arith.constant 0 : index
    %c0_48 = arith.constant 0 : index
    %53 = vector.load %arg4[%c0_47, %c0_48] : memref<8x1xf32, #tpu.memory_space<vmem>>, vector<8x1xf32>
    %54 = vector.broadcast %53 : vector<8x1xf32> to vector<8x768xf32>
    %55 = arith.addf %52, %54 : vector<8x768xf32>
    %56 = arith.negf %55 : vector<8x768xf32>
    %57 = math.exp %56 : vector<8x768xf32>
    %cst_49 = arith.constant 1.000000e+00 : f32
    %58 = vector.broadcast %cst_49 : f32 to vector<8x768xf32>
    %59 = arith.addf %58, %57 : vector<8x768xf32>
    %60 = arith.divf %58, %59 : vector<8x768xf32>
    %61 = arith.truncf %60 : vector<8x768xf32> to vector<8x768xbf16>
    %c0_50 = arith.constant 0 : index
    %c0_51 = arith.constant 0 : index
    %62 = vector.load %arg7[%c0_50, %c0_51] : memref<8x768xbf16, #tpu.memory_space<vmem>>, vector<8x768xbf16>
    tpu.vector_store %arg7[%c0_50, %c0_51], %61 {strides = array<i32>} : memref<8x768xbf16, #tpu.memory_space<vmem>>, vector<8x768xbf16>,
    return
  }
  func.func @transform_0(%arg0: i32) -> (i32, i32, i32) {
    %c0_i32 = arith.constant 0 : i32
    %c0_i32_0 = arith.constant 0 : i32
    %c0_i32_1 = arith.constant 0 : i32
    %c0_i32_2 = arith.constant 0 : i32
    return %c0_i32, %c0_i32_0, %c0_i32_1 : i32, i32, i32
  }
  func.func @transform_1(%arg0: i32) -> (i32, i32, i32) {
    %c0_i32 = arith.constant 0 : i32
    %c0_i32_0 = arith.constant 0 : i32
    %c0_i32_1 = arith.constant 0 : i32
    return %c0_i32, %arg0, %c0_i32_0 : i32, i32, i32
  }
  func.func @transform_2(%arg0: i32) -> (i32, i32) {
    %c0_i32 = arith.constant 0 : i32
    %c0_i32_0 = arith.constant 0 : i32
    return %arg0, %c0_i32 : i32, i32
  }
  func.func @transform_3(%arg0: i32) -> (i32, i32) {
    %c0_i32 = arith.constant 0 : i32
    %c0_i32_0 = arith.constant 0 : i32
    return %arg0, %c0_i32 : i32, i32
  }
  func.func @transform_4(%arg0: i32) -> (i32, i32) {
    %c0_i32 = arith.constant 0 : i32
    %c0_i32_0 = arith.constant 0 : i32
    return %arg0, %c0_i32 : i32, i32
  }
  func.func @transform_5(%arg0: i32) -> (i32, i32) {
    %c0_i32 = arith.constant 0 : i32
    %c0_i32_0 = arith.constant 0 : i32
    %c0_i32_1 = arith.constant 0 : i32
    return %c0_i32, %c0_i32_0 : i32, i32
  }
  func.func @transform_6(%arg0: i32) -> (i32, i32) {
    %c0_i32 = arith.constant 0 : i32
    %c0_i32_0 = arith.constant 0 : i32
    return %arg0, %c0_i32 : i32, i32
  }
}

</mosaic_0001>

<bundles_post_ra>
// kernel: _lambda_.9
= control target key start
LH: loop header
LB: loop body
LE: loop exit
PB: predicated region body
PF: predicated region fallthrough
CT: control target
= control target key end

     0   :  { %v158_v0 = vlaneseq  ;;  %v837_v1 = vmov 1983009808   ;;  %v838_v3 = vmov 0   ;;  %vm43_vm0 = vcmask 1041408   ;;  %s839_s9 = smov 127   ;;  %s840_s14 = smov 119   ;;  %s1015_s0 = inlined_call_operand.vmem [shape: bf16[4,4,266], index: 0, kind: input, shape index: {}]   ;;  %s1016_s1 = inlined_call_operand.vmem [shape: bf16[9,8,4], index: 1, kind: input, shape index: {}]   ;;  %s1017_s5 = inlined_call_operand.vmem [shape: f32[1,256], index: 5, kind: input, shape index: {}]   ;;  %s1018_s3 = inlined_call_operand.vmem [shape: f32[8,1], index: 3, kind: input, shape index: {}]   ;;  %s1019_s4 = inlined_call_operand.vmem [shape: f32[8,1], index: 4, kind: input, shape index: {}]   ;;  %s1020_s2 = inlined_call_operand.vmem [shape: f32[8,1], index: 2, kind: input, shape index: {}]   ;;  %s1021_s6 = inlined_call_operand.vmem [shape: bf16[8,256], index: 6, kind: output, shape index: {}]  }
   0x1   :  { %v156_v2 = vunpack.c.l.s4 %v837_v1  ;;  %82 = vmatprep.mubr.bf16.mxu1 %v838_v3  ;;  %350 = vmatprep.mubr.bf16.mxu0 %v838_v3  ;;  %v777_v5 = vld [vmem:[%s1015_s0 + $0xc] sm:$0x3f]  ;;  %v758_v8 = vld.sshfl [vmem:[%s1015_s0 + $0x6] sm:$0x33 pattern:$0x76325410] }
   0x2   :  { %v879_v4 = vshrl.u32 %v158_v0, 7  ;;  %829 = vset.pattern.permute.xlu1 %v838_v3  ;;  %828 = vset.pattern.permute.xlu0 %v838_v3  ;;  %v365_v7 = vcombine.high %v777_v5, %v777_v5  ;;  %v38_v9 = vcombine.high %v758_v8, %v758_v8  ;;  %v774_v10 = vld.sshfl [vmem:[%s1015_s0 + $0x12] sm:$0x33 pattern:$0x76325410]  ;;  %v45_v13 = vsel %vm43_vm0, %v758_v8, 0 }
   0x3   :  { %v157_v6 = vunpack.c.0.s8 %v156_v2  ;;  %v308_v12 = vcombine.high %v774_v10, %v774_v10  ;;  %v441_v14 = vld [vmem:[%s1015_s0] sm:$0x3f]  ;;  %v313_v17 = vsel %vm43_vm0, %v774_v10, 0  ;;  %vm39_vm1 = vcmask 31744   ;;  %v773_v24 = vld [vmem:[%s1016_s1 + $0x10] sm:$0xf] }
   0x4   :  { %759 = vmatprep.subr.msk.bf16.mxu1 %vm43_vm0, %v38_v9  ;;  %v761_v18 = vld.sshfl [vmem:[%s1015_s0] sm:$0x33 pattern:$0x76325410]  ;;  %v757_v19 = vld [vmem:[%s1016_s1 + $0x4] sm:$0xf]  ;;  %v445_v22 = vcombine.high %v441_v14, %v441_v14 }
   0x5   :  { %v893_v11 = vsub.s32 %v157_v6, %v879_v4  ;;  %775 = vmatprep.subr.msk.bf16.mxu0 %vm43_vm0, %v308_v12  ;;  %51 = vmatpush1.bf16.msra.mxu1 %v45_v13  ;;  %v99_v23 = vcombine.high %v761_v18, %v761_v18  ;;  %v104_v25 = vsel %vm43_vm0, %v761_v18, 0  ;;  %v150_v26 = vld [vmem:[%s1015_s0] sm:$0x3f]  ;;  %v784_v32 = vld [vmem:[%s1015_s0 + $0x6] sm:$0x3f]  ;;  %s841_s21 = smov 118  }
   0x6   :  { %319 = vmatpush1.bf16.msra.mxu0 %v313_v17  ;;  %v154_v31 = vcombine.high %v150_v26, %v150_v26  ;;  %v25_v33 = vld [vmem:[%s1016_s1] sm:$0xf]  ;;  %v526_v36 = vcombine.high %v784_v32, %v784_v32  ;;  %vm176_vm2 = vcmask 1039360   ;;  %vm467_vm3 = vcmask 973824   ;;  %v778_v51 = vld [vmem:[%s1016_s1 + $0x14] sm:$0xf] }
   0x7   :  { %v372_v15 = vrot.slane %v777_v5, %v893_v11  ;;  %v379_v16 = vrot.slane %v365_v7, %v893_v11  ;;  %v452_v21 = vrot.slane %v441_v14, %v893_v11  ;;  %762 = vmatprep.subr.msk.bf16.mxu1 %vm43_vm0, %v99_v23  ;;  %v459_v28 = vrot.slane %v445_v22, %v893_v11  ;;  %v602_v37 = vld [vmem:[%s1015_s0] sm:$0x3f]  ;;  %v769_v60 = vld.sshfl [vmem:[%s1015_s0 + $0xc] sm:$0x33 pattern:$0x76325410] }
   0x8   :  { %760 = vmatmul.mubr.msk.bf16.vlgmr.msra.gmra.mrb[0].mxu1 %vm39_vm1, %v757_v19  ;;  %v161_v29 = vrot.slane %v150_v26, %v893_v11  ;;  %v168_v34 = vrot.slane %v154_v31, %v893_v11  ;;  %v533_v35 = vrot.slane %v784_v32, %v893_v11  ;;  %v540_v38 = vrot.slane %v526_v36, %v893_v11  ;;  %v764_v2 = vld [vmem:[%s1016_s1 + $0x8] sm:$0xf]  ;;  %v781_v5 = vld [vmem:[%s1016_s1 + $0x18] sm:$0xf]  ;;  %v768_v17 = vld [vmem:[%s1016_s1 + $0xc] sm:$0xf] }
   0x9   :  { %381 = vrot.lane.b32.xlu0 %v372_v15, %s839_s9  ;;  %v380_v20 = vcombine.high %v372_v15, %v372_v15  ;;  %385 = vrot.lane.b32.xlu1 %v379_v16, %s839_s9  ;;  %v460_v27 = vcombine.high %v452_v21, %v452_v21  ;;  %v613_v40 = vrot.slane %v602_v37, %v893_v11  ;;  %v248_v8 = vsel %vm43_vm0, %v769_v60, 0  ;;  %v785_v18 = vld [vmem:[%s1016_s1 + $0x1c] sm:$0xf]  ;;  %v683_v26 = vld [vmem:[%s1017_s5] sm:$0x3] }
   0xa   :  { %141 = vmatprep.mubr.bf16.mxu1 %v838_v3  ;;  %776 = vmatmul.mubr.msk.bf16.vlgmr.msra.gmra.mrb[0].mxu0 %vm39_vm1, %v773_v24  ;;  %v169_v30 = vcombine.high %v161_v29, %v161_v29  ;;  %v541_v39 = vcombine.high %v533_v35, %v533_v35  ;;  %v606_v42 = vcombine.high %v602_v37, %v602_v37  ;;  %vm628_vm4 = vcmask 965632  }
   0xb   :  { %110 = vmatpush1.bf16.msra.mxu1 %v104_v25  ;;  %430 = vmatprep.mubr.bf16.mxu0 %v838_v3  ;;  %v621_v41 = vcombine.high %v613_v40, %v613_v40  ;;  %v243_v0 = vcombine.high %v769_v60, %v769_v60  ;;  %v687_v25 = vsub.s32 0, %v879_v4 }
   0xc   :  { %v620_v43 = vrot.slane %v606_v42, %v893_v11 }
   0xd   :  { %383 = vrot.lane.b32.xlu0 %v380_v20, %s839_s9  ;;  %461 = vrot.lane.b32.xlu1 %v452_v21, %s840_s14  ;;  %v788_v20 = vld [vmem:[%s1016_s1 + $0x20] sm:$0xf] }
  0x11   :  { %463 = vrot.lane.b32.xlu0 %v460_v27, %s840_s14  ;;  %465 = vrot.lane.b32.xlu1 %v459_v28, %s840_s14  ;;  %v691_v27 = vsub.s32 1, %v879_v4  ;;  %v688_v28 = vrot.slane %v683_v26, %v687_v25  ;;  %v733_v4 = vld [vmem:[%s1019_s4] sm:$0xff] }
  0x14   :  { %763 = vmatmul.mubr.msk.bf16.vlgmr.msra.gmra.mrb[0].mxu1 %vm39_vm1, %v25_v33 }
  0x15   :  { %170 = vrot.lane.b32.xlu0 %v161_v29, %s839_s9  ;;  %172 = vrot.lane.b32.xlu1 %v169_v30, %s839_s9  ;;  %v692_v29 = vrot.slane %v683_v26, %v691_v27 }
  0x16   :  { %220 = vmatprep.mubr.bf16.mxu1 %v838_v3 }
  0x19   :  { %174 = vrot.lane.b32.xlu0 %v168_v34, %s839_s9  ;;  %542 = vrot.lane.b32.xlu1 %v533_v35, %s840_s14 }
  0x1d   :  { %546 = vrot.lane.b32.xlu1 %v540_v38, %s840_s14  ;;  %544 = vrot.lane.b32.xlu0 %v541_v39, %s840_s14  ;;  %v723_v38 = vld [vmem:[%s1018_s3] sm:$0xff] }
  0x21   :  { %622 = vrot.lane.b32.xlu0 %v613_v40, %s841_s21  ;;  %624 = vrot.lane.b32.xlu1 %v621_v41, %s841_s21 }
  0x25   :  { %626 = vrot.lane.b32.xlu0 %v620_v43, %s841_s21 }
  0x7b   :  { %v382_v44 = vpop.permute.xlu0 %381  ;;  %v386_v45 = vpop.permute.xlu1 %385 }
  0x7f   :  { %v384_v46 = vpop.permute.xlu0 %383  ;;  %v462_v47 = vpop.permute.xlu1 %461 }
  0x80   :  { %v387_v48 = vsel %vm176_vm2, %v382_v44, %v384_v46  ;;  %v388_v49 = vsel %vm176_vm2, %v384_v46, %v386_v45 }
  0x81   :  { %v393_v50 = vsel %vm43_vm0, %v387_v48, 0  ;;  %779 = vmatprep.subr.msk.bf16.mxu0 %vm43_vm0, %v388_v49  ;;  %v715_v48 = vld [vmem:[%s1020_s2] sm:$0xff] }
  0x82   :  { %399 = vmatpush1.bf16.msra.mxu0 %v393_v50 }
  0x83   :  { %v464_v52 = vpop.permute.xlu0 %463  ;;  %v466_v53 = vpop.permute.xlu1 %465 }
  0x84   :  { %v468_v54 = vsel %vm467_vm3, %v462_v47, %v464_v52  ;;  %v469_v55 = vsel %vm467_vm3, %v464_v52, %v466_v53 }
  0x85   :  { %v474_v56 = vsel %vm43_vm0, %v468_v54, 0  ;;  %780 = vmatmul.mubr.msk.bf16.vlgmr.msra.gmra.mrb[0].mxu0 %vm39_vm1, %v778_v51  ;;  %782 = vmatprep.subr.msk.bf16.mxu0 %vm43_vm0, %v469_v55 }
  0x86   :  { %480 = vmatpush1.bf16.msra.mxu0 %v474_v56  ;;  %511 = vmatprep.mubr.bf16.mxu0 %v838_v3 }
  0x87   :  { %v171_v57 = vpop.permute.xlu0 %170  ;;  %v173_v58 = vpop.permute.xlu1 %172 }
  0x88   :  { %v177_v59 = vsel %vm176_vm2, %v171_v57, %v173_v58 }
  0x89   :  { %v183_v61 = vsel %vm43_vm0, %v177_v59, 0 }
  0x8b   :  { %v175_v62 = vpop.permute.xlu0 %174  ;;  %v543_v63 = vpop.permute.xlu1 %542 }
  0x8c   :  { %v178_v1 = vsel %vm176_vm2, %v173_v58, %v175_v62 }
  0x8d   :  { %765 = vmatprep.subr.msk.bf16.mxu1 %vm43_vm0, %v178_v1 }
  0x8e   :  { %189 = vmatpush1.bf16.msra.mxu1 %v183_v61 }
  0x8f   :  { %v547_v6 = vpop.permute.xlu1 %546  ;;  %v545_v7 = vpop.permute.xlu0 %544  ;;  %770 = vmatprep.subr.msk.bf16.mxu1 %vm43_vm0, %v243_v0 }
  0x90   :  { %v548_v9 = vsel %vm467_vm3, %v543_v63, %v545_v7  ;;  %v549_v10 = vsel %vm467_vm3, %v545_v7, %v547_v6 }
  0x91   :  { %766 = vmatmul.mubr.msk.bf16.vlgmr.msra.gmra.mrb[0].mxu1 %vm39_vm1, %v764_v2  ;;  %783 = vmatmul.mubr.msk.bf16.vlgmr.msra.gmra.mrb[0].mxu0 %vm39_vm1, %v781_v5  ;;  %v554_v11 = vsel %vm43_vm0, %v548_v9, 0 }
  0x92   :  { %786 = vmatprep.subr.msk.bf16.mxu0 %vm43_vm0, %v549_v10  ;;  %254 = vmatpush1.bf16.msra.mxu1 %v248_v8 }
  0x93   :  { %560 = vmatpush1.bf16.msra.mxu0 %v554_v11  ;;  %v623_v12 = vpop.permute.xlu0 %622  ;;  %285 = vmatprep.mubr.bf16.mxu1 %v838_v3  ;;  %v625_v13 = vpop.permute.xlu1 %624 }
  0x94   :  { %591 = vmatprep.mubr.bf16.mxu0 %v838_v3  ;;  %v629_v15 = vsel %vm628_vm4, %v623_v12, %v625_v13 }
  0x95   :  { %v635_v19 = vsel %vm43_vm0, %v629_v15, 0 }
  0x97   :  { %v627_v14 = vpop.permute.xlu0 %626 }
  0x98   :  { %v630_v16 = vsel %vm628_vm4, %v625_v13, %v627_v14 }
  0x99   :  { %789 = vmatprep.subr.msk.bf16.mxu0 %vm43_vm0, %v630_v16 }
  0x9d   :  { %771 = vmatmul.mubr.msk.bf16.vlgmr.msra.gmra.mrb[0].mxu1 %vm39_vm1, %v768_v17  ;;  %787 = vmatmul.mubr.msk.bf16.vlgmr.msra.gmra.mrb[0].mxu0 %vm39_vm1, %v785_v18 }
  0x9e   :  { %641 = vmatpush1.bf16.msra.mxu0 %v635_v19  ;;  %672 = vmatprep.mubr.bf16.mxu0 %v838_v3 }
  0xa9   :  { %790 = vmatmul.mubr.msk.bf16.vlgmr.msra.gmra.mrb[0].mxu0 %vm39_vm1, %v788_v20 }
 0x170   :  { %v287_v21 = vpop.f32.mrb[0].mxu1 }
 0x171   :  { %v289_v22 = vpop.f32.mrb[1].mxu1 }
 0x172   :  { %v291_v23 = vpop.f32.mrb[2].mxu1 }
 0x173   :  { %v292_v24 = vpop.f32.mrb[3].mxu1 }
 0x17c   :  { %v674_v3 = vpop.f32.mrb[0].mxu0 }
 0x17d   :  { %v793_v30 = vadd.f32 %v674_v3, %v287_v21  ;;  %v676_v31 = vpop.f32.mrb[1].mxu0 }
 0x17e   :  { %v794_v32 = vadd.f32 %v676_v31, %v289_v22  ;;  %v678_v33 = vpop.f32.mrb[2].mxu0 }
 0x17f   :  { %v695_v34 = vmul.f32 %v793_v30, %v688_v28  ;;  %v679_v35 = vpop.f32.mrb[3].mxu0 }
 0x180   :  { %v696_v36 = vmul.f32 %v794_v32, %v692_v29 }
 0x182   :  { %v697_v37 = vadd.f32 %v696_v36, %v695_v34 }
 0x184   :  { %698 = vadd.xlane.f32.xlu1 %v697_v37 }
 0x195   :  { %726 = vperm.xlu1 %829, %v723_v38  }
 0x199   :  { %736 = vperm.xlu1 %829, %v733_v4  }
 0x211   :  { %v699_v39 = vpop.xlane.xlu1 %698 }
 0x212   :  { %v700_v40 = vmul.f32 0.0078125, %v699_v39 }
 0x214   :  { %v701_v41 = vsub.f32 %v793_v30, %v700_v40  ;;  %v702_v42 = vsub.f32 %v794_v32, %v700_v40 }
 0x215   :  { %v727_v54 = vpop.permute.xlu1 %726 }
 0x216   :  { %v703_v43 = vmul.f32 %v701_v41, %v688_v28  ;;  %v704_v44 = vmul.f32 %v702_v42, %v692_v29 }
 0x218   :  { %v705_v45 = vmul.f32 %v703_v43, %v703_v43  ;;  %v706_v46 = vmul.f32 %v704_v44, %v704_v44 }
 0x219   :  { %v737_v61 = vpop.permute.xlu1 %736 }
 0x21a   :  { %v707_v47 = vadd.f32 %v706_v46, %v705_v45 }
 0x21c   :  { %708 = vadd.xlane.f32.xlu0 %v707_v47 }
 0x232   :  { %718 = vperm.xlu0 %828, %v715_v48  }
 0x2a9   :  { %v709_v49 = vpop.xlane.xlu0 %708 }
 0x2aa   :  { %v710_v50 = vmul.f32 0.0078125, %v709_v49 }
 0x2ac   :  { %v711_v51 = vadd.f32 1e-05, %v710_v50 }
 0x2ae   :  { %835 = vrsqrt.f32 %v711_v51 }
 0x2b1   :  { %v719_v53 = vpop.permute.xlu0 %718 }
 0x2b8   :  { %v836_v52 = vpop.eup %835 }
 0x2b9   :  { %v713_v55 = vmul.f32 %v836_v52, %v701_v41  ;;  %v714_v56 = vmul.f32 %v836_v52, %v702_v42 }
 0x2bb   :  { %v721_v57 = vmul.f32 %v719_v53, %v713_v55  ;;  %v722_v58 = vmul.f32 %v719_v53, %v714_v56 }
 0x2bd   :  { %v729_v59 = vadd.f32 %v727_v54, %v721_v57  ;;  %v730_v60 = vadd.f32 %v727_v54, %v722_v58 }
 0x2bf   :  { %vm731_vm5 = vcmp.ge.f32.partialorder %v729_v59, 0.0  ;;  %vm732_vm6 = vcmp.ge.f32.partialorder %v730_v60, 0.0  ;;  %v739_v62 = vmul.f32 %v737_v61, %v729_v59  ;;  %v740_v63 = vmul.f32 %v737_v61, %v730_v60 }
 0x2c1   :  { %v741_v0 = vsel %vm731_vm5, %v729_v59, %v739_v62  ;;  %v742_v1 = vsel %vm732_vm6, %v730_v60, %v740_v63 }
 0x2c2   :  { %v792_v2 = vpack.c.bf16 %v742_v1, %v741_v0 }
 0x2c4   :  { %751 = vst [vmem:[%s1021_s6] sm:$0xff] %v792_v2 }

// kernel: _lambda_.11
= control target key start
LH: loop header
LB: loop body
LE: loop exit
PB: predicated region body
PF: predicated region fallthrough
CT: control target
= control target key end

     0   :  { %vm34_vm0 = vcmask 1043456   ;;  %v712_v2 = vmov 0.0   ;;  %vm713_vm1 = vmmov 0   ;;  %s714_s29 = smov 127   ;;  %s715_s30 = smov 123   ;;  %vm30_vm2 = vcmask 64512   ;;  %s863_s0 = inlined_call_operand.vmem [shape: bf16[4,8,134], index: 0, kind: input, shape index: {}]   ;;  %s864_s1 = inlined_call_operand.vmem [shape: bf16[9,8,8], index: 1, kind: input, shape index: {}]   ;;  %s865_s3 = inlined_call_operand.vmem [shape: f32[8,1], index: 3, kind: input, shape index: {}]   ;;  %s866_s5 = inlined_call_operand.vmem [shape: f32[1,128], index: 5, kind: input, shape index: {}]   ;;  %s867_s2 = inlined_call_operand.vmem [shape: f32[8,1], index: 2, kind: input, shape index: {}]   ;;  %s868_s4 = inlined_call_operand.vmem [shape: f32[8,1], index: 4, kind: input, shape index: {}]   ;;  %s869_s6 = inlined_call_operand.vmem [shape: bf16[8,128], index: 6, kind: output, shape index: {}]  }
   0x1   :  { %v580_v0 = vld [vmem:[%s863_s0 + $0x10] sm:$0xff]  ;;  %v124_v1 = vld [vmem:[%s863_s0] sm:$0xff]  ;;  %613 = vmatprep.subr.bf16.mxu1 %v712_v2  ;;  %615 = vmatprep.mubr.msk.bf16.mxu1 %vm713_vm1, %v712_v2  ;;  %v566_v5 = vld [vmem:[%s863_s0 + $0x8] sm:$0xf]  ;;  %s716_s17 = smov 122   ;;  %vm136_vm3 = vcmask 1039360  }
   0x2   :  { %v582_v3 = vcombine.low %v580_v0, %v580_v0  ;;  %v571_v4 = vcombine.low %v124_v1, %v124_v1  ;;  %637 = vmatprep.subr.bf16.mxu0 %v712_v2  ;;  %v577_v6 = vld [vmem:[%s863_s0 + $0x18] sm:$0xf]  ;;  %v36_v7 = vsel %vm34_vm0, %v566_v5, 0  ;;  %639 = vmatprep.mubr.msk.bf16.mxu0 %vm713_vm1, %v712_v2  ;;  %v583_v9 = vcombine.high %v580_v0, %v580_v0  ;;  %v24_v11 = vld [vmem:[%s863_s0] sm:$0xf]  ;;  %v587_v15 = vld [vmem:[%s863_s0 + $0x8] sm:$0xff] }
   0x3   :  { %v244_v8 = vsel %vm34_vm0, %v577_v6, 0  ;;  %v572_v10 = vcombine.high %v124_v1, %v124_v1  ;;  %614 = vmatpush3.bf16.msra.mxu1 %v36_v7  ;;  %v567_v12 = vld [vmem:[%s864_s1 + $0x4] sm:$0xf]  ;;  %v578_v13 = vld [vmem:[%s864_s1 + $0x10] sm:$0xf]  ;;  %v82_v14 = vsel %vm34_vm0, %v24_v11, 0  ;;  %v589_v16 = vcombine.low %v587_v15, %v587_v15 }
   0x4   :  { %295 = vrot.lane.b32.xlu0 %v582_v3, %s714_s29  ;;  %349 = vrot.lane.b32.xlu1 %v571_v4, %s715_s30  ;;  %v590_v17 = vcombine.high %v587_v15, %v587_v15  ;;  %v25_v18 = vld [vmem:[%s864_s1] sm:$0xf]  ;;  %vm353_vm4 = vcmask 1006592   ;;  %v581_v26 = vld [vmem:[%s864_s1 + $0x14] sm:$0xf]  ;;  %vm468_vm5 = vcmask 998400  }
   0x5   :  { %638 = vmatpush3.bf16.msra.mxu0 %v244_v8  ;;  %619 = vmatprep.subr.bf16.mxu1 %v712_v2  ;;  %v574_v31 = vld [vmem:[%s863_s0 + $0x10] sm:$0xf]  ;;  %v570_v33 = vld [vmem:[%s864_s1 + $0x8] sm:$0xf]  ;;  %v585_v38 = vld [vmem:[%s864_s1 + $0x18] sm:$0xf] }
   0x6   :  { %643 = vmatprep.subr.bf16.mxu0 %v712_v2  ;;  %616 = vmatmul.mubr.msk.bf16.vlgmr.msra.gmra.mrb[0].mxu1 %vm30_vm2, %v567_v12  ;;  %v193_v34 = vsel %vm34_vm0, %v574_v31, 0  ;;  %v575_v40 = vld [vmem:[%s864_s1 + $0xc] sm:$0xf]  ;;  %v588_v44 = vld [vmem:[%s864_s1 + $0x1c] sm:$0xf]  ;;  %v717_v47 = vmov 0  }
   0x7   :  { %620 = vmatpush3.bf16.msra.mxu1 %v82_v14  ;;  %621 = vmatprep.mubr.msk.bf16.mxu1 %vm713_vm1, %v712_v2  ;;  %v592_v46 = vld [vmem:[%s864_s1 + $0x20] sm:$0xf] }
   0x8   :  { %297 = vrot.lane.b32.xlu0 %v583_v9, %s714_s29  ;;  %351 = vrot.lane.b32.xlu1 %v572_v10, %s715_s30  ;;  %v544_v48 = vld [vmem:[%s865_s3] sm:$0xff] }
   0x9   :  { %640 = vmatmul.mubr.msk.bf16.vlgmr.msra.gmra.mrb[0].mxu0 %vm30_vm2, %v578_v13  ;;  %625 = vmatprep.subr.bf16.mxu1 %v712_v2  ;;  %v594_v54 = vld [vmem:[%s866_s5] ss:$0 sm:$0xff] }
   0xa   :  { %645 = vmatprep.mubr.msk.bf16.mxu0 %vm713_vm1, %v712_v2  ;;  %703 = vset.pattern.permute.xlu1 %v717_v47  ;;  %v537_v60 = vld [vmem:[%s867_s2] sm:$0xff] }
   0xb   :  { %702 = vset.pattern.permute.xlu0 %v717_v47 }
   0xc   :  { %132 = vrot.lane.b32.xlu0 %v571_v4, %s714_s29  ;;  %134 = vrot.lane.b32.xlu1 %v572_v10, %s714_s29 }
  0x10   :  { %410 = vrot.lane.b32.xlu0 %v589_v16, %s715_s30  ;;  %412 = vrot.lane.b32.xlu1 %v590_v17, %s715_s30 }
  0x12   :  { %622 = vmatmul.mubr.msk.bf16.vlgmr.msra.gmra.mrb[0].mxu1 %vm30_vm2, %v25_v18 }
  0x13   :  { %627 = vmatprep.mubr.msk.bf16.mxu1 %vm713_vm1, %v712_v2 }
  0x14   :  { %464 = vrot.lane.b32.xlu0 %v571_v4, %s716_s17  ;;  %466 = vrot.lane.b32.xlu1 %v572_v10, %s716_s17 }
  0x18   :  { %547 = vperm.xlu1 %703, %v544_v48  }
  0x76   :  { %v296_v19 = vpop.permute.xlu0 %295  ;;  %v350_v20 = vpop.permute.xlu1 %349 }
  0x7a   :  { %v298_v21 = vpop.permute.xlu0 %297  ;;  %v352_v22 = vpop.permute.xlu1 %351 }
  0x7b   :  { %v299_v23 = vsel %vm136_vm3, %v296_v19, %v298_v21  ;;  %v354_v24 = vsel %vm353_vm4, %v350_v20, %v352_v22 }
  0x7c   :  { %v304_v25 = vsel %vm34_vm0, %v299_v23, 0  ;;  %v359_v27 = vsel %vm34_vm0, %v354_v24, 0 }
  0x7d   :  { %644 = vmatpush3.bf16.msra.mxu0 %v304_v25 }
  0x7e   :  { %v133_v28 = vpop.permute.xlu0 %132  ;;  %v135_v29 = vpop.permute.xlu1 %134  ;;  %649 = vmatprep.subr.bf16.mxu0 %v712_v2 }
  0x7f   :  { %v137_v30 = vsel %vm136_vm3, %v133_v28, %v135_v29 }
  0x80   :  { %v142_v32 = vsel %vm34_vm0, %v137_v30, 0  ;;  %646 = vmatmul.mubr.msk.bf16.vlgmr.msra.gmra.mrb[0].mxu0 %vm30_vm2, %v581_v26 }
  0x81   :  { %626 = vmatpush3.bf16.msra.mxu1 %v142_v32  ;;  %650 = vmatpush3.bf16.msra.mxu0 %v359_v27 }
  0x82   :  { %651 = vmatprep.mubr.msk.bf16.mxu0 %vm713_vm1, %v712_v2  ;;  %631 = vmatprep.subr.bf16.mxu1 %v712_v2  ;;  %v411_v35 = vpop.permute.xlu0 %410  ;;  %v413_v36 = vpop.permute.xlu1 %412 }
  0x83   :  { %655 = vmatprep.subr.bf16.mxu0 %v712_v2  ;;  %v414_v37 = vsel %vm353_vm4, %v411_v35, %v413_v36 }
  0x84   :  { %628 = vmatmul.mubr.msk.bf16.vlgmr.msra.gmra.mrb[0].mxu1 %vm30_vm2, %v570_v33  ;;  %v419_v39 = vsel %vm34_vm0, %v414_v37, 0 }
  0x85   :  { %632 = vmatpush3.bf16.msra.mxu1 %v193_v34  ;;  %633 = vmatprep.mubr.msk.bf16.mxu1 %vm713_vm1, %v712_v2 }
  0x86   :  { %v465_v41 = vpop.permute.xlu0 %464  ;;  %v467_v42 = vpop.permute.xlu1 %466 }
  0x87   :  { %v469_v43 = vsel %vm468_vm5, %v465_v41, %v467_v42 }
  0x88   :  { %v474_v45 = vsel %vm34_vm0, %v469_v43, 0 }
  0x8c   :  { %652 = vmatmul.mubr.msk.bf16.vlgmr.msra.gmra.mrb[0].mxu0 %vm30_vm2, %v585_v38 }
  0x8d   :  { %656 = vmatpush3.bf16.msra.mxu0 %v419_v39  ;;  %657 = vmatprep.mubr.msk.bf16.mxu0 %vm713_vm1, %v712_v2 }
  0x8e   :  { %661 = vmatprep.subr.bf16.mxu0 %v712_v2 }
  0x90   :  { %634 = vmatmul.mubr.msk.bf16.vlgmr.msra.gmra.mrb[0].mxu1 %vm30_vm2, %v575_v40 }
  0x97   :  { %v548_v3 = vpop.permute.xlu1 %547 }
  0x98   :  { %658 = vmatmul.mubr.msk.bf16.vlgmr.msra.gmra.mrb[0].mxu0 %vm30_vm2, %v588_v44 }
  0x99   :  { %662 = vmatpush3.bf16.msra.mxu0 %v474_v45  ;;  %663 = vmatprep.mubr.msk.bf16.mxu0 %vm713_vm1, %v712_v2  ;;  %v552_v2 = vld [vmem:[%s868_s4] sm:$0xff] }
  0xa4   :  { %664 = vmatmul.mubr.msk.bf16.vlgmr.msra.gmra.mrb[0].mxu0 %vm30_vm2, %v592_v46 }
 0x163   :  { %v229_v49 = vpop.f32.mrb[0].mxu1 }
 0x164   :  { %v635_v50 = vpop.f32.mrb[1].mxu1 }
 0x165   :  { %v232_v51 = vpop.f32.mrb[2].mxu1 }
 0x166   :  { %v636_v52 = vpop.f32.mrb[3].mxu1 }
 0x177   :  { %v510_v53 = vpop.f32.mrb[0].mxu0 }
 0x178   :  { %v667_v55 = vadd.f32 %v510_v53, %v229_v49  ;;  %v665_v56 = vpop.f32.mrb[1].mxu0 }
 0x179   :  { %v513_v57 = vpop.f32.mrb[2].mxu0 }
 0x17a   :  { %v666_v58 = vpop.f32.mrb[3].mxu0  ;;  %v524_v59 = vmul.f32 %v667_v55, %v594_v54 }
 0x17c   :  { %525 = vadd.xlane.f32.xlu0 %v524_v59 }
 0x192   :  { %540 = vperm.xlu0 %702, %v537_v60  }
 0x209   :  { %v526_v61 = vpop.xlane.xlu0 %525 }
 0x20a   :  { %v527_v62 = vmul.f32 0.03125, %v526_v61 }
 0x20c   :  { %v528_v63 = vsub.f32 %v667_v55, %v527_v62 }
 0x20e   :  { %v529_v0 = vmul.f32 %v594_v54, %v528_v63 }
 0x210   :  { %v530_v1 = vmul.f32 %v529_v0, %v529_v0 }
 0x211   :  { %v541_v8 = vpop.permute.xlu0 %540 }
 0x212   :  { %531 = vadd.xlane.f32.xlu1 %v530_v1 }
 0x223   :  { %555 = vperm.xlu1 %703, %v552_v2  }
 0x29f   :  { %v532_v4 = vpop.xlane.xlu1 %531 }
 0x2a0   :  { %v533_v5 = vmul.f32 0.03125, %v532_v4 }
 0x2a2   :  { %v534_v6 = vadd.f32 1e-05, %v533_v5 }
 0x2a3   :  { %v556_v12 = vpop.permute.xlu1 %555 }
 0x2a4   :  { %710 = vrsqrt.f32 %v534_v6 }
 0x2ae   :  { %v711_v7 = vpop.eup %710 }
 0x2af   :  { %v536_v9 = vmul.f32 %v711_v7, %v528_v63 }
 0x2b1   :  { %v543_v10 = vmul.f32 %v541_v8, %v536_v9 }
 0x2b3   :  { %v550_v11 = vadd.f32 %v548_v3, %v543_v10 }
 0x2b5   :  { %vm551_vm6 = vcmp.ge.f32.partialorder %v550_v11, 0.0  ;;  %v558_v13 = vmul.f32 %v556_v12, %v550_v11 }
 0x2b7   :  { %v559_v14 = vsel %vm551_vm6, %v550_v11, %v558_v13 }
 0x2b8   :  { %v560_v15 = vpack.c.bf16 %v559_v14, %v559_v14 }
 0x2ba   :  { %561 = vst [vmem:[%s869_s6] sm:$0xf] %v560_v15 }

// kernel: _lambda_.12
= control target key start
LH: loop header
LB: loop body
LE: loop exit
PB: predicated region body
PF: predicated region fallthrough
CT: control target
= control target key end

     0   :  { %v706_v1 = vmov 0.0   ;;  %vm707_vm0 = vmmov 0   ;;  %s708_s23 = smov 127   ;;  %s709_s24 = smov 121   ;;  %vm38_vm1 = vcmask 1039360   ;;  %vm250_vm2 = vcmask 990208   ;;  %s845_s0 = inlined_call_operand.vmem [shape: bf16[1,8,142], index: 0, kind: input, shape index: {}]   ;;  %s846_s1 = inlined_call_operand.vmem [shape: bf16[9,8,8], index: 1, kind: input, shape index: {}]   ;;  %s847_s3 = inlined_call_operand.vmem [shape: f32[8,1], index: 3, kind: input, shape index: {}]   ;;  %s848_s5 = inlined_call_operand.vmem [shape: f32[1,128], index: 5, kind: input, shape index: {}]   ;;  %s849_s2 = inlined_call_operand.vmem [shape: f32[8,1], index: 2, kind: input, shape index: {}]   ;;  %s850_s4 = inlined_call_operand.vmem [shape: f32[8,1], index: 4, kind: input, shape index: {}]   ;;  %s851_s6 = inlined_call_operand.vmem [shape: bf16[8,128], index: 6, kind: output, shape index: {}]  }
   0x1   :  { %v26_v0 = vld [vmem:[%s845_s0] sm:$0xff]  ;;  %606 = vmatprep.subr.bf16.mxu1 %v706_v1  ;;  %630 = vmatprep.subr.bf16.mxu0 %v706_v1  ;;  %s710_s25 = smov 120   ;;  %s711_s26 = smov 116   ;;  %vm44_vm3 = vcmask 1043456   ;;  %vm305_vm4 = vcmask 982016   ;;  %vm40_vm5 = vcmask 64512  }
   0x2   :  { %v569_v2 = vcombine.low %v26_v0, %v26_v0  ;;  %608 = vmatprep.mubr.msk.bf16.mxu1 %vm707_vm0, %v706_v1  ;;  %632 = vmatprep.mubr.msk.bf16.mxu0 %vm707_vm0, %v706_v1  ;;  %v570_v3 = vcombine.high %v26_v0, %v26_v0  ;;  %s712_s27 = smov 126   ;;  %s713_s28 = smov 115   ;;  %v24_v10 = vld [vmem:[%s845_s0] sm:$0xf]  ;;  %v568_v13 = vld [vmem:[%s846_s1 + $0x4] sm:$0xf] }
   0x3   :  { %s714_s29 = smov 122   ;;  %s715_s30 = smov 114   ;;  %v577_v14 = vld [vmem:[%s846_s1 + $0x10] sm:$0xf]  ;;  %v92_v17 = vsel %vm44_vm3, %v24_v10, 0  ;;  %vm360_vm6 = vcmask 949248  }
   0x4   :  { %34 = vrot.lane.b32.xlu1 %v569_v2, %s708_s23  ;;  %246 = vrot.lane.b32.xlu0 %v569_v2, %s709_s24  ;;  %vm140_vm7 = vcmask 1031168   ;;  %v25_v26 = vld [vmem:[%s846_s1] sm:$0xf]  ;;  %v579_v27 = vld [vmem:[%s846_s1 + $0x14] sm:$0xf]  ;;  %vm415_vm8 = vcmask 941056  }
   0x5   :  { %vm195_vm9 = vcmask 998400   ;;  %v573_v36 = vld [vmem:[%s846_s1 + $0x8] sm:$0xf]  ;;  %v581_v37 = vld [vmem:[%s846_s1 + $0x18] sm:$0xf]  ;;  %vm470_vm10 = vcmask 932864  }
   0x6   :  { %v575_v43 = vld [vmem:[%s846_s1 + $0xc] sm:$0xf]  ;;  %v583_v44 = vld [vmem:[%s846_s1 + $0x1c] sm:$0xf]  ;;  %v585_v46 = vld [vmem:[%s846_s1 + $0x20] sm:$0xf] }
   0x7   :  { %v716_v47 = vmov 0   ;;  %v546_v48 = vld [vmem:[%s847_s3] sm:$0xff] }
   0x8   :  { %36 = vrot.lane.b32.xlu1 %v570_v3, %s708_s23  ;;  %248 = vrot.lane.b32.xlu0 %v570_v3, %s709_s24  ;;  %v587_v54 = vld [vmem:[%s848_s5] ss:$0 sm:$0xff] }
   0x9   :  { %701 = vset.pattern.permute.xlu1 %v716_v47  ;;  %700 = vset.pattern.permute.xlu0 %v716_v47  ;;  %v539_v60 = vld [vmem:[%s849_s2] sm:$0xff] }
   0xc   :  { %303 = vrot.lane.b32.xlu1 %v570_v3, %s710_s25  ;;  %301 = vrot.lane.b32.xlu0 %v569_v2, %s710_s25 }
  0x10   :  { %358 = vrot.lane.b32.xlu1 %v570_v3, %s711_s26  ;;  %356 = vrot.lane.b32.xlu0 %v569_v2, %s711_s26 }
  0x14   :  { %138 = vrot.lane.b32.xlu1 %v570_v3, %s712_s27  ;;  %136 = vrot.lane.b32.xlu0 %v569_v2, %s712_s27 }
  0x18   :  { %413 = vrot.lane.b32.xlu1 %v570_v3, %s713_s28  ;;  %411 = vrot.lane.b32.xlu0 %v569_v2, %s713_s28 }
  0x1c   :  { %193 = vrot.lane.b32.xlu1 %v570_v3, %s714_s29  ;;  %191 = vrot.lane.b32.xlu0 %v569_v2, %s714_s29 }
  0x20   :  { %468 = vrot.lane.b32.xlu1 %v570_v3, %s715_s30  ;;  %466 = vrot.lane.b32.xlu0 %v569_v2, %s715_s30  ;;  %v554_v2 = vld [vmem:[%s850_s4] sm:$0xff] }
  0x24   :  { %549 = vperm.xlu1 %701, %v546_v48  }
  0x76   :  { %v35_v4 = vpop.permute.xlu1 %34  ;;  %v247_v5 = vpop.permute.xlu0 %246 }
  0x7a   :  { %v37_v6 = vpop.permute.xlu1 %36  ;;  %v249_v7 = vpop.permute.xlu0 %248 }
  0x7b   :  { %v39_v8 = vsel %vm38_vm1, %v35_v4, %v37_v6  ;;  %v251_v9 = vsel %vm250_vm2, %v247_v5, %v249_v7 }
  0x7c   :  { %v46_v11 = vsel %vm44_vm3, %v39_v8, 0  ;;  %v256_v12 = vsel %vm44_vm3, %v251_v9, 0 }
  0x7d   :  { %607 = vmatpush3.bf16.msra.mxu1 %v46_v11  ;;  %631 = vmatpush3.bf16.msra.mxu0 %v256_v12 }
  0x7e   :  { %v304_v15 = vpop.permute.xlu1 %303  ;;  %v302_v16 = vpop.permute.xlu0 %301  ;;  %636 = vmatprep.subr.bf16.mxu0 %v706_v1  ;;  %612 = vmatprep.subr.bf16.mxu1 %v706_v1 }
  0x7f   :  { %v306_v18 = vsel %vm305_vm4, %v302_v16, %v304_v15 }
  0x80   :  { %v311_v19 = vsel %vm44_vm3, %v306_v18, 0  ;;  %609 = vmatmul.mubr.msk.bf16.vlgmr.msra.gmra.mrb[0].mxu1 %vm40_vm5, %v568_v13  ;;  %633 = vmatmul.mubr.msk.bf16.vlgmr.msra.gmra.mrb[0].mxu0 %vm40_vm5, %v577_v14 }
  0x81   :  { %637 = vmatpush3.bf16.msra.mxu0 %v311_v19  ;;  %613 = vmatpush3.bf16.msra.mxu1 %v92_v17 }
  0x82   :  { %v359_v20 = vpop.permute.xlu1 %358  ;;  %v357_v21 = vpop.permute.xlu0 %356  ;;  %614 = vmatprep.mubr.msk.bf16.mxu1 %vm707_vm0, %v706_v1  ;;  %638 = vmatprep.mubr.msk.bf16.mxu0 %vm707_vm0, %v706_v1 }
  0x83   :  { %642 = vmatprep.subr.bf16.mxu0 %v706_v1  ;;  %618 = vmatprep.subr.bf16.mxu1 %v706_v1  ;;  %v361_v24 = vsel %vm360_vm6, %v357_v21, %v359_v20 }
  0x84   :  { %v366_v28 = vsel %vm44_vm3, %v361_v24, 0 }
  0x86   :  { %v139_v22 = vpop.permute.xlu1 %138  ;;  %v137_v23 = vpop.permute.xlu0 %136 }
  0x87   :  { %v141_v25 = vsel %vm140_vm7, %v137_v23, %v139_v22 }
  0x88   :  { %v146_v29 = vsel %vm44_vm3, %v141_v25, 0 }
  0x8a   :  { %v414_v30 = vpop.permute.xlu1 %413  ;;  %v412_v31 = vpop.permute.xlu0 %411 }
  0x8b   :  { %v416_v34 = vsel %vm415_vm8, %v412_v31, %v414_v30 }
  0x8c   :  { %615 = vmatmul.mubr.msk.bf16.vlgmr.msra.gmra.mrb[0].mxu1 %vm40_vm5, %v25_v26  ;;  %639 = vmatmul.mubr.msk.bf16.vlgmr.msra.gmra.mrb[0].mxu0 %vm40_vm5, %v579_v27  ;;  %v421_v38 = vsel %vm44_vm3, %v416_v34, 0 }
  0x8d   :  { %643 = vmatpush3.bf16.msra.mxu0 %v366_v28  ;;  %619 = vmatpush3.bf16.msra.mxu1 %v146_v29 }
  0x8e   :  { %620 = vmatprep.mubr.msk.bf16.mxu1 %vm707_vm0, %v706_v1  ;;  %644 = vmatprep.mubr.msk.bf16.mxu0 %vm707_vm0, %v706_v1  ;;  %v194_v32 = vpop.permute.xlu1 %193  ;;  %v192_v33 = vpop.permute.xlu0 %191 }
  0x8f   :  { %648 = vmatprep.subr.bf16.mxu0 %v706_v1  ;;  %624 = vmatprep.subr.bf16.mxu1 %v706_v1  ;;  %v196_v35 = vsel %vm195_vm9, %v192_v33, %v194_v32 }
  0x90   :  { %v201_v39 = vsel %vm44_vm3, %v196_v35, 0 }
  0x92   :  { %v469_v40 = vpop.permute.xlu1 %468  ;;  %v467_v41 = vpop.permute.xlu0 %466 }
  0x93   :  { %v471_v42 = vsel %vm470_vm10, %v467_v41, %v469_v40 }
  0x94   :  { %v476_v45 = vsel %vm44_vm3, %v471_v42, 0 }
  0x98   :  { %621 = vmatmul.mubr.msk.bf16.vlgmr.msra.gmra.mrb[0].mxu1 %vm40_vm5, %v573_v36  ;;  %645 = vmatmul.mubr.msk.bf16.vlgmr.msra.gmra.mrb[0].mxu0 %vm40_vm5, %v581_v37 }
  0x99   :  { %649 = vmatpush3.bf16.msra.mxu0 %v421_v38  ;;  %625 = vmatpush3.bf16.msra.mxu1 %v201_v39 }
  0x9a   :  { %626 = vmatprep.mubr.msk.bf16.mxu1 %vm707_vm0, %v706_v1  ;;  %650 = vmatprep.mubr.msk.bf16.mxu0 %vm707_vm0, %v706_v1 }
  0x9b   :  { %654 = vmatprep.subr.bf16.mxu0 %v706_v1 }
  0xa3   :  { %v550_v3 = vpop.permute.xlu1 %549 }
  0xa4   :  { %627 = vmatmul.mubr.msk.bf16.vlgmr.msra.gmra.mrb[0].mxu1 %vm40_vm5, %v575_v43  ;;  %651 = vmatmul.mubr.msk.bf16.vlgmr.msra.gmra.mrb[0].mxu0 %vm40_vm5, %v583_v44 }
  0xa5   :  { %655 = vmatpush3.bf16.msra.mxu0 %v476_v45  ;;  %656 = vmatprep.mubr.msk.bf16.mxu0 %vm707_vm0, %v706_v1 }
  0xb0   :  { %657 = vmatmul.mubr.msk.bf16.vlgmr.msra.gmra.mrb[0].mxu0 %vm40_vm5, %v585_v46 }
 0x177   :  { %v237_v49 = vpop.f32.mrb[0].mxu1 }
 0x178   :  { %v628_v50 = vpop.f32.mrb[1].mxu1 }
 0x179   :  { %v240_v51 = vpop.f32.mrb[2].mxu1 }
 0x17a   :  { %v629_v52 = vpop.f32.mrb[3].mxu1 }
 0x183   :  { %v512_v53 = vpop.f32.mrb[0].mxu0 }
 0x184   :  { %v660_v55 = vadd.f32 %v512_v53, %v237_v49  ;;  %v658_v56 = vpop.f32.mrb[1].mxu0 }
 0x185   :  { %v515_v57 = vpop.f32.mrb[2].mxu0 }
 0x186   :  { %v659_v58 = vpop.f32.mrb[3].mxu0  ;;  %v526_v59 = vmul.f32 %v660_v55, %v587_v54 }
 0x188   :  { %527 = vadd.xlane.f32.xlu0 %v526_v59 }
 0x19e   :  { %542 = vperm.xlu0 %700, %v539_v60  }
 0x215   :  { %v528_v61 = vpop.xlane.xlu0 %527 }
 0x216   :  { %v529_v62 = vmul.f32 0.03125, %v528_v61 }
 0x218   :  { %v530_v63 = vsub.f32 %v660_v55, %v529_v62 }
 0x21a   :  { %v531_v0 = vmul.f32 %v587_v54, %v530_v63 }
 0x21c   :  { %v532_v1 = vmul.f32 %v531_v0, %v531_v0 }
 0x21d   :  { %v543_v8 = vpop.permute.xlu0 %542 }
 0x21e   :  { %533 = vadd.xlane.f32.xlu1 %v532_v1 }
 0x22f   :  { %557 = vperm.xlu1 %701, %v554_v2  }
 0x2ab   :  { %v534_v4 = vpop.xlane.xlu1 %533 }
 0x2ac   :  { %v535_v5 = vmul.f32 0.03125, %v534_v4 }
 0x2ae   :  { %v536_v6 = vadd.f32 1e-05, %v535_v5 }
 0x2af   :  { %v558_v12 = vpop.permute.xlu1 %557 }
 0x2b0   :  { %704 = vrsqrt.f32 %v536_v6 }
 0x2ba   :  { %v705_v7 = vpop.eup %704 }
 0x2bb   :  { %v538_v9 = vmul.f32 %v705_v7, %v530_v63 }
 0x2bd   :  { %v545_v10 = vmul.f32 %v543_v8, %v538_v9 }
 0x2bf   :  { %v552_v11 = vadd.f32 %v550_v3, %v545_v10 }
 0x2c1   :  { %vm553_vm11 = vcmp.ge.f32.partialorder %v552_v11, 0.0  ;;  %v560_v13 = vmul.f32 %v558_v12, %v552_v11 }
 0x2c3   :  { %v561_v14 = vsel %vm553_vm11, %v552_v11, %v560_v13 }
 0x2c4   :  { %v562_v15 = vpack.c.bf16 %v561_v14, %v561_v14 }
 0x2c6   :  { %563 = vst [vmem:[%s851_s6] sm:$0xf] %v562_v15 }

// kernel: _lambda_.13
= control target key start
LH: loop header
LB: loop body
LE: loop exit
PB: predicated region body
PF: predicated region fallthrough
CT: control target
= control target key end

     0   :  { %v739_v2 = vmov 0   ;;  %s740_s25 = smov 117   ;;  %s741_s26 = smov 127   ;;  %vm282_vm0 = vcmask 957440   ;;  %vm50_vm1 = vcmask 1043456   ;;  %vm43_vm2 = vcmask 1039360   ;;  %s880_s0 = inlined_call_operand.vmem [shape: bf16[1,8,278], index: 0, kind: input, shape index: {}]   ;;  %s881_s1 = inlined_call_operand.vmem [shape: bf16[9,8,8], index: 1, kind: input, shape index: {}]   ;;  %s882_s3 = inlined_call_operand.vmem [shape: f32[8,1], index: 3, kind: input, shape index: {}]   ;;  %s883_s5 = inlined_call_operand.vmem [shape: f32[1,256], index: 5, kind: input, shape index: {}]   ;;  %s884_s2 = inlined_call_operand.vmem [shape: f32[8,1], index: 2, kind: input, shape index: {}]   ;;  %s885_s4 = inlined_call_operand.vmem [shape: f32[8,1], index: 4, kind: input, shape index: {}]   ;;  %s886_s6 = inlined_call_operand.vmem [shape: bf16[8,256], index: 6, kind: output, shape index: {}]  }
   0x1   :  { %v734_v0 = vld [vmem:[%s880_s0 + $0x8] ss:$0 sps:$4 sm:$0xff]   ;;  %v24_v1 = vld [vmem:[%s880_s0] sm:$0xff]  ;;  %326 = vmatprep.mubr.bf16.mxu0 %v739_v2  ;;  %89 = vmatprep.mubr.bf16.mxu1 %v739_v2  ;;  %s742_s0 = smov 116   ;;  %s743_s27 = smov 108   ;;  %vm46_vm3 = vcmask 64512  }
   0x2   :  { %v791_v3 = vcombine.low %v24_v1, %v24_v1  ;;  %733 = vset.pattern.permute.xlu1 %v739_v2  ;;  %732 = vset.pattern.permute.xlu0 %v739_v2  ;;  %v664_v4 = vcombine.high %v24_v1, %v24_v1  ;;  %s744_s28 = smov 126   ;;  %s745_s29 = smov 107   ;;  %v676_v13 = vld [vmem:[%s881_s1 + $0x10] sm:$0xf]  ;;  %v662_v19 = vld [vmem:[%s881_s1 + $0x4] sm:$0xf] }
   0x3   :  { %280 = vrot.lane.b32.xlu1 %v734_v0, %s740_s25  ;;  %s746_s30 = smov 118   ;;  %s747_s7 = smov 106   ;;  %vm345_vm4 = vcmask 949248   ;;  %vm408_vm5 = vcmask 883712   ;;  %v679_v27 = vld [vmem:[%s881_s1 + $0x14] sm:$0xf] }
   0x4   :  { %276 = vrot.lane.b32.xlu0 %v791_v3, %s740_s25  ;;  %v102_v21 = vsel %vm50_vm1, %v791_v3, 0  ;;  %vm156_vm6 = vcmask 1031168   ;;  %v25_v33 = vld [vmem:[%s881_s1] sm:$0xf]  ;;  %vm471_vm7 = vcmask 875520   ;;  %vm219_vm8 = vcmask 965632  }
   0x5   :  { %v682_v41 = vld [vmem:[%s881_s1 + $0x18] sm:$0xf]  ;;  %v670_v47 = vld [vmem:[%s881_s1 + $0x8] sm:$0xf]  ;;  %vm534_vm9 = vcmask 867328   ;;  %v629_v63 = vld [vmem:[%s882_s3] sm:$0xff] }
   0x6   :  { %v685_v55 = vld [vmem:[%s881_s1 + $0x1c] sm:$0xf]  ;;  %v673_v61 = vld [vmem:[%s881_s1 + $0xc] sm:$0xf]  ;;  %v688_v62 = vld [vmem:[%s881_s1 + $0x20] sm:$0xf] }
   0x7   :  { %37 = vrot.lane.b32.xlu1 %v791_v3, %s741_s26 }
   0x8   :  { %278 = vrot.lane.b32.xlu0 %v664_v4, %s740_s25 }
   0xb   :  { %41 = vrot.lane.b32.xlu1 %v734_v0, %s741_s26 }
   0xc   :  { %39 = vrot.lane.b32.xlu0 %v664_v4, %s741_s26 }
   0xf   :  { %341 = vrot.lane.b32.xlu1 %v664_v4, %s742_s0 }
  0x10   :  { %339 = vrot.lane.b32.xlu0 %v791_v3, %s742_s0 }
  0x13   :  { %402 = vrot.lane.b32.xlu1 %v791_v3, %s743_s27 }
  0x14   :  { %343 = vrot.lane.b32.xlu0 %v734_v0, %s742_s0 }
  0x17   :  { %406 = vrot.lane.b32.xlu1 %v734_v0, %s743_s27 }
  0x18   :  { %404 = vrot.lane.b32.xlu0 %v664_v4, %s743_s27 }
  0x1b   :  { %152 = vrot.lane.b32.xlu1 %v664_v4, %s744_s28 }
  0x1c   :  { %150 = vrot.lane.b32.xlu0 %v791_v3, %s744_s28 }
  0x1f   :  { %465 = vrot.lane.b32.xlu1 %v791_v3, %s745_s29 }
  0x20   :  { %154 = vrot.lane.b32.xlu0 %v734_v0, %s744_s28 }
  0x23   :  { %469 = vrot.lane.b32.xlu1 %v734_v0, %s745_s29 }
  0x24   :  { %467 = vrot.lane.b32.xlu0 %v664_v4, %s745_s29 }
  0x27   :  { %215 = vrot.lane.b32.xlu1 %v664_v4, %s746_s30 }
  0x28   :  { %213 = vrot.lane.b32.xlu0 %v791_v3, %s746_s30 }
  0x2b   :  { %528 = vrot.lane.b32.xlu1 %v791_v3, %s747_s7 }
  0x2c   :  { %217 = vrot.lane.b32.xlu0 %v734_v0, %s746_s30 }
  0x2f   :  { %532 = vrot.lane.b32.xlu1 %v734_v0, %s747_s7  ;;  %v591_v0 = vlaneseq }
  0x30   :  { %530 = vrot.lane.b32.xlu0 %v664_v4, %s747_s7 }
  0x31   :  { %v592_v1 = vshrl.u32 %v591_v0, 7 }
  0x33   :  { %632 = vperm.xlu1 %733, %v629_v63  }
  0x75   :  { %v281_v5 = vpop.permute.xlu1 %280 }
  0x76   :  { %v277_v6 = vpop.permute.xlu0 %276 }
  0x79   :  { %v38_v7 = vpop.permute.xlu1 %37 }
  0x7a   :  { %v279_v8 = vpop.permute.xlu0 %278 }
  0x7b   :  { %v284_v9 = vsel %vm282_vm0, %v279_v8, %v281_v5  ;;  %v283_v10 = vsel %vm282_vm0, %v277_v6, %v279_v8  ;;  %v597_v8 = vsub.s32 1, %v592_v1 }
  0x7c   :  { %677 = vmatprep.subr.msk.bf16.mxu0 %vm50_vm1, %v284_v9  ;;  %v289_v11 = vsel %vm50_vm1, %v283_v10, 0 }
  0x7d   :  { %295 = vmatpush1.bf16.msra.mxu0 %v289_v11  ;;  %v42_v12 = vpop.permute.xlu1 %41 }
  0x7e   :  { %v40_v14 = vpop.permute.xlu0 %39 }
  0x7f   :  { %v45_v15 = vsel %vm43_vm2, %v40_v14, %v42_v12  ;;  %v44_v16 = vsel %vm43_vm2, %v38_v7, %v40_v14  ;;  %v589_v7 = vld [vmem:[%s883_s5] sm:$0x3] }
  0x80   :  { %666 = vmatprep.subr.msk.bf16.mxu1 %vm50_vm1, %v45_v15  ;;  %678 = vmatmul.mubr.msk.bf16.vlgmr.msra.gmra.mrb[0].mxu0 %vm46_vm3, %v676_v13  ;;  %v52_v17 = vsel %vm50_vm1, %v44_v16, 0  ;;  %v598_v11 = vrot.slane %v589_v7, %v597_v8 }
  0x81   :  { %58 = vmatpush1.bf16.msra.mxu1 %v52_v17  ;;  %v342_v18 = vpop.permute.xlu1 %341  ;;  %389 = vmatprep.mubr.bf16.mxu0 %v739_v2 }
  0x82   :  { %v340_v20 = vpop.permute.xlu0 %339  ;;  %668 = vmatprep.subr.msk.bf16.mxu1 %vm50_vm1, %v664_v4 }
  0x83   :  { %v346_v22 = vsel %vm345_vm4, %v340_v20, %v342_v18  ;;  %v621_v20 = vld [vmem:[%s884_s2] sm:$0xff] }
  0x84   :  { %667 = vmatmul.mubr.msk.bf16.vlgmr.msra.gmra.mrb[0].mxu1 %vm46_vm3, %v662_v19  ;;  %v352_v26 = vsel %vm50_vm1, %v346_v22, 0 }
  0x85   :  { %v403_v23 = vpop.permute.xlu1 %402  ;;  %108 = vmatpush1.bf16.msra.mxu1 %v102_v21  ;;  %139 = vmatprep.mubr.bf16.mxu1 %v739_v2 }
  0x86   :  { %v344_v24 = vpop.permute.xlu0 %343 }
  0x87   :  { %v347_v25 = vsel %vm345_vm4, %v342_v18, %v344_v24 }
  0x88   :  { %680 = vmatprep.subr.msk.bf16.mxu0 %vm50_vm1, %v347_v25 }
  0x89   :  { %358 = vmatpush1.bf16.msra.mxu0 %v352_v26  ;;  %v407_v28 = vpop.permute.xlu1 %406 }
  0x8a   :  { %v405_v29 = vpop.permute.xlu0 %404 }
  0x8b   :  { %v409_v30 = vsel %vm408_vm5, %v403_v23, %v405_v29  ;;  %v410_v31 = vsel %vm408_vm5, %v405_v29, %v407_v28 }
  0x8c   :  { %681 = vmatmul.mubr.msk.bf16.vlgmr.msra.gmra.mrb[0].mxu0 %vm46_vm3, %v679_v27  ;;  %v415_v32 = vsel %vm50_vm1, %v409_v30, 0  ;;  %683 = vmatprep.subr.msk.bf16.mxu0 %vm50_vm1, %v410_v31  ;;  %v639_v30 = vld [vmem:[%s885_s4] sm:$0xff] }
  0x8d   :  { %421 = vmatpush1.bf16.msra.mxu0 %v415_v32  ;;  %v153_v34 = vpop.permute.xlu1 %152  ;;  %452 = vmatprep.mubr.bf16.mxu0 %v739_v2 }
  0x8e   :  { %v151_v35 = vpop.permute.xlu0 %150 }
  0x8f   :  { %v157_v36 = vsel %vm156_vm6, %v151_v35, %v153_v34 }
  0x90   :  { %669 = vmatmul.mubr.msk.bf16.vlgmr.msra.gmra.mrb[0].mxu1 %vm46_vm3, %v25_v33  ;;  %v163_v38 = vsel %vm50_vm1, %v157_v36, 0 }
  0x91   :  { %v466_v37 = vpop.permute.xlu1 %465  ;;  %200 = vmatprep.mubr.bf16.mxu1 %v739_v2 }
  0x92   :  { %v155_v39 = vpop.permute.xlu0 %154 }
  0x93   :  { %v158_v40 = vsel %vm156_vm6, %v153_v34, %v155_v39 }
  0x94   :  { %671 = vmatprep.subr.msk.bf16.mxu1 %vm50_vm1, %v158_v40 }
  0x95   :  { %169 = vmatpush1.bf16.msra.mxu1 %v163_v38  ;;  %v470_v42 = vpop.permute.xlu1 %469 }
  0x96   :  { %v468_v43 = vpop.permute.xlu0 %467 }
  0x97   :  { %v472_v44 = vsel %vm471_vm7, %v466_v37, %v468_v43  ;;  %v473_v45 = vsel %vm471_vm7, %v468_v43, %v470_v42 }
  0x98   :  { %684 = vmatmul.mubr.msk.bf16.vlgmr.msra.gmra.mrb[0].mxu0 %vm46_vm3, %v682_v41  ;;  %v478_v46 = vsel %vm50_vm1, %v472_v44, 0  ;;  %686 = vmatprep.subr.msk.bf16.mxu0 %vm50_vm1, %v473_v45 }
  0x99   :  { %484 = vmatpush1.bf16.msra.mxu0 %v478_v46  ;;  %v216_v48 = vpop.permute.xlu1 %215  ;;  %515 = vmatprep.mubr.bf16.mxu0 %v739_v2 }
  0x9a   :  { %v214_v49 = vpop.permute.xlu0 %213 }
  0x9b   :  { %v220_v50 = vsel %vm219_vm8, %v214_v49, %v216_v48 }
  0x9c   :  { %672 = vmatmul.mubr.msk.bf16.vlgmr.msra.gmra.mrb[0].mxu1 %vm46_vm3, %v670_v47  ;;  %v226_v52 = vsel %vm50_vm1, %v220_v50, 0 }
  0x9d   :  { %v529_v51 = vpop.permute.xlu1 %528  ;;  %263 = vmatprep.mubr.bf16.mxu1 %v739_v2 }
  0x9e   :  { %v218_v53 = vpop.permute.xlu0 %217 }
  0x9f   :  { %v221_v54 = vsel %vm219_vm8, %v216_v48, %v218_v53 }
  0xa0   :  { %674 = vmatprep.subr.msk.bf16.mxu1 %vm50_vm1, %v221_v54 }
  0xa1   :  { %232 = vmatpush1.bf16.msra.mxu1 %v226_v52  ;;  %v533_v56 = vpop.permute.xlu1 %532 }
  0xa2   :  { %v531_v57 = vpop.permute.xlu0 %530 }
  0xa3   :  { %v535_v58 = vsel %vm534_vm9, %v529_v51, %v531_v57  ;;  %v536_v59 = vsel %vm534_vm9, %v531_v57, %v533_v56 }
  0xa4   :  { %687 = vmatmul.mubr.msk.bf16.vlgmr.msra.gmra.mrb[0].mxu0 %vm46_vm3, %v685_v55  ;;  %v541_v60 = vsel %vm50_vm1, %v535_v58, 0  ;;  %689 = vmatprep.subr.msk.bf16.mxu0 %vm50_vm1, %v536_v59 }
  0xa5   :  { %547 = vmatpush1.bf16.msra.mxu0 %v541_v60  ;;  %578 = vmatprep.mubr.bf16.mxu0 %v739_v2  ;;  %v593_v2 = vsub.s32 0, %v592_v1 }
  0xa7   :  { %v594_v9 = vrot.slane %v589_v7, %v593_v2 }
  0xa8   :  { %675 = vmatmul.mubr.msk.bf16.vlgmr.msra.gmra.mrb[0].mxu1 %vm46_vm3, %v673_v61 }
  0xb0   :  { %690 = vmatmul.mubr.msk.bf16.vlgmr.msra.gmra.mrb[0].mxu0 %vm46_vm3, %v688_v62 }
  0xb2   :  { %v633_v31 = vpop.permute.xlu1 %632 }
 0x17b   :  { %v265_v3 = vpop.f32.mrb[0].mxu1 }
 0x17c   :  { %v267_v4 = vpop.f32.mrb[1].mxu1 }
 0x17d   :  { %v269_v5 = vpop.f32.mrb[2].mxu1 }
 0x17e   :  { %v270_v6 = vpop.f32.mrb[3].mxu1 }
 0x183   :  { %v580_v10 = vpop.f32.mrb[0].mxu0 }
 0x184   :  { %v693_v12 = vadd.f32 %v580_v10, %v265_v3  ;;  %v582_v13 = vpop.f32.mrb[1].mxu0 }
 0x185   :  { %v694_v14 = vadd.f32 %v582_v13, %v267_v4  ;;  %v584_v15 = vpop.f32.mrb[2].mxu0 }
 0x186   :  { %v601_v16 = vmul.f32 %v693_v12, %v594_v9  ;;  %v585_v17 = vpop.f32.mrb[3].mxu0 }
 0x187   :  { %v602_v18 = vmul.f32 %v694_v14, %v598_v11 }
 0x189   :  { %v603_v19 = vadd.f32 %v602_v18, %v601_v16 }
 0x18b   :  { %604 = vadd.xlane.f32.xlu0 %v603_v19 }
 0x1a1   :  { %624 = vperm.xlu0 %732, %v621_v20  }
 0x218   :  { %v605_v21 = vpop.xlane.xlu0 %604 }
 0x219   :  { %v606_v22 = vmul.f32 0.0078125, %v605_v21 }
 0x21b   :  { %v607_v23 = vsub.f32 %v693_v12, %v606_v22  ;;  %v608_v24 = vsub.f32 %v694_v14, %v606_v22 }
 0x21d   :  { %v609_v25 = vmul.f32 %v607_v23, %v594_v9  ;;  %v610_v26 = vmul.f32 %v608_v24, %v598_v11 }
 0x21f   :  { %v611_v27 = vmul.f32 %v609_v25, %v609_v25  ;;  %v612_v28 = vmul.f32 %v610_v26, %v610_v26 }
 0x220   :  { %v625_v36 = vpop.permute.xlu0 %624 }
 0x221   :  { %v613_v29 = vadd.f32 %v612_v28, %v611_v27 }
 0x223   :  { %614 = vadd.xlane.f32.xlu1 %v613_v29 }
 0x234   :  { %642 = vperm.xlu1 %733, %v639_v30  }
 0x2b0   :  { %v615_v32 = vpop.xlane.xlu1 %614 }
 0x2b1   :  { %v616_v33 = vmul.f32 0.0078125, %v615_v32 }
 0x2b3   :  { %v617_v34 = vadd.f32 1e-05, %v616_v33 }
 0x2b4   :  { %v643_v43 = vpop.permute.xlu1 %642 }
 0x2b5   :  { %737 = vrsqrt.f32 %v617_v34 }
 0x2bf   :  { %v738_v35 = vpop.eup %737 }
 0x2c0   :  { %v619_v37 = vmul.f32 %v738_v35, %v607_v23  ;;  %v620_v38 = vmul.f32 %v738_v35, %v608_v24 }
 0x2c2   :  { %v627_v39 = vmul.f32 %v625_v36, %v619_v37  ;;  %v628_v40 = vmul.f32 %v625_v36, %v620_v38 }
 0x2c4   :  { %v635_v41 = vadd.f32 %v633_v31, %v627_v39  ;;  %v636_v42 = vadd.f32 %v633_v31, %v628_v40 }
 0x2c6   :  { %vm637_vm10 = vcmp.ge.f32.partialorder %v635_v41, 0.0  ;;  %vm638_vm11 = vcmp.ge.f32.partialorder %v636_v42, 0.0  ;;  %v645_v44 = vmul.f32 %v643_v43, %v635_v41  ;;  %v646_v45 = vmul.f32 %v643_v43, %v636_v42 }
 0x2c8   :  { %v647_v46 = vsel %vm637_vm10, %v635_v41, %v645_v44  ;;  %v648_v47 = vsel %vm638_vm11, %v636_v42, %v646_v45 }
 0x2c9   :  { %v692_v48 = vpack.c.bf16 %v648_v47, %v647_v46 }
 0x2cb   :  { %657 = vst [vmem:[%s886_s6] sm:$0xff] %v692_v48 }

// kernel: _lambda_.14
= control target key start
LH: loop header
LB: loop body
LE: loop exit
PB: predicated region body
PF: predicated region fallthrough
CT: control target
= control target key end

     0   :  { %v1917_v2 = vmov 0   ;;  %s1918_s25 = smov 127   ;;  %s1919_s30 = smov 126   ;;  %vm63_vm0 = vcmask 1039360   ;;  %vm74_vm1 = vcmask 1043456   ;;  %vm70_vm2 = vcmask 64512   ;;  %s2268_s0 = inlined_call_operand.vmem [shape: bf16[1,8,806], index: 0, kind: input, shape index: {}]   ;;  %s2269_s1 = inlined_call_operand.vmem [shape: bf16[9,8,8], index: 1, kind: input, shape index: {}]   ;;  %s2270_s3 = inlined_call_operand.vmem [shape: f32[8,1], index: 3, kind: input, shape index: {}]   ;;  %s2271_s5 = inlined_call_operand.vmem [shape: f32[1,768], index: 5, kind: input, shape index: {}]   ;;  %s2272_s2 = inlined_call_operand.vmem [shape: f32[8,1], index: 2, kind: input, shape index: {}]   ;;  %s2273_s4 = inlined_call_operand.vmem [shape: f32[8,1], index: 4, kind: input, shape index: {}]   ;;  %s2274_s6 = inlined_call_operand.vmem [shape: bf16[8,768], index: 6, kind: output, shape index: {}]  }
   0x1   :  { %v25_v0 = vld [vmem:[%s2268_s0 + $0x8] sm:$0xff]  ;;  %v24_v1 = vld [vmem:[%s2268_s0] sm:$0xff]  ;;  %125 = vmatprep.mubr.bf16.mxu1 %v1917_v2  ;;  %436 = vmatprep.mubr.bf16.mxu0 %v1917_v2  ;;  %v26_v7 = vld [vmem:[%s2268_s0 + $0x10] sm:$0xff]  ;;  %s1920_s7 = smov 110   ;;  %s1922_s8 = smov 108   ;;  %vm376_vm3 = vcmask 1031168  }
   0x2   :  { %v1969_v3 = vcombine.low %v25_v0, %v25_v0  ;;  %v1971_v4 = vcombine.low %v24_v1, %v24_v1  ;;  %1907 = vset.pattern.permute.xlu1 %v1917_v2  ;;  %1906 = vset.pattern.permute.xlu0 %v1917_v2  ;;  %v1977_v5 = vcombine.high %v25_v0, %v25_v0  ;;  %v1914_v10 = vld [vmem:[%s2268_s0 + $0x18] ss:$0 sps:$4 sm:$0xff]   ;;  %s1921_s0 = smov 109   ;;  %s1923_s9 = smov 92   ;;  %v1730_v19 = vld [vmem:[%s2269_s1 + $0x4] sm:$0xf] }
   0x3   :  { %v1979_v6 = vcombine.high %v24_v1, %v24_v1  ;;  %v1986_v8 = vcombine.high %v26_v7, %v26_v7  ;;  %v1988_v9 = vcombine.low %v26_v7, %v26_v7  ;;  %s1924_s10 = smov 91   ;;  %s1925_s11 = smov 90   ;;  %v2065_v34 = vld [vmem:[%s2269_s1 + $0x8] sm:$0xf]  ;;  %vm549_vm4 = vcmask 900096  }
   0x4   :  { %53 = vrot.lane.b32.xlu1 %v1969_v3, %s1918_s25  ;;  %49 = vrot.lane.b32.xlu0 %v1971_v4, %s1918_s25  ;;  %v220_v41 = vsel %vm74_vm1, %v1971_v4, 0  ;;  %v27_v48 = vld [vmem:[%s2269_s1] sm:$0xf]  ;;  %v226_v51 = vsel %vm74_vm1, %v1969_v3, 0  ;;  %v2103_v53 = vld [vmem:[%s2269_s1 + $0xc] sm:$0xf] }
   0x5   :  { %vm722_vm5 = vcmask 891904   ;;  %v232_v60 = vsel %vm74_vm1, %v1988_v9, 0  ;;  %vm895_vm6 = vcmask 883712   ;;  %vm1068_vm7 = vcmask 752640  }
   0x6   :  { %vm1241_vm8 = vcmask 744448   ;;  %vm1414_vm9 = vcmask 736256  }
   0x8   :  { %55 = vrot.lane.b32.xlu1 %v1977_v5, %s1918_s25  ;;  %51 = vrot.lane.b32.xlu0 %v1979_v6, %s1918_s25 }
   0xc   :  { %59 = vrot.lane.b32.xlu1 %v1986_v8, %s1918_s25  ;;  %57 = vrot.lane.b32.xlu0 %v1988_v9, %s1918_s25 }
  0x10   :  { %362 = vrot.lane.b32.xlu1 %v1971_v4, %s1919_s30  ;;  %61 = vrot.lane.b32.xlu0 %v1914_v10, %s1918_s25 }
  0x14   :  { %366 = vrot.lane.b32.xlu1 %v1969_v3, %s1919_s30  ;;  %364 = vrot.lane.b32.xlu0 %v1979_v6, %s1919_s30 }
  0x18   :  { %372 = vrot.lane.b32.xlu1 %v1986_v8, %s1919_s30  ;;  %370 = vrot.lane.b32.xlu0 %v1988_v9, %s1919_s30 }
  0x1c   :  { %535 = vrot.lane.b32.xlu1 %v1971_v4, %s1920_s7  ;;  %374 = vrot.lane.b32.xlu0 %v1914_v10, %s1919_s30 }
  0x20   :  { %539 = vrot.lane.b32.xlu1 %v1969_v3, %s1920_s7  ;;  %537 = vrot.lane.b32.xlu0 %v1979_v6, %s1920_s7 }
  0x24   :  { %545 = vrot.lane.b32.xlu1 %v1986_v8, %s1920_s7  ;;  %543 = vrot.lane.b32.xlu0 %v1988_v9, %s1920_s7 }
  0x28   :  { %368 = vrot.lane.b32.xlu1 %v1977_v5, %s1919_s30  ;;  %547 = vrot.lane.b32.xlu0 %v1914_v10, %s1920_s7 }
  0x2c   :  { %710 = vrot.lane.b32.xlu1 %v1979_v6, %s1921_s0  ;;  %708 = vrot.lane.b32.xlu0 %v1971_v4, %s1921_s0 }
  0x30   :  { %716 = vrot.lane.b32.xlu1 %v1988_v9, %s1921_s0  ;;  %712 = vrot.lane.b32.xlu0 %v1969_v3, %s1921_s0 }
  0x34   :  { %720 = vrot.lane.b32.xlu1 %v1914_v10, %s1921_s0  ;;  %718 = vrot.lane.b32.xlu0 %v1986_v8, %s1921_s0 }
  0x38   :  { %881 = vrot.lane.b32.xlu1 %v1971_v4, %s1922_s8  ;;  %541 = vrot.lane.b32.xlu0 %v1977_v5, %s1920_s7 }
  0x3c   :  { %885 = vrot.lane.b32.xlu1 %v1969_v3, %s1922_s8  ;;  %883 = vrot.lane.b32.xlu0 %v1979_v6, %s1922_s8 }
  0x40   :  { %889 = vrot.lane.b32.xlu1 %v1988_v9, %s1922_s8  ;;  %714 = vrot.lane.b32.xlu0 %v1977_v5, %s1921_s0 }
  0x44   :  { %893 = vrot.lane.b32.xlu1 %v1914_v10, %s1922_s8  ;;  %891 = vrot.lane.b32.xlu0 %v1986_v8, %s1922_s8 }
  0x48   :  { %1056 = vrot.lane.b32.xlu1 %v1979_v6, %s1923_s9  ;;  %1054 = vrot.lane.b32.xlu0 %v1971_v4, %s1923_s9 }
  0x4c   :  { %887 = vrot.lane.b32.xlu1 %v1977_v5, %s1922_s8  ;;  %1058 = vrot.lane.b32.xlu0 %v1969_v3, %s1923_s9 }
  0x50   :  { %1064 = vrot.lane.b32.xlu1 %v1986_v8, %s1923_s9  ;;  %1062 = vrot.lane.b32.xlu0 %v1988_v9, %s1923_s9 }
  0x54   :  { %1060 = vrot.lane.b32.xlu1 %v1977_v5, %s1923_s9  ;;  %1066 = vrot.lane.b32.xlu0 %v1914_v10, %s1923_s9 }
  0x58   :  { %1227 = vrot.lane.b32.xlu0 %v1971_v4, %s1924_s10  ;;  %1229 = vrot.lane.b32.xlu1 %v1979_v6, %s1924_s10 }
  0x5c   :  { %1231 = vrot.lane.b32.xlu0 %v1969_v3, %s1924_s10  ;;  %1235 = vrot.lane.b32.xlu1 %v1988_v9, %s1924_s10 }
  0x60   :  { %1237 = vrot.lane.b32.xlu0 %v1986_v8, %s1924_s10  ;;  %1239 = vrot.lane.b32.xlu1 %v1914_v10, %s1924_s10 }
  0x64   :  { %1233 = vrot.lane.b32.xlu0 %v1977_v5, %s1924_s10  ;;  %1400 = vrot.lane.b32.xlu1 %v1971_v4, %s1925_s11 }
  0x68   :  { %1404 = vrot.lane.b32.xlu1 %v1969_v3, %s1925_s11  ;;  %1402 = vrot.lane.b32.xlu0 %v1979_v6, %s1925_s11 }
  0x6c   :  { %1408 = vrot.lane.b32.xlu1 %v1988_v9, %s1925_s11  ;;  %1406 = vrot.lane.b32.xlu0 %v1977_v5, %s1925_s11 }
  0x70   :  { %1412 = vrot.lane.b32.xlu1 %v1914_v10, %s1925_s11  ;;  %1410 = vrot.lane.b32.xlu0 %v1986_v8, %s1925_s11  ;;  %v2137_v10 = vld [vmem:[%s2269_s1 + $0x10] sm:$0xf] }
  0x76   :  { %v54_v11 = vpop.permute.xlu1 %53  ;;  %v50_v12 = vpop.permute.xlu0 %49 }
  0x7a   :  { %v56_v13 = vpop.permute.xlu1 %55  ;;  %v52_v14 = vpop.permute.xlu0 %51 }
  0x7b   :  { %v65_v15 = vsel %vm63_vm0, %v52_v14, %v54_v11  ;;  %v64_v16 = vsel %vm63_vm0, %v50_v12, %v52_v14  ;;  %v66_v18 = vsel %vm63_vm0, %v54_v11, %v56_v13 }
  0x7c   :  { %1738 = vmatprep.subr.msk.bf16.mxu1 %vm74_vm1, %v65_v15  ;;  %v76_v17 = vsel %vm74_vm1, %v64_v16, 0  ;;  %v82_v23 = vsel %vm74_vm1, %v66_v18, 0 }
  0x7d   :  { %94 = vmatpush1.bf16.msra.mxu1 %v76_v17 }
  0x7e   :  { %v60_v20 = vpop.permute.xlu1 %59  ;;  %v58_v21 = vpop.permute.xlu0 %57 }
  0x7f   :  { %v67_v22 = vsel %vm63_vm0, %v56_v13, %v58_v21  ;;  %v68_v27 = vsel %vm63_vm0, %v58_v21, %v60_v20 }
  0x80   :  { %1739 = vmatmul.mubr.msk.bf16.vlgmr.msra.gmra.mrb[0].mxu1 %vm70_vm2, %v1730_v19  ;;  %1740 = vmatprep.subr.msk.bf16.mxu1 %vm74_vm1, %v67_v22  ;;  %v88_v32 = vsel %vm74_vm1, %v68_v27, 0 }
  0x81   :  { %135 = vmatpush1.bf16.msra.mxu1 %v82_v23  ;;  %166 = vmatprep.mubr.bf16.mxu1 %v1917_v2 }
  0x82   :  { %v363_v24 = vpop.permute.xlu1 %362  ;;  %v62_v25 = vpop.permute.xlu0 %61 }
  0x83   :  { %v69_v26 = vsel %vm63_vm0, %v60_v20, %v62_v25 }
  0x84   :  { %1742 = vmatprep.subr.msk.bf16.mxu1 %vm74_vm1, %v69_v26 }
  0x86   :  { %v2053_v28 = vpop.permute.xlu1 %366  ;;  %v365_v29 = vpop.permute.xlu0 %364 }
  0x87   :  { %v378_v30 = vsel %vm376_vm3, %v365_v29, %v2053_v28  ;;  %v377_v31 = vsel %vm376_vm3, %v363_v24, %v365_v29 }
  0x88   :  { %1741 = vmatmul.mubr.msk.bf16.vlgmr.msra.gmra.mrb[4].mxu1 %vm70_vm2, %v1730_v19  ;;  %1751 = vmatprep.subr.msk.bf16.mxu0 %vm74_vm1, %v378_v30  ;;  %v387_v33 = vsel %vm74_vm1, %v377_v31, 0  ;;  %v1771_v30 = vld [vmem:[%s2269_s1 + $0x14] sm:$0xf] }
  0x89   :  { %176 = vmatpush1.bf16.msra.mxu1 %v88_v32  ;;  %405 = vmatpush1.bf16.msra.mxu0 %v387_v33 }
  0x8a   :  { %v373_v35 = vpop.permute.xlu1 %372  ;;  %v371_v36 = vpop.permute.xlu0 %370  ;;  %207 = vmatprep.mubr.bf16.mxu1 %v1917_v2  ;;  %1744 = vmatprep.subr.msk.bf16.mxu1 %vm74_vm1, %v1979_v6 }
  0x8b   :  { %v381_v37 = vsel %vm376_vm3, %v371_v36, %v373_v35 }
  0x8c   :  { %1752 = vmatmul.mubr.msk.bf16.vlgmr.msra.gmra.mrb[0].mxu0 %vm70_vm2, %v2065_v34  ;;  %v399_v38 = vsel %vm74_vm1, %v381_v37, 0 }
  0x8d   :  { %518 = vmatprep.mubr.bf16.mxu0 %v1917_v2 }
  0x8e   :  { %v536_v39 = vpop.permute.xlu1 %535  ;;  %v375_v40 = vpop.permute.xlu0 %374 }
  0x8f   :  { %v382_v42 = vsel %vm376_vm3, %v373_v35, %v375_v40 }
  0x90   :  { %1743 = vmatmul.mubr.msk.bf16.vlgmr.msra.gmra.mrb[8].mxu1 %vm70_vm2, %v1730_v19  ;;  %1755 = vmatprep.subr.msk.bf16.mxu0 %vm74_vm1, %v382_v42 }
  0x91   :  { %238 = vmatpush1.bf16.msra.mxu1 %v220_v41  ;;  %487 = vmatpush1.bf16.msra.mxu0 %v399_v38 }
  0x92   :  { %v2080_v43 = vpop.permute.xlu1 %539  ;;  %v538_v44 = vpop.permute.xlu0 %537  ;;  %269 = vmatprep.mubr.bf16.mxu1 %v1917_v2  ;;  %1746 = vmatprep.subr.msk.bf16.mxu1 %vm74_vm1, %v1977_v5 }
  0x93   :  { %v550_v45 = vsel %vm549_vm4, %v536_v39, %v538_v44  ;;  %v551_v46 = vsel %vm549_vm4, %v538_v44, %v2080_v43 }
  0x94   :  { %v560_v47 = vsel %vm74_vm1, %v550_v45, 0  ;;  %1756 = vmatmul.mubr.msk.bf16.vlgmr.msra.gmra.mrb[4].mxu0 %vm70_vm2, %v2065_v34  ;;  %1758 = vmatprep.subr.msk.bf16.mxu0 %vm74_vm1, %v551_v46 }
  0x95   :  { %578 = vmatpush1.bf16.msra.mxu0 %v560_v47  ;;  %609 = vmatprep.mubr.bf16.mxu0 %v1917_v2 }
  0x96   :  { %v546_v49 = vpop.permute.xlu1 %545  ;;  %v544_v50 = vpop.permute.xlu0 %543 }
  0x97   :  { %v554_v52 = vsel %vm549_vm4, %v544_v50, %v546_v49 }
  0x98   :  { %1745 = vmatmul.mubr.msk.bf16.vlgmr.msra.gmra.mrb[0].mxu1 %vm70_vm2, %v27_v48  ;;  %v572_v54 = vsel %vm74_vm1, %v554_v52, 0 }
  0x99   :  { %279 = vmatpush1.bf16.msra.mxu1 %v226_v51  ;;  %310 = vmatprep.mubr.bf16.mxu1 %v1917_v2 }
  0x9a   :  { %v369_v55 = vpop.permute.xlu1 %368  ;;  %v548_v56 = vpop.permute.xlu0 %547  ;;  %1748 = vmatprep.subr.msk.bf16.mxu1 %vm74_vm1, %v1986_v8 }
  0x9b   :  { %v555_v57 = vsel %vm549_vm4, %v546_v49, %v548_v56  ;;  %v380_v62 = vsel %vm376_vm3, %v369_v55, %v371_v36  ;;  %v379_v4 = vsel %vm376_vm3, %v2053_v28, %v369_v55 }
  0x9c   :  { %1759 = vmatmul.mubr.msk.bf16.vlgmr.msra.gmra.mrb[0].mxu0 %vm70_vm2, %v2103_v53  ;;  %1762 = vmatprep.subr.msk.bf16.mxu0 %vm74_vm1, %v555_v57  ;;  %v393_v9 = vsel %vm74_vm1, %v379_v4, 0 }
  0x9d   :  { %660 = vmatpush1.bf16.msra.mxu0 %v572_v54  ;;  %691 = vmatprep.mubr.bf16.mxu0 %v1917_v2 }
  0x9e   :  { %v711_v58 = vpop.permute.xlu1 %710  ;;  %v709_v59 = vpop.permute.xlu0 %708 }
  0x9f   :  { %v723_v61 = vsel %vm722_vm5, %v709_v59, %v711_v58 }
  0xa0   :  { %1747 = vmatmul.mubr.msk.bf16.vlgmr.msra.gmra.mrb[4].mxu1 %vm70_vm2, %v27_v48  ;;  %v733_v63 = vsel %vm74_vm1, %v723_v61, 0 }
  0xa1   :  { %320 = vmatpush1.bf16.msra.mxu1 %v232_v60  ;;  %351 = vmatprep.mubr.bf16.mxu1 %v1917_v2 }
  0xa2   :  { %1753 = vmatprep.subr.msk.bf16.mxu1 %vm74_vm1, %v380_v62  ;;  %v717_v0 = vpop.permute.xlu1 %716  ;;  %v713_v1 = vpop.permute.xlu0 %712 }
  0xa3   :  { %v724_v3 = vsel %vm722_vm5, %v711_v58, %v713_v1 }
  0xa4   :  { %1763 = vmatmul.mubr.msk.bf16.vlgmr.msra.gmra.mrb[4].mxu0 %vm70_vm2, %v2103_v53  ;;  %1765 = vmatprep.subr.msk.bf16.mxu0 %vm74_vm1, %v724_v3 }
  0xa5   :  { %751 = vmatpush1.bf16.msra.mxu0 %v733_v63  ;;  %782 = vmatprep.mubr.bf16.mxu0 %v1917_v2 }
  0xa6   :  { %v721_v5 = vpop.permute.xlu1 %720  ;;  %v719_v6 = vpop.permute.xlu0 %718 }
  0xa7   :  { %v727_v7 = vsel %vm722_vm5, %v717_v0, %v719_v6  ;;  %v728_v8 = vsel %vm722_vm5, %v719_v6, %v721_v5  ;;  %v1785_v5 = vld [vmem:[%s2269_s1 + $0x1c] sm:$0xf] }
  0xa8   :  { %1749 = vmatmul.mubr.msk.bf16.vlgmr.msra.gmra.mrb[8].mxu1 %vm70_vm2, %v27_v48  ;;  %1769 = vmatprep.subr.msk.bf16.mxu0 %vm74_vm1, %v728_v8  ;;  %v745_v11 = vsel %vm74_vm1, %v727_v7, 0 }
  0xa9   :  { %446 = vmatpush1.bf16.msra.mxu1 %v393_v9  ;;  %477 = vmatprep.mubr.bf16.mxu1 %v1917_v2 }
  0xaa   :  { %v882_v12 = vpop.permute.xlu1 %881  ;;  %v542_v13 = vpop.permute.xlu0 %541 }
  0xab   :  { %v553_v14 = vsel %vm549_vm4, %v542_v13, %v544_v50  ;;  %v552_v15 = vsel %vm549_vm4, %v2080_v43, %v542_v13  ;;  %v1778_v50 = vld [vmem:[%s2269_s1 + $0x18] sm:$0xf] }
  0xac   :  { %1760 = vmatprep.subr.msk.bf16.mxu1 %vm74_vm1, %v553_v14  ;;  %1766 = vmatmul.mubr.msk.bf16.vlgmr.msra.gmra.mrb[0].mxu0 %vm70_vm2, %v2137_v10  ;;  %v566_v20 = vsel %vm74_vm1, %v552_v15, 0 }
  0xad   :  { %833 = vmatpush1.bf16.msra.mxu0 %v745_v11  ;;  %864 = vmatprep.mubr.bf16.mxu0 %v1917_v2 }
  0xae   :  { %v886_v16 = vpop.permute.xlu1 %885  ;;  %v884_v17 = vpop.permute.xlu0 %883 }
  0xaf   :  { %v896_v18 = vsel %vm895_vm6, %v882_v12, %v884_v17  ;;  %v897_v19 = vsel %vm895_vm6, %v884_v17, %v886_v16 }
  0xb0   :  { %1754 = vmatmul.mubr.msk.bf16.vlgmr.msra.gmra.mrb[4].mxu1 %vm70_vm2, %v2065_v34  ;;  %1772 = vmatprep.subr.msk.bf16.mxu0 %vm74_vm1, %v897_v19  ;;  %v906_v21 = vsel %vm74_vm1, %v896_v18, 0 }
  0xb1   :  { %619 = vmatpush1.bf16.msra.mxu1 %v566_v20  ;;  %650 = vmatprep.mubr.bf16.mxu1 %v1917_v2 }
  0xb2   :  { %v890_v22 = vpop.permute.xlu1 %889  ;;  %v715_v23 = vpop.permute.xlu0 %714 }
  0xb3   :  { %v726_v24 = vsel %vm722_vm5, %v715_v23, %v717_v0  ;;  %v725_v29 = vsel %vm722_vm5, %v713_v1, %v715_v23 }
  0xb4   :  { %1767 = vmatprep.subr.msk.bf16.mxu1 %vm74_vm1, %v726_v24  ;;  %1770 = vmatmul.mubr.msk.bf16.vlgmr.msra.gmra.mrb[4].mxu0 %vm70_vm2, %v2137_v10  ;;  %v739_v34 = vsel %vm74_vm1, %v725_v29, 0 }
  0xb5   :  { %924 = vmatpush1.bf16.msra.mxu0 %v906_v21  ;;  %955 = vmatprep.mubr.bf16.mxu0 %v1917_v2 }
  0xb6   :  { %v894_v25 = vpop.permute.xlu1 %893  ;;  %v892_v26 = vpop.permute.xlu0 %891 }
  0xb7   :  { %v900_v27 = vsel %vm895_vm6, %v890_v22, %v892_v26  ;;  %v901_v28 = vsel %vm895_vm6, %v892_v26, %v894_v25  ;;  %v1663_v25 = vld [vmem:[%s2270_s3] sm:$0xff] }
  0xb8   :  { %1776 = vmatprep.subr.msk.bf16.mxu0 %vm74_vm1, %v901_v28  ;;  %v918_v31 = vsel %vm74_vm1, %v900_v27, 0  ;;  %1666 = vperm.xlu1 %1907, %v1663_v25  }
  0xba   :  { %v1057_v32 = vpop.permute.xlu1 %1056  ;;  %v1055_v33 = vpop.permute.xlu0 %1054 }
  0xbb   :  { %v1069_v37 = vsel %vm1068_vm7, %v1055_v33, %v1057_v32 }
  0xbc   :  { %1761 = vmatmul.mubr.msk.bf16.vlgmr.msra.gmra.mrb[4].mxu1 %vm70_vm2, %v2103_v53  ;;  %1773 = vmatmul.mubr.msk.bf16.vlgmr.msra.gmra.mrb[0].mxu0 %vm70_vm2, %v1771_v30  ;;  %v1079_v40 = vsel %vm74_vm1, %v1069_v37, 0 }
  0xbd   :  { %792 = vmatpush1.bf16.msra.mxu1 %v739_v34  ;;  %1006 = vmatpush1.bf16.msra.mxu0 %v918_v31  ;;  %v1573_v34 = vlaneseq }
  0xbe   :  { %v888_v35 = vpop.permute.xlu1 %887  ;;  %v1059_v36 = vpop.permute.xlu0 %1058  ;;  %1037 = vmatprep.mubr.bf16.mxu0 %v1917_v2  ;;  %823 = vmatprep.mubr.bf16.mxu1 %v1917_v2 }
  0xbf   :  { %v899_v38 = vsel %vm895_vm6, %v888_v35, %v890_v22  ;;  %v1070_v39 = vsel %vm1068_vm7, %v1057_v32, %v1059_v36  ;;  %v898_v43 = vsel %vm895_vm6, %v886_v16, %v888_v35  ;;  %v1792_v22 = vld [vmem:[%s2269_s1 + $0x20] sm:$0xf]  ;;  %v1574_v35 = vshrl.u32 %v1573_v34, 7 }
  0xc0   :  { %1774 = vmatprep.subr.msk.bf16.mxu1 %vm74_vm1, %v899_v38  ;;  %1779 = vmatprep.subr.msk.bf16.mxu0 %vm74_vm1, %v1070_v39  ;;  %v912_v49 = vsel %vm74_vm1, %v898_v43, 0 }
  0xc1   :  { %v1575_v37 = vsub.s32 0, %v1574_v35  ;;  %v1579_v39 = vsub.s32 1, %v1574_v35 }
  0xc2   :  { %v1065_v41 = vpop.permute.xlu1 %1064  ;;  %v1063_v42 = vpop.permute.xlu0 %1062 }
  0xc3   :  { %v1073_v46 = vsel %vm1068_vm7, %v1063_v42, %v1065_v41 }
  0xc4   :  { %1777 = vmatmul.mubr.msk.bf16.vlgmr.msra.gmra.mrb[4].mxu0 %vm70_vm2, %v1771_v30  ;;  %v1091_v51 = vsel %vm74_vm1, %v1073_v46, 0  ;;  %v1583_v46 = vsub.s32 2, %v1574_v35 }
  0xc5   :  { %1097 = vmatpush1.bf16.msra.mxu0 %v1079_v40  ;;  %1128 = vmatprep.mubr.bf16.mxu0 %v1917_v2  ;;  %v1571_v40 = vld [vmem:[%s2271_s5] sm:$0x3f] }
  0xc6   :  { %v1061_v44 = vpop.permute.xlu1 %1060  ;;  %v1067_v45 = vpop.permute.xlu0 %1066 }
  0xc7   :  { %v1072_v47 = vsel %vm1068_vm7, %v1061_v44, %v1063_v42  ;;  %v1074_v48 = vsel %vm1068_vm7, %v1065_v41, %v1067_v45  ;;  %v1071_v58 = vsel %vm1068_vm7, %v1059_v36, %v1061_v44  ;;  %v1576_v44 = vrot.slane %v1571_v40, %v1575_v37  ;;  %v1681_v37 = vld [vmem:[%s2273_s4] sm:$0xff] }
  0xc8   :  { %1768 = vmatmul.mubr.msk.bf16.vlgmr.msra.gmra.mrb[4].mxu1 %vm70_vm2, %v2137_v10  ;;  %1783 = vmatprep.subr.msk.bf16.mxu0 %vm74_vm1, %v1074_v48  ;;  %v1085_v63 = vsel %vm74_vm1, %v1071_v58, 0  ;;  %v1580_v45 = vrot.slane %v1571_v40, %v1579_v39  ;;  %v1595_v58 = vsub.s32 5, %v1574_v35 }
  0xc9   :  { %965 = vmatpush1.bf16.msra.mxu1 %v912_v49  ;;  %996 = vmatprep.mubr.bf16.mxu1 %v1917_v2  ;;  %v1591_v49 = vsub.s32 4, %v1574_v35 }
  0xca   :  { %v1228_v52 = vpop.permute.xlu0 %1227  ;;  %1781 = vmatprep.subr.msk.bf16.mxu1 %vm74_vm1, %v1072_v47  ;;  %v1230_v53 = vpop.permute.xlu1 %1229  ;;  %v1587_v47 = vsub.s32 3, %v1574_v35 }
  0xcb   :  { %v1242_v56 = vsel %vm1241_vm8, %v1228_v52, %v1230_v53 }
  0xcc   :  { %1780 = vmatmul.mubr.msk.bf16.vlgmr.msra.gmra.mrb[0].mxu0 %vm70_vm2, %v1778_v50  ;;  %v1252_v59 = vsel %vm74_vm1, %v1242_v56, 0 }
  0xcd   :  { %1179 = vmatpush1.bf16.msra.mxu0 %v1091_v51  ;;  %1210 = vmatprep.mubr.bf16.mxu0 %v1917_v2 }
  0xce   :  { %v1232_v54 = vpop.permute.xlu0 %1231  ;;  %v1236_v55 = vpop.permute.xlu1 %1235 }
  0xcf   :  { %v1243_v57 = vsel %vm1241_vm8, %v1230_v53, %v1232_v54 }
  0xd0   :  { %1786 = vmatprep.subr.msk.bf16.mxu0 %vm74_vm1, %v1243_v57  ;;  %v1588_v57 = vrot.slane %v1571_v40, %v1587_v47 }
  0xd2   :  { %v1238_v60 = vpop.permute.xlu0 %1237  ;;  %v1240_v61 = vpop.permute.xlu1 %1239 }
  0xd3   :  { %v1247_v62 = vsel %vm1241_vm8, %v1238_v60, %v1240_v61  ;;  %v1246_v3 = vsel %vm1241_vm8, %v1236_v55, %v1238_v60 }
  0xd4   :  { %1775 = vmatmul.mubr.msk.bf16.vlgmr.msra.gmra.mrb[4].mxu1 %vm70_vm2, %v1771_v30  ;;  %1784 = vmatmul.mubr.msk.bf16.vlgmr.msra.gmra.mrb[4].mxu0 %vm70_vm2, %v1778_v50  ;;  %v1264_v6 = vsel %vm74_vm1, %v1246_v3, 0 }
  0xd5   :  { %1138 = vmatpush1.bf16.msra.mxu1 %v1085_v63  ;;  %1270 = vmatpush1.bf16.msra.mxu0 %v1252_v59 }
  0xd6   :  { %v1234_v0 = vpop.permute.xlu0 %1233  ;;  %1301 = vmatprep.mubr.bf16.mxu0 %v1917_v2  ;;  %1790 = vmatprep.subr.msk.bf16.mxu0 %vm74_vm1, %v1247_v62  ;;  %v1401_v1 = vpop.permute.xlu1 %1400  ;;  %v1592_v62 = vrot.slane %v1571_v40, %v1591_v49 }
  0xd7   :  { %v1245_v4 = vsel %vm1241_vm8, %v1234_v0, %v1236_v55  ;;  %1169 = vmatprep.mubr.bf16.mxu1 %v1917_v2  ;;  %v1244_v9 = vsel %vm1241_vm8, %v1232_v54, %v1234_v0  ;;  %v1584_v54 = vrot.slane %v1571_v40, %v1583_v46 }
  0xd8   :  { %1788 = vmatprep.subr.msk.bf16.mxu1 %vm74_vm1, %v1245_v4  ;;  %v1258_v11 = vsel %vm74_vm1, %v1244_v9, 0  ;;  %v1596_v4 = vrot.slane %v1571_v40, %v1595_v58 }
  0xda   :  { %v1405_v7 = vpop.permute.xlu1 %1404  ;;  %v1403_v8 = vpop.permute.xlu0 %1402 }
  0xdb   :  { %v1416_v10 = vsel %vm1414_vm9, %v1403_v8, %v1405_v7  ;;  %v1415_v14 = vsel %vm1414_vm9, %v1401_v1, %v1403_v8 }
  0xdc   :  { %1787 = vmatmul.mubr.msk.bf16.vlgmr.msra.gmra.mrb[0].mxu0 %vm70_vm2, %v1785_v5  ;;  %v1425_v16 = vsel %vm74_vm1, %v1415_v14, 0 }
  0xdd   :  { %1352 = vmatpush1.bf16.msra.mxu0 %v1264_v6  ;;  %1383 = vmatprep.mubr.bf16.mxu0 %v1917_v2 }
  0xde   :  { %1793 = vmatprep.subr.msk.bf16.mxu0 %vm74_vm1, %v1416_v10  ;;  %v1409_v12 = vpop.permute.xlu1 %1408  ;;  %v1407_v13 = vpop.permute.xlu0 %1406 }
  0xdf   :  { %v1418_v15 = vsel %vm1414_vm9, %v1407_v13, %v1409_v12  ;;  %v1417_v20 = vsel %vm1414_vm9, %v1405_v7, %v1407_v13 }
  0xe0   :  { %1782 = vmatmul.mubr.msk.bf16.vlgmr.msra.gmra.mrb[4].mxu1 %vm70_vm2, %v1778_v50  ;;  %v1431_v23 = vsel %vm74_vm1, %v1417_v20, 0 }
  0xe1   :  { %1311 = vmatpush1.bf16.msra.mxu1 %v1258_v11  ;;  %1342 = vmatprep.mubr.bf16.mxu1 %v1917_v2 }
  0xe2   :  { %v1413_v17 = vpop.permute.xlu1 %1412  ;;  %v1411_v18 = vpop.permute.xlu0 %1410  ;;  %1795 = vmatprep.subr.msk.bf16.mxu1 %vm74_vm1, %v1418_v15 }
  0xe3   :  { %v1420_v19 = vsel %vm1414_vm9, %v1411_v18, %v1413_v17  ;;  %v1419_v21 = vsel %vm1414_vm9, %v1409_v12, %v1411_v18  ;;  %v1651_v12 = vld [vmem:[%s2272_s2] sm:$0xff] }
  0xe4   :  { %1791 = vmatmul.mubr.msk.bf16.vlgmr.msra.gmra.mrb[4].mxu0 %vm70_vm2, %v1785_v5  ;;  %v1437_v24 = vsel %vm74_vm1, %v1419_v21, 0 }
  0xe5   :  { %1443 = vmatpush1.bf16.msra.mxu0 %v1425_v16  ;;  %1474 = vmatprep.mubr.bf16.mxu0 %v1917_v2 }
  0xe6   :  { %1797 = vmatprep.subr.msk.bf16.mxu0 %vm74_vm1, %v1420_v19 }
  0xec   :  { %1789 = vmatmul.mubr.msk.bf16.vlgmr.msra.gmra.mrb[4].mxu1 %vm70_vm2, %v1785_v5  ;;  %1794 = vmatmul.mubr.msk.bf16.vlgmr.msra.gmra.mrb[0].mxu0 %vm70_vm2, %v1792_v22 }
  0xed   :  { %1484 = vmatpush1.bf16.msra.mxu1 %v1431_v23  ;;  %1525 = vmatpush1.bf16.msra.mxu0 %v1437_v24 }
  0xee   :  { %1556 = vmatprep.mubr.bf16.mxu0 %v1917_v2  ;;  %1515 = vmatprep.mubr.bf16.mxu1 %v1917_v2 }
  0xf4   :  { %1798 = vmatmul.mubr.msk.bf16.vlgmr.msra.gmra.mrb[4].mxu0 %vm70_vm2, %v1792_v22 }
  0xf8   :  { %1796 = vmatmul.mubr.msk.bf16.vlgmr.msra.gmra.mrb[4].mxu1 %vm70_vm2, %v1792_v22 }
 0x16b   :  { %v271_v26 = vpop.f32.mrb[0].mxu1 }
 0x16c   :  { %v273_v27 = vpop.f32.mrb[1].mxu1 }
 0x16d   :  { %v275_v28 = vpop.f32.mrb[2].mxu1 }
 0x16e   :  { %v276_v29 = vpop.f32.mrb[3].mxu1 }
 0x17b   :  { %v353_v30 = vpop.f32.mrb[8].mxu1 }
 0x17c   :  { %v355_v31 = vpop.f32.mrb[9].mxu1 }
 0x17d   :  { %v357_v32 = vpop.f32.mrb[10].mxu1 }
 0x17e   :  { %v358_v33 = vpop.f32.mrb[11].mxu1 }
 0x1bf   :  { %v1476_v2 = vpop.f32.mrb[0].mxu0 }
 0x1c0   :  { %v1805_v36 = vadd.f32 %v1476_v2, %v271_v26  ;;  %v1478_v38 = vpop.f32.mrb[1].mxu0 }
 0x1c1   :  { %v1806_v41 = vadd.f32 %v1478_v38, %v273_v27  ;;  %v1480_v42 = vpop.f32.mrb[2].mxu0  ;;  %v1667_v38 = vpop.permute.xlu1 %1666 }
 0x1c2   :  { %v1481_v43 = vpop.f32.mrb[3].mxu0  ;;  %v1603_v50 = vmul.f32 %v1805_v36, %v1576_v44 }
 0x1c3   :  { %v1604_v51 = vmul.f32 %v1806_v41, %v1580_v45 }
 0x1c5   :  { %v1609_v61 = vadd.f32 %v1604_v51, %v1603_v50 }
 0x1c7   :  { %v1558_v48 = vpop.f32.mrb[4].mxu0 }
 0x1c8   :  { %v1807_v52 = vadd.f32 %v1558_v48, %v353_v30  ;;  %v1560_v53 = vpop.f32.mrb[5].mxu0 }
 0x1c9   :  { %v1808_v55 = vadd.f32 %v1560_v53, %v355_v31  ;;  %v1562_v56 = vpop.f32.mrb[6].mxu0 }
 0x1ca   :  { %v1563_v59 = vpop.f32.mrb[7].mxu0  ;;  %v1607_v7 = vmul.f32 %v1807_v52, %v1592_v62 }
 0x1cb   :  { %v1517_v60 = vpop.f32.mrb[4].mxu1  ;;  %v1608_v9 = vmul.f32 %v1808_v55, %v1596_v4 }
 0x1cc   :  { %v1605_v63 = vmul.f32 %v1584_v54, %v1517_v60  ;;  %v1519_v0 = vpop.f32.mrb[5].mxu1 }
 0x1cd   :  { %v1606_v1 = vmul.f32 %v1588_v57, %v1519_v0  ;;  %v1521_v3 = vpop.f32.mrb[6].mxu1 }
 0x1ce   :  { %v1610_v5 = vadd.f32 %v1609_v61, %v1605_v63  ;;  %v1522_v6 = vpop.f32.mrb[7].mxu1 }
 0x1d0   :  { %v1611_v8 = vadd.f32 %v1610_v5, %v1606_v1 }
 0x1d2   :  { %v1612_v10 = vadd.f32 %v1611_v8, %v1607_v7 }
 0x1d4   :  { %v1613_v11 = vadd.f32 %v1612_v10, %v1608_v9 }
 0x1d6   :  { %1614 = vadd.xlane.f32.xlu0 %v1613_v11 }
 0x1ec   :  { %1654 = vperm.xlu0 %1906, %v1651_v12  }
 0x263   :  { %v1615_v13 = vpop.xlane.xlu0 %1614 }
 0x264   :  { %v1616_v14 = vmul.f32 0.001953125, %v1615_v13 }
 0x266   :  { %v1617_v15 = vsub.f32 %v1805_v36, %v1616_v14  ;;  %v1618_v16 = vsub.f32 %v1806_v41, %v1616_v14  ;;  %v1619_v17 = vsub.f32 %v1517_v60, %v1616_v14  ;;  %v1620_v18 = vsub.f32 %v1519_v0, %v1616_v14 }
 0x267   :  { %v1621_v19 = vsub.f32 %v1807_v52, %v1616_v14  ;;  %v1622_v23 = vsub.f32 %v1808_v55, %v1616_v14 }
 0x268   :  { %v1623_v20 = vmul.f32 %v1617_v15, %v1576_v44  ;;  %v1624_v21 = vmul.f32 %v1618_v16, %v1580_v45  ;;  %v1625_v22 = vmul.f32 %v1619_v17, %v1584_v54  ;;  %v1626_v24 = vmul.f32 %v1620_v18, %v1588_v57 }
 0x269   :  { %v1627_v27 = vmul.f32 %v1621_v19, %v1592_v62  ;;  %v1628_v30 = vmul.f32 %v1622_v23, %v1596_v4 }
 0x26a   :  { %v1629_v25 = vmul.f32 %v1623_v20, %v1623_v20  ;;  %v1630_v26 = vmul.f32 %v1624_v21, %v1624_v21  ;;  %v1631_v28 = vmul.f32 %v1625_v22, %v1625_v22  ;;  %v1632_v31 = vmul.f32 %v1626_v24, %v1626_v24 }
 0x26b   :  { %v1633_v33 = vmul.f32 %v1627_v27, %v1627_v27  ;;  %v1634_v35 = vmul.f32 %v1628_v30, %v1628_v30  ;;  %v1655_v43 = vpop.permute.xlu0 %1654 }
 0x26c   :  { %v1635_v29 = vadd.f32 %v1630_v26, %v1629_v25 }
 0x26e   :  { %v1636_v32 = vadd.f32 %v1635_v29, %v1631_v28 }
 0x270   :  { %v1637_v34 = vadd.f32 %v1636_v32, %v1632_v31 }
 0x272   :  { %v1638_v2 = vadd.f32 %v1637_v34, %v1633_v33 }
 0x274   :  { %v1639_v36 = vadd.f32 %v1638_v2, %v1634_v35 }
 0x276   :  { %1640 = vadd.xlane.f32.xlu1 %v1639_v36 }
 0x287   :  { %1684 = vperm.xlu1 %1907, %v1681_v37  }
 0x303   :  { %v1641_v39 = vpop.xlane.xlu1 %1640 }
 0x304   :  { %v1642_v40 = vmul.f32 0.001953125, %v1641_v39 }
 0x306   :  { %v1643_v41 = vadd.f32 1e-05, %v1642_v40 }
 0x307   :  { %v1685_v62 = vpop.permute.xlu1 %1684 }
 0x308   :  { %1915 = vrsqrt.f32 %v1643_v41 }
 0x312   :  { %v1916_v42 = vpop.eup %1915 }
 0x313   :  { %v1645_v44 = vmul.f32 %v1916_v42, %v1617_v15  ;;  %v1646_v45 = vmul.f32 %v1916_v42, %v1618_v16  ;;  %v1647_v46 = vmul.f32 %v1916_v42, %v1619_v17  ;;  %v1648_v47 = vmul.f32 %v1916_v42, %v1620_v18 }
 0x314   :  { %v1649_v48 = vmul.f32 %v1916_v42, %v1621_v19  ;;  %v1650_v49 = vmul.f32 %v1916_v42, %v1622_v23 }
 0x315   :  { %v1657_v50 = vmul.f32 %v1655_v43, %v1645_v44  ;;  %v1658_v51 = vmul.f32 %v1655_v43, %v1646_v45  ;;  %v1659_v52 = vmul.f32 %v1655_v43, %v1647_v46  ;;  %v1660_v53 = vmul.f32 %v1655_v43, %v1648_v47 }
 0x316   :  { %v1661_v54 = vmul.f32 %v1655_v43, %v1649_v48  ;;  %v1662_v55 = vmul.f32 %v1655_v43, %v1650_v49 }
 0x317   :  { %v1669_v56 = vadd.f32 %v1667_v38, %v1657_v50  ;;  %v1670_v57 = vadd.f32 %v1667_v38, %v1658_v51  ;;  %v1671_v58 = vadd.f32 %v1667_v38, %v1659_v52  ;;  %v1672_v59 = vadd.f32 %v1667_v38, %v1660_v53 }
 0x318   :  { %v1673_v60 = vadd.f32 %v1667_v38, %v1661_v54  ;;  %v1674_v61 = vadd.f32 %v1667_v38, %v1662_v55 }
 0x319   :  { %vm1675_vm10 = vcmp.ge.f32.partialorder %v1669_v56, 0.0  ;;  %vm1676_vm11 = vcmp.ge.f32.partialorder %v1670_v57, 0.0  ;;  %vm1677_vm12 = vcmp.ge.f32.partialorder %v1671_v58, 0.0  ;;  %vm1678_vm13 = vcmp.ge.f32.partialorder %v1672_v59, 0.0 }
 0x31a   :  { %vm1679_vm14 = vcmp.ge.f32.partialorder %v1673_v60, 0.0  ;;  %vm1680_vm15 = vcmp.ge.f32.partialorder %v1674_v61, 0.0  ;;  %v1687_v63 = vmul.f32 %v1685_v62, %v1669_v56  ;;  %v1688_v0 = vmul.f32 %v1685_v62, %v1670_v57 }
 0x31b   :  { %v1689_v1 = vmul.f32 %v1685_v62, %v1671_v58  ;;  %v1690_v3 = vmul.f32 %v1685_v62, %v1672_v59  ;;  %v1691_v4 = vmul.f32 %v1685_v62, %v1673_v60  ;;  %v1692_v5 = vmul.f32 %v1685_v62, %v1674_v61 }
 0x31c   :  { %v1693_v6 = vsel %vm1675_vm10, %v1669_v56, %v1687_v63  ;;  %v1694_v7 = vsel %vm1676_vm11, %v1670_v57, %v1688_v0 }
 0x31d   :  { %v1695_v8 = vsel %vm1677_vm12, %v1671_v58, %v1689_v1  ;;  %v1696_v9 = vsel %vm1678_vm13, %v1672_v59, %v1690_v3  ;;  %v1697_v10 = vsel %vm1679_vm14, %v1673_v60, %v1691_v4  ;;  %v1698_v11 = vsel %vm1680_vm15, %v1674_v61, %v1692_v5 }
 0x31e   :  { %v1802_v12 = vpack.c.bf16 %v1694_v7, %v1693_v6  ;;  %v1803_v13 = vpack.c.bf16 %v1696_v9, %v1695_v8  ;;  %v1804_v14 = vpack.c.bf16 %v1698_v11, %v1697_v10 }
 0x320   :  { %1723 = vst [vmem:[%s2274_s6] sm:$0xff] %v1802_v12  ;;  %1724 = vst [vmem:[%s2274_s6 + $0x8] sm:$0xff] %v1803_v13 }
 0x321   :  { %1725 = vst [vmem:[%s2274_s6 + $0x10] sm:$0xff] %v1804_v14 }

// kernel: _lambda_.8
= control target key start
LH: loop header
LB: loop body
LE: loop exit
PB: predicated region body
PF: predicated region fallthrough
CT: control target
= control target key end

     0   :  { %v36_v0 = vlaneseq  ;;  %v2198_v2 = vmov 1983009808   ;;  %v2199_v10 = vmov 0   ;;  %s2200_s7 = smov 127   ;;  %s2201_s10 = smov 126   ;;  %vm79_vm0 = vcmask 1039360   ;;  %s2603_s0 = inlined_call_operand.vmem [shape: bf16[1,4,806], index: 0, kind: input, shape index: {}]   ;;  %s2604_s1 = inlined_call_operand.vmem [shape: bf16[9,8,4], index: 1, kind: input, shape index: {}]   ;;  %s2605_s3 = inlined_call_operand.vmem [shape: f32[8,1], index: 3, kind: input, shape index: {}]   ;;  %s2606_s5 = inlined_call_operand.vmem [shape: f32[1,768], index: 5, kind: input, shape index: {}]   ;;  %s2607_s2 = inlined_call_operand.vmem [shape: f32[8,1], index: 2, kind: input, shape index: {}]   ;;  %s2608_s4 = inlined_call_operand.vmem [shape: f32[8,1], index: 4, kind: input, shape index: {}]   ;;  %s2609_s6 = inlined_call_operand.vmem [shape: bf16[8,768], index: 6, kind: output, shape index: {}]  }
   0x1   :  { %v24_v1 = vld [vmem:[%s2603_s0] sm:$0xff]  ;;  %v34_v3 = vunpack.c.l.s4 %v2198_v2  ;;  %v27_v8 = vld [vmem:[%s2603_s0 + $0x8] sm:$0x3f]  ;;  %141 = vmatprep.mubr.bf16.mxu1 %v2199_v10  ;;  %498 = vmatprep.mubr.bf16.mxu0 %v2199_v10  ;;  %s2202_s13 = smov 110   ;;  %s2203_s16 = smov 109   ;;  %vm90_vm1 = vcmask 1041408  }
   0x2   :  { %v2246_v4 = vshrl.u32 %v36_v0, 7  ;;  %v32_v6 = vcombine.high %v24_v1, %v24_v1  ;;  %v1226_v9 = vld [vmem:[%s2603_s0 + $0x8] sm:$0x3f]  ;;  %2186 = vset.pattern.permute.xlu1 %v2199_v10  ;;  %2185 = vset.pattern.permute.xlu0 %v2199_v10  ;;  %v49_v27 = vcombine.high %v27_v8, %v27_v8  ;;  %s2204_s17 = smov 108   ;;  %s2205_s20 = smov 92   ;;  %vm86_vm2 = vcmask 31744  }
   0x3   :  { %v35_v5 = vunpack.c.0.s8 %v34_v3  ;;  %v1248_v13 = vcombine.high %v1226_v9, %v1226_v9  ;;  %v1436_v14 = vld [vmem:[%s2603_s0 + $0x8] sm:$0x3f]  ;;  %s2206_s21 = smov 91   ;;  %s2207_s22 = smov 90   ;;  %v2014_v61 = vld [vmem:[%s2604_s1 + $0x4] sm:$0xf] }
   0x4   :  { %v1646_v15 = vld [vmem:[%s2603_s0 + $0x8] sm:$0x3f]  ;;  %v1458_v16 = vcombine.high %v1436_v14, %v1436_v14  ;;  %vm438_vm3 = vcmask 1031168   ;;  %vm648_vm4 = vcmask 900096   ;;  %vm858_vm5 = vcmask 891904  }
   0x5   :  { %v2249_v7 = vsub.s32 %v35_v5, %v2246_v4  ;;  %v1668_v17 = vcombine.high %v1646_v15, %v1646_v15  ;;  %v386_v30 = vld [vmem:[%s2603_s0 + $0x8] sm:$0x3f]  ;;  %vm1068_vm6 = vcmask 883712   ;;  %vm1278_vm7 = vcmask 752640  }
   0x6   :  { %v408_v33 = vcombine.high %v386_v30, %v386_v30  ;;  %v596_v35 = vld [vmem:[%s2603_s0 + $0x8] sm:$0x3f]  ;;  %vm1488_vm8 = vcmask 744448   ;;  %vm1698_vm9 = vcmask 736256  }
   0x7   :  { %v2260_v11 = vrot.slane %v24_v1, %v2249_v7  ;;  %v2263_v12 = vrot.slane %v32_v6, %v2249_v7  ;;  %v56_v20 = vrot.slane %v27_v8, %v2249_v7  ;;  %v2285_v21 = vrot.slane %v1226_v9, %v2249_v7  ;;  %v806_v40 = vld [vmem:[%s2603_s0 + $0x8] sm:$0x3f] }
   0x8   :  { %v2288_v22 = vrot.slane %v1248_v13, %v2249_v7  ;;  %v2291_v23 = vrot.slane %v1436_v14, %v2249_v7  ;;  %v2294_v24 = vrot.slane %v1458_v16, %v2249_v7  ;;  %v2297_v25 = vrot.slane %v1646_v15, %v2249_v7  ;;  %v1016_v45 = vld [vmem:[%s2603_s0 + $0x8] sm:$0x3f] }
   0x9   :  { %65 = vrot.lane.b32.xlu0 %v2260_v11, %s2200_s7  ;;  %69 = vrot.lane.b32.xlu1 %v2263_v12, %s2200_s7  ;;  %v2277_v18 = vcombine.high %v2260_v11, %v2260_v11  ;;  %v2281_v19 = vcombine.high %v2263_v12, %v2263_v12  ;;  %v64_v26 = vcombine.high %v56_v20, %v56_v20  ;;  %v2393_v16 = vld [vmem:[%s2604_s1 + $0x8] sm:$0xf] }
   0xa   :  { %v2302_v28 = vrot.slane %v1668_v17, %v2249_v7  ;;  %v63_v29 = vrot.slane %v49_v27, %v2249_v7  ;;  %v415_v31 = vrot.slane %v386_v30, %v2249_v7  ;;  %v422_v34 = vrot.slane %v408_v33, %v2249_v7 }
   0xb   :  { %v625_v36 = vrot.slane %v596_v35, %v2249_v7  ;;  %v618_v38 = vcombine.high %v596_v35, %v596_v35  ;;  %v835_v41 = vrot.slane %v806_v40, %v2249_v7  ;;  %v828_v42 = vcombine.high %v806_v40, %v806_v40 }
   0xc   :  { %v423_v32 = vcombine.high %v415_v31, %v415_v31  ;;  %v1045_v46 = vrot.slane %v1016_v45, %v2249_v7  ;;  %v1038_v47 = vcombine.high %v1016_v45, %v1016_v45  ;;  %v1263_v50 = vcombine.high %v2285_v21, %v2285_v21 }
   0xd   :  { %67 = vrot.lane.b32.xlu0 %v2277_v18, %s2200_s7  ;;  %71 = vrot.lane.b32.xlu1 %v2281_v19, %s2200_s7  ;;  %v633_v37 = vcombine.high %v625_v36, %v625_v36  ;;  %v632_v39 = vrot.slane %v618_v38, %v2249_v7  ;;  %v843_v43 = vcombine.high %v835_v41, %v835_v41  ;;  %v251_v33 = vsel %vm90_vm1, %v2263_v12, 0 }
   0xe   :  { %v842_v44 = vrot.slane %v828_v42, %v2249_v7  ;;  %v1053_v48 = vcombine.high %v1045_v46, %v1045_v46  ;;  %v1052_v49 = vrot.slane %v1038_v47, %v2249_v7  ;;  %v1473_v51 = vcombine.high %v2291_v23, %v2291_v23 }
   0xf   :  { %v1683_v52 = vcombine.high %v2297_v25, %v2297_v25 }
  0x11   :  { %73 = vrot.lane.b32.xlu0 %v56_v20, %s2200_s7  ;;  %75 = vrot.lane.b32.xlu1 %v64_v26, %s2200_s7 }
  0x15   :  { %77 = vrot.lane.b32.xlu0 %v63_v29, %s2200_s7  ;;  %424 = vrot.lane.b32.xlu1 %v2260_v11, %s2201_s10  ;;  %v2021_v29 = vld.sshfl [vmem:[%s2603_s0 + $0x8] sm:$0x33 pattern:$0x76325410] }
  0x16   :  { %v257_v42 = vsel %vm90_vm1, %v2021_v29, 0 }
  0x19   :  { %426 = vrot.lane.b32.xlu0 %v2277_v18, %s2201_s10  ;;  %428 = vrot.lane.b32.xlu1 %v2263_v12, %s2201_s10 }
  0x1d   :  { %432 = vrot.lane.b32.xlu0 %v415_v31, %s2201_s10  ;;  %434 = vrot.lane.b32.xlu1 %v423_v32, %s2201_s10 }
  0x21   :  { %436 = vrot.lane.b32.xlu0 %v422_v34, %s2201_s10  ;;  %634 = vrot.lane.b32.xlu1 %v2260_v11, %s2202_s13  ;;  %v240_v34 = vcombine.high %v2021_v29, %v2021_v29 }
  0x25   :  { %636 = vrot.lane.b32.xlu0 %v2277_v18, %s2202_s13  ;;  %638 = vrot.lane.b32.xlu1 %v2263_v12, %s2202_s13 }
  0x29   :  { %642 = vrot.lane.b32.xlu0 %v625_v36, %s2202_s13  ;;  %644 = vrot.lane.b32.xlu1 %v633_v37, %s2202_s13  ;;  %v2434_v36 = vld [vmem:[%s2604_s1 + $0xc] sm:$0xf] }
  0x2d   :  { %646 = vrot.lane.b32.xlu0 %v632_v39, %s2202_s13  ;;  %430 = vrot.lane.b32.xlu1 %v2281_v19, %s2201_s10 }
  0x31   :  { %844 = vrot.lane.b32.xlu0 %v2260_v11, %s2203_s16  ;;  %846 = vrot.lane.b32.xlu1 %v2277_v18, %s2203_s16 }
  0x35   :  { %848 = vrot.lane.b32.xlu0 %v2263_v12, %s2203_s16  ;;  %852 = vrot.lane.b32.xlu1 %v835_v41, %s2203_s16 }
  0x39   :  { %854 = vrot.lane.b32.xlu0 %v843_v43, %s2203_s16  ;;  %856 = vrot.lane.b32.xlu1 %v842_v44, %s2203_s16 }
  0x3d   :  { %640 = vrot.lane.b32.xlu0 %v2281_v19, %s2202_s13  ;;  %1054 = vrot.lane.b32.xlu1 %v2260_v11, %s2204_s17 }
  0x41   :  { %1056 = vrot.lane.b32.xlu0 %v2277_v18, %s2204_s17  ;;  %1058 = vrot.lane.b32.xlu1 %v2263_v12, %s2204_s17 }
  0x45   :  { %850 = vrot.lane.b32.xlu0 %v2281_v19, %s2203_s16  ;;  %1062 = vrot.lane.b32.xlu1 %v1045_v46, %s2204_s17 }
  0x49   :  { %1064 = vrot.lane.b32.xlu0 %v1053_v48, %s2204_s17  ;;  %1066 = vrot.lane.b32.xlu1 %v1052_v49, %s2204_s17 }
  0x4d   :  { %1264 = vrot.lane.b32.xlu0 %v2260_v11, %s2205_s20  ;;  %1266 = vrot.lane.b32.xlu1 %v2277_v18, %s2205_s20 }
  0x51   :  { %1268 = vrot.lane.b32.xlu0 %v2263_v12, %s2205_s20  ;;  %1060 = vrot.lane.b32.xlu1 %v2281_v19, %s2204_s17 }
  0x55   :  { %1272 = vrot.lane.b32.xlu0 %v2285_v21, %s2205_s20  ;;  %1274 = vrot.lane.b32.xlu1 %v1263_v50, %s2205_s20 }
  0x59   :  { %1276 = vrot.lane.b32.xlu0 %v2288_v22, %s2205_s20  ;;  %1270 = vrot.lane.b32.xlu1 %v2281_v19, %s2205_s20 }
  0x5d   :  { %1474 = vrot.lane.b32.xlu0 %v2260_v11, %s2206_s21  ;;  %1476 = vrot.lane.b32.xlu1 %v2277_v18, %s2206_s21 }
  0x61   :  { %1478 = vrot.lane.b32.xlu0 %v2263_v12, %s2206_s21  ;;  %1482 = vrot.lane.b32.xlu1 %v2291_v23, %s2206_s21 }
  0x65   :  { %1484 = vrot.lane.b32.xlu0 %v1473_v51, %s2206_s21  ;;  %1486 = vrot.lane.b32.xlu1 %v2294_v24, %s2206_s21 }
  0x69   :  { %1480 = vrot.lane.b32.xlu0 %v2281_v19, %s2206_s21  ;;  %1684 = vrot.lane.b32.xlu1 %v2260_v11, %s2207_s22 }
  0x6d   :  { %1686 = vrot.lane.b32.xlu0 %v2277_v18, %s2207_s22  ;;  %1688 = vrot.lane.b32.xlu1 %v2263_v12, %s2207_s22 }
  0x71   :  { %1690 = vrot.lane.b32.xlu0 %v2281_v19, %s2207_s22  ;;  %1692 = vrot.lane.b32.xlu1 %v2297_v25, %s2207_s22  ;;  %v245_v25 = vsel %vm90_vm1, %v2260_v11, 0 }
  0x75   :  { %1694 = vrot.lane.b32.xlu0 %v1683_v52, %s2207_s22  ;;  %1696 = vrot.lane.b32.xlu1 %v2302_v28, %s2207_s22 }
  0x7b   :  { %v66_v53 = vpop.permute.xlu0 %65  ;;  %v70_v54 = vpop.permute.xlu1 %69 }
  0x7f   :  { %v68_v55 = vpop.permute.xlu0 %67  ;;  %v72_v56 = vpop.permute.xlu1 %71 }
  0x80   :  { %v81_v57 = vsel %vm79_vm0, %v68_v55, %v70_v54  ;;  %v80_v58 = vsel %vm79_vm0, %v66_v53, %v68_v55  ;;  %v82_v60 = vsel %vm79_vm0, %v70_v54, %v72_v56  ;;  %v2466_v55 = vld [vmem:[%s2604_s1 + $0x10] sm:$0xf] }
  0x81   :  { %2015 = vmatprep.subr.msk.bf16.mxu1 %vm90_vm1, %v81_v57  ;;  %v92_v59 = vsel %vm90_vm1, %v80_v58, 0  ;;  %v98_v1 = vsel %vm90_vm1, %v82_v60, 0 }
  0x82   :  { %110 = vmatpush1.bf16.msra.mxu1 %v92_v59 }
  0x83   :  { %v74_v62 = vpop.permute.xlu0 %73  ;;  %v76_v63 = vpop.permute.xlu1 %75 }
  0x84   :  { %v83_v0 = vsel %vm79_vm0, %v72_v56, %v74_v62  ;;  %v84_v6 = vsel %vm79_vm0, %v74_v62, %v76_v63 }
  0x85   :  { %2016 = vmatmul.mubr.msk.bf16.vlgmr.msra.gmra.mrb[0].mxu1 %vm86_vm2, %v2014_v61  ;;  %2017 = vmatprep.subr.msk.bf16.mxu1 %vm90_vm1, %v83_v0  ;;  %v104_v14 = vsel %vm90_vm1, %v84_v6, 0 }
  0x86   :  { %151 = vmatpush1.bf16.msra.mxu1 %v98_v1  ;;  %182 = vmatprep.mubr.bf16.mxu1 %v2199_v10 }
  0x87   :  { %v78_v2 = vpop.permute.xlu0 %77  ;;  %v425_v3 = vpop.permute.xlu1 %424 }
  0x88   :  { %v85_v5 = vsel %vm79_vm0, %v76_v63, %v78_v2 }
  0x89   :  { %2019 = vmatprep.subr.msk.bf16.mxu1 %vm90_vm1, %v85_v5 }
  0x8b   :  { %v427_v7 = vpop.permute.xlu0 %426  ;;  %v2381_v8 = vpop.permute.xlu1 %428 }
  0x8c   :  { %v440_v9 = vsel %vm438_vm3, %v427_v7, %v2381_v8  ;;  %v439_v13 = vsel %vm438_vm3, %v425_v3, %v427_v7 }
  0x8d   :  { %2018 = vmatmul.mubr.msk.bf16.vlgmr.msra.gmra.mrb[4].mxu1 %vm86_vm2, %v2014_v61  ;;  %2029 = vmatprep.subr.msk.bf16.mxu0 %vm90_vm1, %v440_v9  ;;  %v449_v15 = vsel %vm90_vm1, %v439_v13, 0 }
  0x8e   :  { %192 = vmatpush1.bf16.msra.mxu1 %v104_v14  ;;  %467 = vmatpush1.bf16.msra.mxu0 %v449_v15  ;;  %v2049_v15 = vld [vmem:[%s2604_s1 + $0x14] sm:$0xf] }
  0x8f   :  { %v433_v17 = vpop.permute.xlu0 %432  ;;  %v435_v20 = vpop.permute.xlu1 %434  ;;  %223 = vmatprep.mubr.bf16.mxu1 %v2199_v10  ;;  %2022 = vmatprep.subr.msk.bf16.mxu1 %vm90_vm1, %v2277_v18 }
  0x90   :  { %v443_v21 = vsel %vm438_vm3, %v433_v17, %v435_v20 }
  0x91   :  { %2030 = vmatmul.mubr.msk.bf16.vlgmr.msra.gmra.mrb[0].mxu0 %vm86_vm2, %v2393_v16  ;;  %v461_v22 = vsel %vm90_vm1, %v443_v21, 0 }
  0x92   :  { %580 = vmatprep.mubr.bf16.mxu0 %v2199_v10 }
  0x93   :  { %v437_v23 = vpop.permute.xlu0 %436  ;;  %v635_v24 = vpop.permute.xlu1 %634 }
  0x94   :  { %v444_v26 = vsel %vm438_vm3, %v435_v20, %v437_v23 }
  0x95   :  { %2020 = vmatmul.mubr.msk.bf16.vlgmr.msra.gmra.mrb[8].mxu1 %vm86_vm2, %v2014_v61  ;;  %2033 = vmatprep.subr.msk.bf16.mxu0 %vm90_vm1, %v444_v26 }
  0x96   :  { %263 = vmatpush1.bf16.msra.mxu1 %v245_v25  ;;  %549 = vmatpush1.bf16.msra.mxu0 %v461_v22 }
  0x97   :  { %v637_v18 = vpop.permute.xlu0 %636  ;;  %v2408_v27 = vpop.permute.xlu1 %638  ;;  %294 = vmatprep.mubr.bf16.mxu1 %v2199_v10  ;;  %2024 = vmatprep.subr.msk.bf16.mxu1 %vm90_vm1, %v2281_v19  ;;  %v26_v19 = vld [vmem:[%s2604_s1] sm:$0xf] }
  0x98   :  { %v649_v28 = vsel %vm648_vm4, %v635_v24, %v637_v18  ;;  %v650_v11 = vsel %vm648_vm4, %v637_v18, %v2408_v27 }
  0x99   :  { %v659_v30 = vsel %vm90_vm1, %v649_v28, 0  ;;  %2034 = vmatmul.mubr.msk.bf16.vlgmr.msra.gmra.mrb[4].mxu0 %vm86_vm2, %v2393_v16  ;;  %2036 = vmatprep.subr.msk.bf16.mxu0 %vm90_vm1, %v650_v11 }
  0x9a   :  { %677 = vmatpush1.bf16.msra.mxu0 %v659_v30  ;;  %708 = vmatprep.mubr.bf16.mxu0 %v2199_v10 }
  0x9b   :  { %v643_v31 = vpop.permute.xlu0 %642  ;;  %v645_v32 = vpop.permute.xlu1 %644 }
  0x9c   :  { %v653_v35 = vsel %vm648_vm4, %v643_v31, %v645_v32 }
  0x9d   :  { %2023 = vmatmul.mubr.msk.bf16.vlgmr.msra.gmra.mrb[0].mxu1 %vm86_vm2, %v26_v19  ;;  %v671_v37 = vsel %vm90_vm1, %v653_v35, 0 }
  0x9e   :  { %304 = vmatpush1.bf16.msra.mxu1 %v251_v33  ;;  %335 = vmatprep.mubr.bf16.mxu1 %v2199_v10 }
  0x9f   :  { %v647_v38 = vpop.permute.xlu0 %646  ;;  %v431_v39 = vpop.permute.xlu1 %430  ;;  %2026 = vmatprep.subr.msk.bf16.mxu1 %vm90_vm1, %v240_v34  ;;  %v2056_v34 = vld [vmem:[%s2604_s1 + $0x18] sm:$0xf] }
  0xa0   :  { %v654_v12 = vsel %vm648_vm4, %v645_v32, %v647_v38  ;;  %v442_v44 = vsel %vm438_vm3, %v431_v39, %v433_v17  ;;  %v441_v49 = vsel %vm438_vm3, %v2381_v8, %v431_v39 }
  0xa1   :  { %2037 = vmatmul.mubr.msk.bf16.vlgmr.msra.gmra.mrb[0].mxu0 %vm86_vm2, %v2434_v36  ;;  %2040 = vmatprep.subr.msk.bf16.mxu0 %vm90_vm1, %v654_v12  ;;  %v455_v54 = vsel %vm90_vm1, %v441_v49, 0 }
  0xa2   :  { %759 = vmatpush1.bf16.msra.mxu0 %v671_v37  ;;  %790 = vmatprep.mubr.bf16.mxu0 %v2199_v10 }
  0xa3   :  { %v845_v40 = vpop.permute.xlu0 %844  ;;  %v847_v41 = vpop.permute.xlu1 %846 }
  0xa4   :  { %v859_v43 = vsel %vm858_vm5, %v845_v40, %v847_v41 }
  0xa5   :  { %2025 = vmatmul.mubr.msk.bf16.vlgmr.msra.gmra.mrb[4].mxu1 %vm86_vm2, %v26_v19  ;;  %v869_v45 = vsel %vm90_vm1, %v859_v43, 0 }
  0xa6   :  { %345 = vmatpush1.bf16.msra.mxu1 %v257_v42  ;;  %376 = vmatprep.mubr.bf16.mxu1 %v2199_v10 }
  0xa7   :  { %2031 = vmatprep.subr.msk.bf16.mxu1 %vm90_vm1, %v442_v44  ;;  %v849_v46 = vpop.permute.xlu0 %848  ;;  %v853_v47 = vpop.permute.xlu1 %852 }
  0xa8   :  { %v860_v48 = vsel %vm858_vm5, %v847_v41, %v849_v46 }
  0xa9   :  { %2041 = vmatmul.mubr.msk.bf16.vlgmr.msra.gmra.mrb[4].mxu0 %vm86_vm2, %v2434_v36  ;;  %2043 = vmatprep.subr.msk.bf16.mxu0 %vm90_vm1, %v860_v48 }
  0xaa   :  { %887 = vmatpush1.bf16.msra.mxu0 %v869_v45  ;;  %918 = vmatprep.mubr.bf16.mxu0 %v2199_v10 }
  0xab   :  { %v855_v50 = vpop.permute.xlu0 %854  ;;  %v857_v51 = vpop.permute.xlu1 %856 }
  0xac   :  { %v863_v52 = vsel %vm858_vm5, %v853_v47, %v855_v50  ;;  %v864_v53 = vsel %vm858_vm5, %v855_v50, %v857_v51  ;;  %v2063_v51 = vld [vmem:[%s2604_s1 + $0x1c] sm:$0xf] }
  0xad   :  { %2027 = vmatmul.mubr.msk.bf16.vlgmr.msra.gmra.mrb[8].mxu1 %vm86_vm2, %v26_v19  ;;  %2047 = vmatprep.subr.msk.bf16.mxu0 %vm90_vm1, %v864_v53  ;;  %v881_v56 = vsel %vm90_vm1, %v863_v52, 0 }
  0xae   :  { %508 = vmatpush1.bf16.msra.mxu1 %v455_v54  ;;  %539 = vmatprep.mubr.bf16.mxu1 %v2199_v10 }
  0xaf   :  { %v641_v57 = vpop.permute.xlu0 %640  ;;  %v1055_v58 = vpop.permute.xlu1 %1054 }
  0xb0   :  { %v652_v59 = vsel %vm648_vm4, %v641_v57, %v643_v31  ;;  %v651_v60 = vsel %vm648_vm4, %v2408_v27, %v641_v57 }
  0xb1   :  { %2038 = vmatprep.subr.msk.bf16.mxu1 %vm90_vm1, %v652_v59  ;;  %2044 = vmatmul.mubr.msk.bf16.vlgmr.msra.gmra.mrb[0].mxu0 %vm86_vm2, %v2466_v55  ;;  %v665_v1 = vsel %vm90_vm1, %v651_v60, 0 }
  0xb2   :  { %969 = vmatpush1.bf16.msra.mxu0 %v881_v56  ;;  %1000 = vmatprep.mubr.bf16.mxu0 %v2199_v10 }
  0xb3   :  { %v1057_v61 = vpop.permute.xlu0 %1056  ;;  %v1059_v62 = vpop.permute.xlu1 %1058 }
  0xb4   :  { %v1069_v63 = vsel %vm1068_vm6, %v1055_v58, %v1057_v61  ;;  %v1070_v0 = vsel %vm1068_vm6, %v1057_v61, %v1059_v62 }
  0xb5   :  { %2032 = vmatmul.mubr.msk.bf16.vlgmr.msra.gmra.mrb[4].mxu1 %vm86_vm2, %v2393_v16  ;;  %2050 = vmatprep.subr.msk.bf16.mxu0 %vm90_vm1, %v1070_v0  ;;  %v1079_v2 = vsel %vm90_vm1, %v1069_v63, 0 }
  0xb6   :  { %718 = vmatpush1.bf16.msra.mxu1 %v665_v1  ;;  %749 = vmatprep.mubr.bf16.mxu1 %v2199_v10 }
  0xb7   :  { %v851_v3 = vpop.permute.xlu0 %850  ;;  %v1063_v5 = vpop.permute.xlu1 %1062 }
  0xb8   :  { %v862_v6 = vsel %vm858_vm5, %v851_v3, %v853_v47  ;;  %v861_v14 = vsel %vm858_vm5, %v849_v46, %v851_v3 }
  0xb9   :  { %2045 = vmatprep.subr.msk.bf16.mxu1 %vm90_vm1, %v862_v6  ;;  %2048 = vmatmul.mubr.msk.bf16.vlgmr.msra.gmra.mrb[4].mxu0 %vm86_vm2, %v2466_v55  ;;  %v875_v21 = vsel %vm90_vm1, %v861_v14, 0 }
  0xba   :  { %1097 = vmatpush1.bf16.msra.mxu0 %v1079_v2  ;;  %1128 = vmatprep.mubr.bf16.mxu0 %v2199_v10 }
  0xbb   :  { %v1065_v7 = vpop.permute.xlu0 %1064  ;;  %v1067_v8 = vpop.permute.xlu1 %1066 }
  0xbc   :  { %v1073_v9 = vsel %vm1068_vm6, %v1063_v5, %v1065_v7  ;;  %v1074_v13 = vsel %vm1068_vm6, %v1065_v7, %v1067_v8  ;;  %v1947_v8 = vld [vmem:[%s2605_s3] sm:$0xff] }
  0xbd   :  { %2054 = vmatprep.subr.msk.bf16.mxu0 %vm90_vm1, %v1074_v13  ;;  %v1091_v16 = vsel %vm90_vm1, %v1073_v9, 0  ;;  %1950 = vperm.xlu1 %2186, %v1947_v8  }
  0xbf   :  { %v1265_v17 = vpop.permute.xlu0 %1264  ;;  %v1267_v20 = vpop.permute.xlu1 %1266 }
  0xc0   :  { %v1279_v24 = vsel %vm1278_vm7, %v1265_v17, %v1267_v20 }
  0xc1   :  { %2039 = vmatmul.mubr.msk.bf16.vlgmr.msra.gmra.mrb[4].mxu1 %vm86_vm2, %v2434_v36  ;;  %2051 = vmatmul.mubr.msk.bf16.vlgmr.msra.gmra.mrb[0].mxu0 %vm86_vm2, %v2049_v15  ;;  %v1289_v18 = vsel %vm90_vm1, %v1279_v24, 0 }
  0xc2   :  { %928 = vmatpush1.bf16.msra.mxu1 %v875_v21  ;;  %1179 = vmatpush1.bf16.msra.mxu0 %v1091_v16 }
  0xc3   :  { %v1269_v22 = vpop.permute.xlu0 %1268  ;;  %v1061_v23 = vpop.permute.xlu1 %1060  ;;  %1210 = vmatprep.mubr.bf16.mxu0 %v2199_v10  ;;  %959 = vmatprep.mubr.bf16.mxu1 %v2199_v10 }
  0xc4   :  { %v1280_v25 = vsel %vm1278_vm7, %v1267_v20, %v1269_v22  ;;  %v1072_v26 = vsel %vm1068_vm6, %v1061_v23, %v1063_v5  ;;  %v1071_v11 = vsel %vm1068_vm6, %v1059_v62, %v1061_v23  ;;  %v2070_v5 = vld [vmem:[%s2604_s1 + $0x20] sm:$0xf] }
  0xc5   :  { %2052 = vmatprep.subr.msk.bf16.mxu1 %vm90_vm1, %v1072_v26  ;;  %2057 = vmatprep.subr.msk.bf16.mxu0 %vm90_vm1, %v1280_v25  ;;  %v1085_v33 = vsel %vm90_vm1, %v1071_v11, 0  ;;  %v1863_v25 = vsub.s32 1, %v2246_v4  ;;  %v1855_v26 = vld [vmem:[%s2606_s5] sm:$0x3f] }
  0xc7   :  { %v1273_v27 = vpop.permute.xlu0 %1272  ;;  %v1275_v28 = vpop.permute.xlu1 %1274 }
  0xc8   :  { %v1283_v19 = vsel %vm1278_vm7, %v1273_v27, %v1275_v28 }
  0xc9   :  { %2055 = vmatmul.mubr.msk.bf16.vlgmr.msra.gmra.mrb[4].mxu0 %vm86_vm2, %v2049_v15  ;;  %v1301_v35 = vsel %vm90_vm1, %v1283_v19, 0  ;;  %v1871_v19 = vsub.s32 3, %v2246_v4 }
  0xca   :  { %1307 = vmatpush1.bf16.msra.mxu0 %v1289_v18  ;;  %1338 = vmatprep.mubr.bf16.mxu0 %v2199_v10 }
  0xcb   :  { %v1277_v29 = vpop.permute.xlu0 %1276  ;;  %v1271_v30 = vpop.permute.xlu1 %1270 }
  0xcc   :  { %v1284_v31 = vsel %vm1278_vm7, %v1275_v28, %v1277_v29  ;;  %v1282_v32 = vsel %vm1278_vm7, %v1271_v30, %v1273_v27  ;;  %v1281_v41 = vsel %vm1278_vm7, %v1269_v22, %v1271_v30  ;;  %v1864_v29 = vrot.slane %v1855_v26, %v1863_v25 }
  0xcd   :  { %2046 = vmatmul.mubr.msk.bf16.vlgmr.msra.gmra.mrb[4].mxu1 %vm86_vm2, %v2466_v55  ;;  %2061 = vmatprep.subr.msk.bf16.mxu0 %vm90_vm1, %v1284_v31  ;;  %v1295_v46 = vsel %vm90_vm1, %v1281_v41, 0  ;;  %v1867_v30 = vsub.s32 2, %v2246_v4 }
  0xce   :  { %1138 = vmatpush1.bf16.msra.mxu1 %v1085_v33  ;;  %1169 = vmatprep.mubr.bf16.mxu1 %v2199_v10 }
  0xcf   :  { %v1475_v36 = vpop.permute.xlu0 %1474  ;;  %2059 = vmatprep.subr.msk.bf16.mxu1 %vm90_vm1, %v1282_v32  ;;  %v1477_v37 = vpop.permute.xlu1 %1476  ;;  %v1875_v32 = vsub.s32 4, %v2246_v4 }
  0xd0   :  { %v1489_v12 = vsel %vm1488_vm8, %v1475_v36, %v1477_v37 }
  0xd1   :  { %2058 = vmatmul.mubr.msk.bf16.vlgmr.msra.gmra.mrb[0].mxu0 %vm86_vm2, %v2056_v34  ;;  %v1499_v43 = vsel %vm90_vm1, %v1489_v12, 0  ;;  %v1872_v12 = vrot.slane %v1855_v26, %v1871_v19 }
  0xd2   :  { %1389 = vmatpush1.bf16.msra.mxu0 %v1301_v35  ;;  %1420 = vmatprep.mubr.bf16.mxu0 %v2199_v10 }
  0xd3   :  { %v1479_v38 = vpop.permute.xlu0 %1478  ;;  %v1483_v39 = vpop.permute.xlu1 %1482 }
  0xd4   :  { %v1490_v40 = vsel %vm1488_vm8, %v1477_v37, %v1479_v38  ;;  %v1868_v37 = vrot.slane %v1855_v26, %v1867_v30 }
  0xd5   :  { %2064 = vmatprep.subr.msk.bf16.mxu0 %vm90_vm1, %v1490_v40  ;;  %v1879_v40 = vsub.s32 5, %v2246_v4 }
  0xd7   :  { %v1485_v42 = vpop.permute.xlu0 %1484  ;;  %v1487_v44 = vpop.permute.xlu1 %1486 }
  0xd8   :  { %v1494_v45 = vsel %vm1488_vm8, %v1485_v42, %v1487_v44  ;;  %v1493_v50 = vsel %vm1488_vm8, %v1483_v39, %v1485_v42  ;;  %v1876_v44 = vrot.slane %v1855_v26, %v1875_v32 }
  0xd9   :  { %2053 = vmatmul.mubr.msk.bf16.vlgmr.msra.gmra.mrb[4].mxu1 %vm86_vm2, %v2049_v15  ;;  %2062 = vmatmul.mubr.msk.bf16.vlgmr.msra.gmra.mrb[4].mxu0 %vm86_vm2, %v2056_v34  ;;  %v1511_v52 = vsel %vm90_vm1, %v1493_v50, 0 }
  0xda   :  { %1348 = vmatpush1.bf16.msra.mxu1 %v1295_v46  ;;  %1517 = vmatpush1.bf16.msra.mxu0 %v1499_v43 }
  0xdb   :  { %v1481_v47 = vpop.permute.xlu0 %1480  ;;  %1548 = vmatprep.mubr.bf16.mxu0 %v2199_v10  ;;  %2068 = vmatprep.subr.msk.bf16.mxu0 %vm90_vm1, %v1494_v45  ;;  %v1685_v48 = vpop.permute.xlu1 %1684 }
  0xdc   :  { %v1492_v49 = vsel %vm1488_vm8, %v1481_v47, %v1483_v39  ;;  %1379 = vmatprep.mubr.bf16.mxu1 %v2199_v10  ;;  %v1491_v55 = vsel %vm1488_vm8, %v1479_v38, %v1481_v47 }
  0xdd   :  { %2066 = vmatprep.subr.msk.bf16.mxu1 %vm90_vm1, %v1492_v49  ;;  %v1505_v57 = vsel %vm90_vm1, %v1491_v55, 0  ;;  %v1880_v49 = vrot.slane %v1855_v26, %v1879_v40 }
  0xdf   :  { %v1687_v53 = vpop.permute.xlu0 %1686  ;;  %v1689_v54 = vpop.permute.xlu1 %1688 }
  0xe0   :  { %v1700_v56 = vsel %vm1698_vm9, %v1687_v53, %v1689_v54  ;;  %v1699_v60 = vsel %vm1698_vm9, %v1685_v48, %v1687_v53 }
  0xe1   :  { %2065 = vmatmul.mubr.msk.bf16.vlgmr.msra.gmra.mrb[0].mxu0 %vm86_vm2, %v2063_v51  ;;  %v1709_v62 = vsel %vm90_vm1, %v1699_v60, 0 }
  0xe2   :  { %1599 = vmatpush1.bf16.msra.mxu0 %v1511_v52  ;;  %1630 = vmatprep.mubr.bf16.mxu0 %v2199_v10 }
  0xe3   :  { %2071 = vmatprep.subr.msk.bf16.mxu0 %vm90_vm1, %v1700_v56  ;;  %v1691_v58 = vpop.permute.xlu0 %1690  ;;  %v1693_v59 = vpop.permute.xlu1 %1692 }
  0xe4   :  { %v1702_v61 = vsel %vm1698_vm9, %v1691_v58, %v1693_v59  ;;  %v1701_v2 = vsel %vm1698_vm9, %v1689_v54, %v1691_v58 }
  0xe5   :  { %2060 = vmatmul.mubr.msk.bf16.vlgmr.msra.gmra.mrb[4].mxu1 %vm86_vm2, %v2056_v34  ;;  %v1715_v6 = vsel %vm90_vm1, %v1701_v2, 0 }
  0xe6   :  { %1558 = vmatpush1.bf16.msra.mxu1 %v1505_v57  ;;  %1589 = vmatprep.mubr.bf16.mxu1 %v2199_v10 }
  0xe7   :  { %v1695_v63 = vpop.permute.xlu0 %1694  ;;  %v1697_v0 = vpop.permute.xlu1 %1696  ;;  %2073 = vmatprep.subr.msk.bf16.mxu1 %vm90_vm1, %v1702_v61 }
  0xe8   :  { %v1704_v1 = vsel %vm1698_vm9, %v1695_v63, %v1697_v0  ;;  %v1703_v3 = vsel %vm1698_vm9, %v1693_v59, %v1695_v63 }
  0xe9   :  { %2069 = vmatmul.mubr.msk.bf16.vlgmr.msra.gmra.mrb[4].mxu0 %vm86_vm2, %v2063_v51  ;;  %v1721_v7 = vsel %vm90_vm1, %v1703_v3, 0 }
  0xea   :  { %1727 = vmatpush1.bf16.msra.mxu0 %v1709_v62  ;;  %1758 = vmatprep.mubr.bf16.mxu0 %v2199_v10 }
  0xeb   :  { %2075 = vmatprep.subr.msk.bf16.mxu0 %vm90_vm1, %v1704_v1 }
  0xf1   :  { %2067 = vmatmul.mubr.msk.bf16.vlgmr.msra.gmra.mrb[4].mxu1 %vm86_vm2, %v2063_v51  ;;  %2072 = vmatmul.mubr.msk.bf16.vlgmr.msra.gmra.mrb[0].mxu0 %vm86_vm2, %v2070_v5 }
  0xf2   :  { %1768 = vmatpush1.bf16.msra.mxu1 %v1715_v6  ;;  %1809 = vmatpush1.bf16.msra.mxu0 %v1721_v7 }
  0xf3   :  { %1840 = vmatprep.mubr.bf16.mxu0 %v2199_v10  ;;  %1799 = vmatprep.mubr.bf16.mxu1 %v2199_v10  ;;  %v1859_v10 = vsub.s32 0, %v2246_v4  ;;  %v1935_v4 = vld [vmem:[%s2607_s2] sm:$0xff] }
  0xf5   :  { %v1860_v11 = vrot.slane %v1855_v26, %v1859_v10  ;;  %v1965_v10 = vld [vmem:[%s2608_s4] sm:$0xff] }
  0xf9   :  { %2076 = vmatmul.mubr.msk.bf16.vlgmr.msra.gmra.mrb[4].mxu0 %vm86_vm2, %v2070_v5 }
  0xfd   :  { %2074 = vmatmul.mubr.msk.bf16.vlgmr.msra.gmra.mrb[4].mxu1 %vm86_vm2, %v2070_v5 }
 0x170   :  { %v296_v9 = vpop.f32.mrb[0].mxu1 }
 0x171   :  { %v298_v13 = vpop.f32.mrb[1].mxu1 }
 0x172   :  { %v300_v14 = vpop.f32.mrb[2].mxu1 }
 0x173   :  { %v301_v15 = vpop.f32.mrb[3].mxu1 }
 0x180   :  { %v378_v16 = vpop.f32.mrb[8].mxu1 }
 0x181   :  { %v380_v17 = vpop.f32.mrb[9].mxu1 }
 0x182   :  { %v382_v20 = vpop.f32.mrb[10].mxu1 }
 0x183   :  { %v383_v21 = vpop.f32.mrb[11].mxu1 }
 0x1c4   :  { %v1760_v22 = vpop.f32.mrb[0].mxu0 }
 0x1c5   :  { %v2083_v23 = vadd.f32 %v1760_v22, %v296_v9  ;;  %v1762_v24 = vpop.f32.mrb[1].mxu0 }
 0x1c6   :  { %v2084_v18 = vadd.f32 %v1762_v24, %v298_v13  ;;  %v1764_v27 = vpop.f32.mrb[2].mxu0  ;;  %v1951_v24 = vpop.permute.xlu1 %1950 }
 0x1c7   :  { %v1765_v28 = vpop.f32.mrb[3].mxu0  ;;  %v1887_v33 = vmul.f32 %v2083_v23, %v1860_v11 }
 0x1c8   :  { %v1888_v34 = vmul.f32 %v2084_v18, %v1864_v29 }
 0x1ca   :  { %v1893_v43 = vadd.f32 %v1888_v34, %v1887_v33 }
 0x1cc   :  { %v1842_v31 = vpop.f32.mrb[4].mxu0 }
 0x1cd   :  { %v2085_v35 = vadd.f32 %v1842_v31, %v378_v16  ;;  %v1844_v36 = vpop.f32.mrb[5].mxu0 }
 0x1ce   :  { %v2086_v38 = vadd.f32 %v1844_v36, %v380_v17  ;;  %v1846_v39 = vpop.f32.mrb[6].mxu0 }
 0x1cf   :  { %v1847_v41 = vpop.f32.mrb[7].mxu0  ;;  %v1891_v52 = vmul.f32 %v2085_v35, %v1876_v44 }
 0x1d0   :  { %v1801_v42 = vpop.f32.mrb[4].mxu1  ;;  %v1892_v54 = vmul.f32 %v2086_v38, %v1880_v49 }
 0x1d1   :  { %v1889_v45 = vmul.f32 %v1868_v37, %v1801_v42  ;;  %v1803_v46 = vpop.f32.mrb[5].mxu1 }
 0x1d2   :  { %v1890_v47 = vmul.f32 %v1872_v12, %v1803_v46  ;;  %v1805_v48 = vpop.f32.mrb[6].mxu1 }
 0x1d3   :  { %v1894_v50 = vadd.f32 %v1893_v43, %v1889_v45  ;;  %v1806_v51 = vpop.f32.mrb[7].mxu1 }
 0x1d5   :  { %v1895_v53 = vadd.f32 %v1894_v50, %v1890_v47 }
 0x1d7   :  { %v1896_v55 = vadd.f32 %v1895_v53, %v1891_v52 }
 0x1d9   :  { %v1897_v56 = vadd.f32 %v1896_v55, %v1892_v54 }
 0x1db   :  { %1898 = vadd.xlane.f32.xlu0 %v1897_v56 }
 0x1f1   :  { %1938 = vperm.xlu0 %2185, %v1935_v4  }
 0x268   :  { %v1899_v57 = vpop.xlane.xlu0 %1898 }
 0x269   :  { %v1900_v58 = vmul.f32 0.001953125, %v1899_v57 }
 0x26b   :  { %v1901_v59 = vsub.f32 %v2083_v23, %v1900_v58  ;;  %v1902_v60 = vsub.f32 %v2084_v18, %v1900_v58  ;;  %v1903_v61 = vsub.f32 %v1801_v42, %v1900_v58  ;;  %v1904_v62 = vsub.f32 %v1803_v46, %v1900_v58 }
 0x26c   :  { %v1905_v63 = vsub.f32 %v2085_v35, %v1900_v58  ;;  %v1906_v3 = vsub.f32 %v2086_v38, %v1900_v58 }
 0x26d   :  { %v1907_v0 = vmul.f32 %v1901_v59, %v1860_v11  ;;  %v1908_v1 = vmul.f32 %v1902_v60, %v1864_v29  ;;  %v1909_v2 = vmul.f32 %v1903_v61, %v1868_v37  ;;  %v1910_v5 = vmul.f32 %v1904_v62, %v1872_v12 }
 0x26e   :  { %v1911_v8 = vmul.f32 %v1905_v63, %v1876_v44  ;;  %v1912_v14 = vmul.f32 %v1906_v3, %v1880_v49 }
 0x26f   :  { %v1913_v6 = vmul.f32 %v1907_v0, %v1907_v0  ;;  %v1914_v7 = vmul.f32 %v1908_v1, %v1908_v1  ;;  %v1915_v9 = vmul.f32 %v1909_v2, %v1909_v2  ;;  %v1916_v15 = vmul.f32 %v1910_v5, %v1910_v5 }
 0x270   :  { %v1917_v17 = vmul.f32 %v1911_v8, %v1911_v8  ;;  %v1918_v21 = vmul.f32 %v1912_v14, %v1912_v14  ;;  %v1939_v28 = vpop.permute.xlu0 %1938 }
 0x271   :  { %v1919_v13 = vadd.f32 %v1914_v7, %v1913_v6 }
 0x273   :  { %v1920_v16 = vadd.f32 %v1919_v13, %v1915_v9 }
 0x275   :  { %v1921_v20 = vadd.f32 %v1920_v16, %v1916_v15 }
 0x277   :  { %v1922_v22 = vadd.f32 %v1921_v20, %v1917_v17 }
 0x279   :  { %v1923_v23 = vadd.f32 %v1922_v22, %v1918_v21 }
 0x27b   :  { %1924 = vadd.xlane.f32.xlu1 %v1923_v23 }
 0x28c   :  { %1968 = vperm.xlu1 %2186, %v1965_v10  }
 0x308   :  { %v1925_v25 = vpop.xlane.xlu1 %1924 }
 0x309   :  { %v1926_v26 = vmul.f32 0.001953125, %v1925_v25 }
 0x30b   :  { %v1927_v18 = vadd.f32 1e-05, %v1926_v26 }
 0x30c   :  { %v1969_v44 = vpop.permute.xlu1 %1968 }
 0x30d   :  { %2196 = vrsqrt.f32 %v1927_v18 }
 0x317   :  { %v2197_v27 = vpop.eup %2196 }
 0x318   :  { %v1929_v11 = vmul.f32 %v2197_v27, %v1901_v59  ;;  %v1930_v29 = vmul.f32 %v2197_v27, %v1902_v60  ;;  %v1931_v30 = vmul.f32 %v2197_v27, %v1903_v61  ;;  %v1932_v19 = vmul.f32 %v2197_v27, %v1904_v62 }
 0x319   :  { %v1933_v31 = vmul.f32 %v2197_v27, %v1905_v63  ;;  %v1934_v32 = vmul.f32 %v2197_v27, %v1906_v3 }
 0x31a   :  { %v1941_v33 = vmul.f32 %v1939_v28, %v1929_v11  ;;  %v1942_v34 = vmul.f32 %v1939_v28, %v1930_v29  ;;  %v1943_v35 = vmul.f32 %v1939_v28, %v1931_v30  ;;  %v1944_v36 = vmul.f32 %v1939_v28, %v1932_v19 }
 0x31b   :  { %v1945_v37 = vmul.f32 %v1939_v28, %v1933_v31  ;;  %v1946_v38 = vmul.f32 %v1939_v28, %v1934_v32 }
 0x31c   :  { %v1953_v39 = vadd.f32 %v1951_v24, %v1941_v33  ;;  %v1954_v12 = vadd.f32 %v1951_v24, %v1942_v34  ;;  %v1955_v40 = vadd.f32 %v1951_v24, %v1943_v35  ;;  %v1956_v41 = vadd.f32 %v1951_v24, %v1944_v36 }
 0x31d   :  { %v1957_v42 = vadd.f32 %v1951_v24, %v1945_v37  ;;  %v1958_v43 = vadd.f32 %v1951_v24, %v1946_v38 }
 0x31e   :  { %vm1959_vm10 = vcmp.ge.f32.partialorder %v1953_v39, 0.0  ;;  %vm1960_vm11 = vcmp.ge.f32.partialorder %v1954_v12, 0.0  ;;  %vm1961_vm12 = vcmp.ge.f32.partialorder %v1955_v40, 0.0  ;;  %vm1962_vm13 = vcmp.ge.f32.partialorder %v1956_v41, 0.0 }
 0x31f   :  { %vm1963_vm14 = vcmp.ge.f32.partialorder %v1957_v42, 0.0  ;;  %vm1964_vm15 = vcmp.ge.f32.partialorder %v1958_v43, 0.0  ;;  %v1971_v45 = vmul.f32 %v1969_v44, %v1953_v39  ;;  %v1972_v46 = vmul.f32 %v1969_v44, %v1954_v12 }
 0x320   :  { %v1973_v47 = vmul.f32 %v1969_v44, %v1955_v40  ;;  %v1974_v48 = vmul.f32 %v1969_v44, %v1956_v41  ;;  %v1975_v49 = vmul.f32 %v1969_v44, %v1957_v42  ;;  %v1976_v50 = vmul.f32 %v1969_v44, %v1958_v43 }
 0x321   :  { %v1977_v51 = vsel %vm1959_vm10, %v1953_v39, %v1971_v45  ;;  %v1978_v52 = vsel %vm1960_vm11, %v1954_v12, %v1972_v46 }
 0x322   :  { %v1979_v53 = vsel %vm1961_vm12, %v1955_v40, %v1973_v47  ;;  %v1980_v54 = vsel %vm1962_vm13, %v1956_v41, %v1974_v48  ;;  %v1981_v55 = vsel %vm1963_vm14, %v1957_v42, %v1975_v49  ;;  %v1982_v56 = vsel %vm1964_vm15, %v1958_v43, %v1976_v50 }
 0x323   :  { %v2080_v4 = vpack.c.bf16 %v1978_v52, %v1977_v51  ;;  %v2081_v57 = vpack.c.bf16 %v1980_v54, %v1979_v53  ;;  %v2082_v58 = vpack.c.bf16 %v1982_v56, %v1981_v55 }
 0x325   :  { %2007 = vst [vmem:[%s2609_s6] sm:$0xff] %v2080_v4  ;;  %2008 = vst [vmem:[%s2609_s6 + $0x8] sm:$0xff] %v2081_v57 }
 0x326   :  { %2009 = vst [vmem:[%s2609_s6 + $0x10] sm:$0xff] %v2082_v58 }

// kernel: _lambda_.15
= control target key start
LH: loop header
LB: loop body
LE: loop exit
PB: predicated region body
PF: predicated region fallthrough
CT: control target
= control target key end

     0   :  { %v1772_v2 = vmov 0   ;;  %s1773_s4 = smov 127   ;;  %s1774_s27 = smov 126   ;;  %vm63_vm0 = vcmask 1039360   ;;  %vm74_vm1 = vcmask 1043456   ;;  %vm70_vm2 = vcmask 64512   ;;  %s2090_s0 = inlined_call_operand.vmem [shape: bf16[1,8,806], index: 0, kind: input, shape index: {}]   ;;  %s2091_s2 = inlined_call_operand.vmem [shape: f32[8,1], index: 2, kind: input, shape index: {}]   ;;  %s2092_s4 = inlined_call_operand.vmem [shape: f32[8,1], index: 4, kind: input, shape index: {}]   ;;  %s2093_s5 = inlined_call_operand.vmem [shape: f32[1,768], index: 5, kind: input, shape index: {}]   ;;  %s2094_s3 = inlined_call_operand.vmem [shape: f32[8,1], index: 3, kind: input, shape index: {}]   ;;  %s2095_s1 = inlined_call_operand.vmem [shape: bf16[9,8,8], index: 1, kind: input, shape index: {}]   ;;  %s2096_s6 = inlined_call_operand.vmem [shape: bf16[8,768], index: 6, kind: output, shape index: {}]  }
   0x1   :  { %v25_v0 = vld [vmem:[%s2090_s0 + $0x8] sm:$0xff]  ;;  %v24_v1 = vld [vmem:[%s2090_s0] sm:$0xff]  ;;  %125 = vmatprep.mubr.bf16.mxu0 %v1772_v2  ;;  %166 = vmatprep.mubr.bf16.mxu1 %v1772_v2  ;;  %v26_v7 = vld [vmem:[%s2090_s0 + $0x10] sm:$0xff]  ;;  %s1775_s28 = smov 110   ;;  %s1777_s29 = smov 108   ;;  %vm376_vm3 = vcmask 1031168  }
   0x2   :  { %v1824_v3 = vcombine.low %v25_v0, %v25_v0  ;;  %v1826_v4 = vcombine.low %v24_v1, %v24_v1  ;;  %1740 = vset.pattern.permute.xlu0 %v1772_v2  ;;  %v1831_v5 = vcombine.high %v25_v0, %v25_v0  ;;  %v1833_v6 = vcombine.high %v24_v1, %v24_v1  ;;  %v1747_v10 = vld [vmem:[%s2090_s0 + $0x18] ss:$0 sps:$4 sm:$0xff]   ;;  %s1776_s0 = smov 109   ;;  %s1778_s30 = smov 92   ;;  %v1571_v11 = vld [vmem:[%s2094_s3] sm:$0xff] }
   0x3   :  { %v1840_v8 = vcombine.high %v26_v7, %v26_v7  ;;  %v1842_v9 = vcombine.low %v26_v7, %v26_v7  ;;  %s1779_s7 = smov 91   ;;  %s1780_s8 = smov 90   ;;  %v1650_v19 = vld [vmem:[%s2095_s1 + $0x4] sm:$0xf]  ;;  %v27_v35 = vld [vmem:[%s2095_s1] sm:$0xf] }
   0x4   :  { %53 = vrot.lane.b32.xlu1 %v1824_v3, %s1773_s4  ;;  %49 = vrot.lane.b32.xlu0 %v1826_v4, %s1773_s4  ;;  %v220_v28 = vsel %vm74_vm1, %v1826_v4, 0  ;;  %v226_v33 = vsel %vm74_vm1, %v1824_v3, 0  ;;  %v1670_v50 = vld [vmem:[%s2095_s1 + $0x8] sm:$0xf]  ;;  %vm549_vm4 = vcmask 900096   ;;  %vm722_vm5 = vcmask 891904  }
   0x5   :  { %v232_v38 = vsel %vm74_vm1, %v1842_v9, 0  ;;  %vm895_vm6 = vcmask 883712   ;;  %vm1068_vm7 = vcmask 752640   ;;  %vm1241_vm8 = vcmask 744448  }
   0x6   :  { %vm1414_vm9 = vcmask 736256  }
   0x8   :  { %55 = vrot.lane.b32.xlu1 %v1831_v5, %s1773_s4  ;;  %51 = vrot.lane.b32.xlu0 %v1833_v6, %s1773_s4 }
   0xc   :  { %59 = vrot.lane.b32.xlu1 %v1840_v8, %s1773_s4  ;;  %57 = vrot.lane.b32.xlu0 %v1842_v9, %s1773_s4 }
  0x10   :  { %362 = vrot.lane.b32.xlu1 %v1826_v4, %s1774_s27  ;;  %61 = vrot.lane.b32.xlu0 %v1747_v10, %s1773_s4 }
  0x14   :  { %366 = vrot.lane.b32.xlu1 %v1824_v3, %s1774_s27  ;;  %364 = vrot.lane.b32.xlu0 %v1833_v6, %s1774_s27 }
  0x18   :  { %370 = vrot.lane.b32.xlu1 %v1842_v9, %s1774_s27  ;;  %368 = vrot.lane.b32.xlu0 %v1831_v5, %s1774_s27 }
  0x1c   :  { %374 = vrot.lane.b32.xlu1 %v1747_v10, %s1774_s27  ;;  %372 = vrot.lane.b32.xlu0 %v1840_v8, %s1774_s27 }
  0x20   :  { %537 = vrot.lane.b32.xlu1 %v1833_v6, %s1775_s28  ;;  %535 = vrot.lane.b32.xlu0 %v1826_v4, %s1775_s28 }
  0x24   :  { %541 = vrot.lane.b32.xlu1 %v1831_v5, %s1775_s28  ;;  %539 = vrot.lane.b32.xlu0 %v1824_v3, %s1775_s28 }
  0x28   :  { %545 = vrot.lane.b32.xlu1 %v1840_v8, %s1775_s28  ;;  %543 = vrot.lane.b32.xlu0 %v1842_v9, %s1775_s28 }
  0x2c   :  { %708 = vrot.lane.b32.xlu1 %v1826_v4, %s1776_s0  ;;  %547 = vrot.lane.b32.xlu0 %v1747_v10, %s1775_s28 }
  0x30   :  { %712 = vrot.lane.b32.xlu1 %v1824_v3, %s1776_s0  ;;  %710 = vrot.lane.b32.xlu0 %v1833_v6, %s1776_s0 }
  0x34   :  { %716 = vrot.lane.b32.xlu1 %v1842_v9, %s1776_s0  ;;  %714 = vrot.lane.b32.xlu0 %v1831_v5, %s1776_s0 }
  0x38   :  { %720 = vrot.lane.b32.xlu1 %v1747_v10, %s1776_s0  ;;  %718 = vrot.lane.b32.xlu0 %v1840_v8, %s1776_s0 }
  0x3c   :  { %883 = vrot.lane.b32.xlu1 %v1833_v6, %s1777_s29  ;;  %881 = vrot.lane.b32.xlu0 %v1826_v4, %s1777_s29 }
  0x40   :  { %887 = vrot.lane.b32.xlu1 %v1831_v5, %s1777_s29  ;;  %885 = vrot.lane.b32.xlu0 %v1824_v3, %s1777_s29 }
  0x44   :  { %891 = vrot.lane.b32.xlu1 %v1840_v8, %s1777_s29  ;;  %889 = vrot.lane.b32.xlu0 %v1842_v9, %s1777_s29 }
  0x48   :  { %1054 = vrot.lane.b32.xlu1 %v1826_v4, %s1778_s30  ;;  %893 = vrot.lane.b32.xlu0 %v1747_v10, %s1777_s29 }
  0x4c   :  { %1058 = vrot.lane.b32.xlu1 %v1824_v3, %s1778_s30  ;;  %1056 = vrot.lane.b32.xlu0 %v1833_v6, %s1778_s30 }
  0x50   :  { %1062 = vrot.lane.b32.xlu1 %v1842_v9, %s1778_s30  ;;  %1060 = vrot.lane.b32.xlu0 %v1831_v5, %s1778_s30 }
  0x54   :  { %1066 = vrot.lane.b32.xlu1 %v1747_v10, %s1778_s30  ;;  %1064 = vrot.lane.b32.xlu0 %v1840_v8, %s1778_s30 }
  0x58   :  { %1229 = vrot.lane.b32.xlu1 %v1833_v6, %s1779_s7  ;;  %1227 = vrot.lane.b32.xlu0 %v1826_v4, %s1779_s7 }
  0x5c   :  { %1233 = vrot.lane.b32.xlu1 %v1831_v5, %s1779_s7  ;;  %1231 = vrot.lane.b32.xlu0 %v1824_v3, %s1779_s7 }
  0x60   :  { %1237 = vrot.lane.b32.xlu1 %v1840_v8, %s1779_s7  ;;  %1235 = vrot.lane.b32.xlu0 %v1842_v9, %s1779_s7 }
  0x64   :  { %1400 = vrot.lane.b32.xlu1 %v1826_v4, %s1780_s8  ;;  %1239 = vrot.lane.b32.xlu0 %v1747_v10, %s1779_s7 }
  0x68   :  { %1404 = vrot.lane.b32.xlu1 %v1824_v3, %s1780_s8  ;;  %1402 = vrot.lane.b32.xlu0 %v1833_v6, %s1780_s8  ;;  %v1677_v3 = vld [vmem:[%s2095_s1 + $0xc] sm:$0xf] }
  0x6c   :  { %1408 = vrot.lane.b32.xlu1 %v1842_v9, %s1780_s8  ;;  %1406 = vrot.lane.b32.xlu0 %v1831_v5, %s1780_s8 }
  0x70   :  { %1412 = vrot.lane.b32.xlu1 %v1747_v10, %s1780_s8  ;;  %1410 = vrot.lane.b32.xlu0 %v1840_v8, %s1780_s8 }
  0x74   :  { %1574 = vperm.xlu0 %1740, %v1571_v11  }
  0x76   :  { %v54_v12 = vpop.permute.xlu1 %53  ;;  %v50_v13 = vpop.permute.xlu0 %49 }
  0x7a   :  { %v56_v14 = vpop.permute.xlu1 %55  ;;  %v52_v15 = vpop.permute.xlu0 %51 }
  0x7b   :  { %v65_v16 = vsel %vm63_vm0, %v52_v15, %v54_v12  ;;  %v64_v17 = vsel %vm63_vm0, %v50_v13, %v52_v15  ;;  %v66_v20 = vsel %vm63_vm0, %v54_v12, %v56_v14 }
  0x7c   :  { %1658 = vmatprep.subr.msk.bf16.mxu0 %vm74_vm1, %v65_v16  ;;  %v76_v18 = vsel %vm74_vm1, %v64_v17, 0  ;;  %v82_v24 = vsel %vm74_vm1, %v66_v20, 0 }
  0x7d   :  { %94 = vmatpush1.bf16.msra.mxu0 %v76_v18 }
  0x7e   :  { %v60_v21 = vpop.permute.xlu1 %59  ;;  %v58_v22 = vpop.permute.xlu0 %57 }
  0x7f   :  { %v67_v23 = vsel %vm63_vm0, %v56_v14, %v58_v22  ;;  %v68_v25 = vsel %vm63_vm0, %v58_v22, %v60_v21 }
  0x80   :  { %1659 = vmatmul.mubr.msk.bf16.vlgmr.msra.gmra.mrb[0].mxu0 %vm70_vm2, %v1650_v19  ;;  %1660 = vmatprep.subr.msk.bf16.mxu1 %vm74_vm1, %v67_v23  ;;  %v88_v30 = vsel %vm74_vm1, %v68_v25, 0 }
  0x81   :  { %135 = vmatpush1.bf16.msra.mxu1 %v82_v24  ;;  %207 = vmatprep.mubr.bf16.mxu0 %v1772_v2 }
  0x82   :  { %v363_v26 = vpop.permute.xlu1 %362  ;;  %v62_v27 = vpop.permute.xlu0 %61  ;;  %1664 = vmatprep.subr.msk.bf16.mxu1 %vm74_vm1, %v1833_v6 }
  0x83   :  { %v69_v29 = vsel %vm63_vm0, %v60_v21, %v62_v27 }
  0x84   :  { %1661 = vmatmul.mubr.msk.bf16.vlgmr.msra.gmra.mrb[0].mxu1 %vm70_vm2, %v1650_v19  ;;  %1662 = vmatprep.subr.msk.bf16.mxu0 %vm74_vm1, %v69_v29 }
  0x85   :  { %176 = vmatpush1.bf16.msra.mxu0 %v88_v30  ;;  %238 = vmatpush1.bf16.msra.mxu1 %v220_v28 }
  0x86   :  { %v367_v31 = vpop.permute.xlu1 %366  ;;  %v365_v32 = vpop.permute.xlu0 %364  ;;  %1666 = vmatprep.subr.msk.bf16.mxu0 %vm74_vm1, %v1831_v5  ;;  %269 = vmatprep.mubr.bf16.mxu1 %v1772_v2 }
  0x87   :  { %1668 = vmatprep.subr.msk.bf16.mxu1 %vm74_vm1, %v1840_v8  ;;  %v378_v34 = vsel %vm376_vm3, %v365_v32, %v367_v31  ;;  %v377_v40 = vsel %vm376_vm3, %v363_v26, %v365_v32 }
  0x88   :  { %1663 = vmatmul.mubr.msk.bf16.vlgmr.msra.gmra.mrb[4].mxu0 %vm70_vm2, %v1650_v19  ;;  %v387_v44 = vsel %vm74_vm1, %v377_v40, 0  ;;  %v1684_v19 = vld [vmem:[%s2095_s1 + $0x10] sm:$0xf] }
  0x89   :  { %279 = vmatpush1.bf16.msra.mxu0 %v226_v33  ;;  %310 = vmatprep.mubr.bf16.mxu0 %v1772_v2 }
  0x8a   :  { %v371_v36 = vpop.permute.xlu1 %370  ;;  %1671 = vmatprep.subr.msk.bf16.mxu0 %vm74_vm1, %v378_v34  ;;  %v369_v37 = vpop.permute.xlu0 %368  ;;  %v1691_v34 = vld [vmem:[%s2095_s1 + $0x14] sm:$0xf] }
  0x8b   :  { %v380_v39 = vsel %vm376_vm3, %v369_v37, %v371_v36  ;;  %v379_v45 = vsel %vm376_vm3, %v367_v31, %v369_v37 }
  0x8c   :  { %1665 = vmatmul.mubr.msk.bf16.vlgmr.msra.gmra.mrb[4].mxu1 %vm70_vm2, %v27_v35  ;;  %v393_v48 = vsel %vm74_vm1, %v379_v45, 0 }
  0x8d   :  { %320 = vmatpush1.bf16.msra.mxu1 %v232_v38  ;;  %351 = vmatprep.mubr.bf16.mxu1 %v1772_v2 }
  0x8e   :  { %1673 = vmatprep.subr.msk.bf16.mxu1 %vm74_vm1, %v380_v39  ;;  %v375_v41 = vpop.permute.xlu1 %374  ;;  %v373_v42 = vpop.permute.xlu0 %372 }
  0x8f   :  { %v382_v43 = vsel %vm376_vm3, %v373_v42, %v375_v41  ;;  %v381_v49 = vsel %vm376_vm3, %v371_v36, %v373_v42 }
  0x90   :  { %1667 = vmatmul.mubr.msk.bf16.vlgmr.msra.gmra.mrb[8].mxu0 %vm70_vm2, %v27_v35  ;;  %v399_v54 = vsel %vm74_vm1, %v381_v49, 0  ;;  %v1698_v49 = vld [vmem:[%s2095_s1 + $0x18] sm:$0xf] }
  0x91   :  { %405 = vmatpush1.bf16.msra.mxu0 %v387_v44  ;;  %436 = vmatprep.mubr.bf16.mxu0 %v1772_v2 }
  0x92   :  { %1675 = vmatprep.subr.msk.bf16.mxu0 %vm74_vm1, %v382_v43  ;;  %v538_v46 = vpop.permute.xlu1 %537  ;;  %v536_v47 = vpop.permute.xlu0 %535 }
  0x93   :  { %v550_v55 = vsel %vm549_vm4, %v536_v47, %v538_v46 }
  0x94   :  { %1669 = vmatmul.mubr.msk.bf16.vlgmr.msra.gmra.mrb[8].mxu1 %vm70_vm2, %v27_v35  ;;  %v560_v59 = vsel %vm74_vm1, %v550_v55, 0 }
  0x95   :  { %446 = vmatpush1.bf16.msra.mxu1 %v393_v48  ;;  %477 = vmatprep.mubr.bf16.mxu1 %v1772_v2 }
  0x96   :  { %v542_v51 = vpop.permute.xlu1 %541  ;;  %v540_v52 = vpop.permute.xlu0 %539 }
  0x97   :  { %v551_v53 = vsel %vm549_vm4, %v538_v46, %v540_v52  ;;  %v552_v60 = vsel %vm549_vm4, %v540_v52, %v542_v51 }
  0x98   :  { %1672 = vmatmul.mubr.msk.bf16.vlgmr.msra.gmra.mrb[12].mxu0 %vm70_vm2, %v1670_v50  ;;  %1678 = vmatprep.subr.msk.bf16.mxu1 %vm74_vm1, %v551_v53  ;;  %v566_v0 = vsel %vm74_vm1, %v552_v60, 0 }
  0x99   :  { %487 = vmatpush1.bf16.msra.mxu0 %v399_v54  ;;  %518 = vmatprep.mubr.bf16.mxu0 %v1772_v2 }
  0x9a   :  { %v546_v56 = vpop.permute.xlu1 %545  ;;  %v544_v57 = vpop.permute.xlu0 %543 }
  0x9b   :  { %v553_v58 = vsel %vm549_vm4, %v542_v51, %v544_v57  ;;  %v554_v1 = vsel %vm549_vm4, %v544_v57, %v546_v56 }
  0x9c   :  { %1674 = vmatmul.mubr.msk.bf16.vlgmr.msra.gmra.mrb[12].mxu1 %vm70_vm2, %v1670_v50  ;;  %1680 = vmatprep.subr.msk.bf16.mxu0 %vm74_vm1, %v553_v58  ;;  %v572_v7 = vsel %vm74_vm1, %v554_v1, 0 }
  0x9d   :  { %578 = vmatpush1.bf16.msra.mxu1 %v560_v59  ;;  %609 = vmatprep.mubr.bf16.mxu1 %v1772_v2 }
  0x9e   :  { %v709_v61 = vpop.permute.xlu1 %708  ;;  %v548_v62 = vpop.permute.xlu0 %547 }
  0x9f   :  { %v555_v63 = vsel %vm549_vm4, %v546_v56, %v548_v62 }
  0xa0   :  { %1676 = vmatmul.mubr.msk.bf16.vlgmr.msra.gmra.mrb[16].mxu0 %vm70_vm2, %v1670_v50  ;;  %1682 = vmatprep.subr.msk.bf16.mxu1 %vm74_vm1, %v555_v63  ;;  %v1705_v63 = vld [vmem:[%s2095_s1 + $0x1c] sm:$0xf] }
  0xa1   :  { %619 = vmatpush1.bf16.msra.mxu0 %v566_v0  ;;  %650 = vmatprep.mubr.bf16.mxu0 %v1772_v2 }
  0xa2   :  { %v713_v4 = vpop.permute.xlu1 %712  ;;  %v711_v5 = vpop.permute.xlu0 %710 }
  0xa3   :  { %v724_v6 = vsel %vm722_vm5, %v711_v5, %v713_v4  ;;  %v723_v8 = vsel %vm722_vm5, %v709_v61, %v711_v5 }
  0xa4   :  { %1679 = vmatmul.mubr.msk.bf16.vlgmr.msra.gmra.mrb[16].mxu1 %vm70_vm2, %v1677_v3  ;;  %1685 = vmatprep.subr.msk.bf16.mxu0 %vm74_vm1, %v724_v6  ;;  %v733_v12 = vsel %vm74_vm1, %v723_v8, 0 }
  0xa5   :  { %660 = vmatpush1.bf16.msra.mxu1 %v572_v7  ;;  %691 = vmatprep.mubr.bf16.mxu1 %v1772_v2 }
  0xa6   :  { %v717_v9 = vpop.permute.xlu1 %716  ;;  %v715_v10 = vpop.permute.xlu0 %714 }
  0xa7   :  { %v726_v11 = vsel %vm722_vm5, %v715_v10, %v717_v9  ;;  %v725_v13 = vsel %vm722_vm5, %v713_v4, %v715_v10 }
  0xa8   :  { %1681 = vmatmul.mubr.msk.bf16.vlgmr.msra.gmra.mrb[20].mxu0 %vm70_vm2, %v1677_v3  ;;  %1687 = vmatprep.subr.msk.bf16.mxu1 %vm74_vm1, %v726_v11  ;;  %v739_v17 = vsel %vm74_vm1, %v725_v13, 0 }
  0xa9   :  { %751 = vmatpush1.bf16.msra.mxu0 %v733_v12  ;;  %782 = vmatprep.mubr.bf16.mxu0 %v1772_v2 }
  0xaa   :  { %v721_v14 = vpop.permute.xlu1 %720  ;;  %v719_v15 = vpop.permute.xlu0 %718 }
  0xab   :  { %v728_v16 = vsel %vm722_vm5, %v719_v15, %v721_v14  ;;  %v727_v18 = vsel %vm722_vm5, %v717_v9, %v719_v15  ;;  %v1712_v15 = vld [vmem:[%s2095_s1 + $0x20] sm:$0xf] }
  0xac   :  { %1683 = vmatmul.mubr.msk.bf16.vlgmr.msra.gmra.mrb[20].mxu1 %vm70_vm2, %v1677_v3  ;;  %1689 = vmatprep.subr.msk.bf16.mxu0 %vm74_vm1, %v728_v16  ;;  %v745_v22 = vsel %vm74_vm1, %v727_v18, 0 }
  0xad   :  { %792 = vmatpush1.bf16.msra.mxu1 %v739_v17  ;;  %823 = vmatprep.mubr.bf16.mxu1 %v1772_v2 }
  0xae   :  { %v884_v20 = vpop.permute.xlu1 %883  ;;  %v882_v21 = vpop.permute.xlu0 %881 }
  0xaf   :  { %v896_v23 = vsel %vm895_vm6, %v882_v21, %v884_v20 }
  0xb0   :  { %1686 = vmatmul.mubr.msk.bf16.vlgmr.msra.gmra.mrb[24].mxu0 %vm70_vm2, %v1684_v19  ;;  %v906_v27 = vsel %vm74_vm1, %v896_v23, 0 }
  0xb1   :  { %833 = vmatpush1.bf16.msra.mxu0 %v745_v22  ;;  %864 = vmatprep.mubr.bf16.mxu0 %v1772_v2 }
  0xb2   :  { %v888_v24 = vpop.permute.xlu1 %887  ;;  %v886_v25 = vpop.permute.xlu0 %885 }
  0xb3   :  { %v897_v26 = vsel %vm895_vm6, %v884_v20, %v886_v25  ;;  %v898_v28 = vsel %vm895_vm6, %v886_v25, %v888_v24 }
  0xb4   :  { %1688 = vmatmul.mubr.msk.bf16.vlgmr.msra.gmra.mrb[24].mxu1 %vm70_vm2, %v1684_v19  ;;  %1692 = vmatprep.subr.msk.bf16.mxu1 %vm74_vm1, %v897_v26  ;;  %v912_v32 = vsel %vm74_vm1, %v898_v28, 0 }
  0xb5   :  { %924 = vmatpush1.bf16.msra.mxu1 %v906_v27  ;;  %955 = vmatprep.mubr.bf16.mxu1 %v1772_v2 }
  0xb6   :  { %v892_v29 = vpop.permute.xlu1 %891  ;;  %v890_v30 = vpop.permute.xlu0 %889 }
  0xb7   :  { %v899_v31 = vsel %vm895_vm6, %v888_v24, %v890_v30  ;;  %v900_v33 = vsel %vm895_vm6, %v890_v30, %v892_v29 }
  0xb8   :  { %1690 = vmatmul.mubr.msk.bf16.vlgmr.msra.gmra.mrb[28].mxu0 %vm70_vm2, %v1684_v19  ;;  %1694 = vmatprep.subr.msk.bf16.mxu0 %vm74_vm1, %v899_v31  ;;  %v918_v38 = vsel %vm74_vm1, %v900_v33, 0 }
  0xb9   :  { %965 = vmatpush1.bf16.msra.mxu0 %v912_v32  ;;  %996 = vmatprep.mubr.bf16.mxu0 %v1772_v2 }
  0xba   :  { %v1055_v35 = vpop.permute.xlu1 %1054  ;;  %v894_v36 = vpop.permute.xlu0 %893 }
  0xbb   :  { %v901_v37 = vsel %vm895_vm6, %v892_v29, %v894_v36 }
  0xbc   :  { %1693 = vmatmul.mubr.msk.bf16.vlgmr.msra.gmra.mrb[28].mxu1 %vm70_vm2, %v1691_v34  ;;  %1696 = vmatprep.subr.msk.bf16.mxu1 %vm74_vm1, %v901_v37 }
  0xbd   :  { %1006 = vmatpush1.bf16.msra.mxu1 %v918_v38  ;;  %1037 = vmatprep.mubr.bf16.mxu1 %v1772_v2 }
  0xbe   :  { %v1059_v39 = vpop.permute.xlu1 %1058  ;;  %v1057_v40 = vpop.permute.xlu0 %1056 }
  0xbf   :  { %v1069_v41 = vsel %vm1068_vm7, %v1055_v35, %v1057_v40  ;;  %v1070_v42 = vsel %vm1068_vm7, %v1057_v40, %v1059_v39 }
  0xc0   :  { %v1079_v43 = vsel %vm74_vm1, %v1069_v41, 0  ;;  %1695 = vmatmul.mubr.msk.bf16.vlgmr.msra.gmra.mrb[32].mxu0 %vm70_vm2, %v1691_v34  ;;  %1699 = vmatprep.subr.msk.bf16.mxu0 %vm74_vm1, %v1070_v42 }
  0xc1   :  { %1097 = vmatpush1.bf16.msra.mxu0 %v1079_v43  ;;  %1128 = vmatprep.mubr.bf16.mxu0 %v1772_v2 }
  0xc2   :  { %v1063_v44 = vpop.permute.xlu1 %1062  ;;  %v1061_v45 = vpop.permute.xlu0 %1060 }
  0xc3   :  { %v1071_v46 = vsel %vm1068_vm7, %v1059_v39, %v1061_v45  ;;  %v1072_v47 = vsel %vm1068_vm7, %v1061_v45, %v1063_v44 }
  0xc4   :  { %v1085_v48 = vsel %vm74_vm1, %v1071_v46, 0  ;;  %1697 = vmatmul.mubr.msk.bf16.vlgmr.msra.gmra.mrb[32].mxu1 %vm70_vm2, %v1691_v34  ;;  %1701 = vmatprep.subr.msk.bf16.mxu1 %vm74_vm1, %v1072_v47 }
  0xc5   :  { %1138 = vmatpush1.bf16.msra.mxu1 %v1085_v48  ;;  %1169 = vmatprep.mubr.bf16.mxu1 %v1772_v2 }
  0xc6   :  { %v1067_v50 = vpop.permute.xlu1 %1066  ;;  %v1065_v51 = vpop.permute.xlu0 %1064 }
  0xc7   :  { %v1073_v52 = vsel %vm1068_vm7, %v1063_v44, %v1065_v51  ;;  %v1074_v53 = vsel %vm1068_vm7, %v1065_v51, %v1067_v50 }
  0xc8   :  { %v1091_v54 = vsel %vm74_vm1, %v1073_v52, 0  ;;  %1700 = vmatmul.mubr.msk.bf16.vlgmr.msra.gmra.mrb[36].mxu0 %vm70_vm2, %v1698_v49  ;;  %1703 = vmatprep.subr.msk.bf16.mxu0 %vm74_vm1, %v1074_v53 }
  0xc9   :  { %1179 = vmatpush1.bf16.msra.mxu0 %v1091_v54  ;;  %1210 = vmatprep.mubr.bf16.mxu0 %v1772_v2 }
  0xca   :  { %v1230_v55 = vpop.permute.xlu1 %1229  ;;  %v1228_v56 = vpop.permute.xlu0 %1227 }
  0xcb   :  { %v1242_v57 = vsel %vm1241_vm8, %v1228_v56, %v1230_v55 }
  0xcc   :  { %1702 = vmatmul.mubr.msk.bf16.vlgmr.msra.gmra.mrb[36].mxu1 %vm70_vm2, %v1698_v49  ;;  %v1252_v61 = vsel %vm74_vm1, %v1242_v57, 0 }
  0xcd   :  { %1301 = vmatprep.mubr.bf16.mxu1 %v1772_v2 }
  0xce   :  { %v1234_v58 = vpop.permute.xlu1 %1233  ;;  %v1232_v59 = vpop.permute.xlu0 %1231 }
  0xcf   :  { %v1243_v60 = vsel %vm1241_vm8, %v1230_v55, %v1232_v59  ;;  %v1244_v62 = vsel %vm1241_vm8, %v1232_v59, %v1234_v58 }
  0xd0   :  { %1704 = vmatmul.mubr.msk.bf16.vlgmr.msra.gmra.mrb[40].mxu0 %vm70_vm2, %v1698_v49  ;;  %1706 = vmatprep.subr.msk.bf16.mxu1 %vm74_vm1, %v1243_v60  ;;  %v1258_v4 = vsel %vm74_vm1, %v1244_v62, 0 }
  0xd1   :  { %1270 = vmatpush1.bf16.msra.mxu1 %v1252_v61  ;;  %1342 = vmatprep.mubr.bf16.mxu0 %v1772_v2 }
  0xd2   :  { %v1238_v0 = vpop.permute.xlu1 %1237  ;;  %v1236_v1 = vpop.permute.xlu0 %1235 }
  0xd3   :  { %v1245_v3 = vsel %vm1241_vm8, %v1234_v58, %v1236_v1  ;;  %v1246_v5 = vsel %vm1241_vm8, %v1236_v1, %v1238_v0 }
  0xd4   :  { %1707 = vmatmul.mubr.msk.bf16.vlgmr.msra.gmra.mrb[40].mxu1 %vm70_vm2, %v1705_v63  ;;  %1708 = vmatprep.subr.msk.bf16.mxu0 %vm74_vm1, %v1245_v3  ;;  %v1264_v9 = vsel %vm74_vm1, %v1246_v5, 0 }
  0xd5   :  { %1311 = vmatpush1.bf16.msra.mxu0 %v1258_v4  ;;  %1383 = vmatprep.mubr.bf16.mxu1 %v1772_v2 }
  0xd6   :  { %v1401_v6 = vpop.permute.xlu1 %1400  ;;  %v1240_v7 = vpop.permute.xlu0 %1239 }
  0xd7   :  { %v1247_v8 = vsel %vm1241_vm8, %v1238_v0, %v1240_v7 }
  0xd8   :  { %1709 = vmatmul.mubr.msk.bf16.vlgmr.msra.gmra.mrb[44].mxu0 %vm70_vm2, %v1705_v63  ;;  %1710 = vmatprep.subr.msk.bf16.mxu1 %vm74_vm1, %v1247_v8 }
  0xd9   :  { %1352 = vmatpush1.bf16.msra.mxu1 %v1264_v9  ;;  %1474 = vmatprep.mubr.bf16.mxu0 %v1772_v2 }
  0xda   :  { %v1405_v10 = vpop.permute.xlu1 %1404  ;;  %v1403_v11 = vpop.permute.xlu0 %1402 }
  0xdb   :  { %v1415_v12 = vsel %vm1414_vm9, %v1401_v6, %v1403_v11  ;;  %v1416_v13 = vsel %vm1414_vm9, %v1403_v11, %v1405_v10 }
  0xdc   :  { %v1425_v14 = vsel %vm74_vm1, %v1415_v12, 0  ;;  %1711 = vmatmul.mubr.msk.bf16.vlgmr.msra.gmra.mrb[44].mxu1 %vm70_vm2, %v1705_v63  ;;  %1713 = vmatprep.subr.msk.bf16.mxu0 %vm74_vm1, %v1416_v13 }
  0xdd   :  { %1443 = vmatpush1.bf16.msra.mxu0 %v1425_v14  ;;  %1515 = vmatprep.mubr.bf16.mxu1 %v1772_v2 }
  0xde   :  { %v1409_v16 = vpop.permute.xlu1 %1408  ;;  %v1407_v17 = vpop.permute.xlu0 %1406 }
  0xdf   :  { %v1417_v18 = vsel %vm1414_vm9, %v1405_v10, %v1407_v17  ;;  %v1418_v19 = vsel %vm1414_vm9, %v1407_v17, %v1409_v16 }
  0xe0   :  { %v1431_v20 = vsel %vm74_vm1, %v1417_v18, 0  ;;  %1714 = vmatmul.mubr.msk.bf16.vlgmr.msra.gmra.mrb[48].mxu0 %vm70_vm2, %v1712_v15  ;;  %1715 = vmatprep.subr.msk.bf16.mxu1 %vm74_vm1, %v1418_v19 }
  0xe1   :  { %1484 = vmatpush1.bf16.msra.mxu1 %v1431_v20  ;;  %1556 = vmatprep.mubr.bf16.mxu0 %v1772_v2 }
  0xe2   :  { %v1413_v21 = vpop.permute.xlu1 %1412  ;;  %v1411_v22 = vpop.permute.xlu0 %1410 }
  0xe3   :  { %v1419_v23 = vsel %vm1414_vm9, %v1409_v16, %v1411_v22  ;;  %v1420_v24 = vsel %vm1414_vm9, %v1411_v22, %v1413_v21 }
  0xe4   :  { %v1437_v25 = vsel %vm74_vm1, %v1419_v23, 0  ;;  %1716 = vmatmul.mubr.msk.bf16.vlgmr.msra.gmra.mrb[48].mxu1 %vm70_vm2, %v1712_v15  ;;  %1717 = vmatprep.subr.msk.bf16.mxu0 %vm74_vm1, %v1420_v24 }
  0xe5   :  { %1525 = vmatpush1.bf16.msra.mxu0 %v1437_v25 }
  0xe8   :  { %1718 = vmatmul.mubr.msk.bf16.vlgmr.msra.gmra.mrb[52].mxu0 %vm70_vm2, %v1712_v15 }
 0x153   :  { %v127_v26 = vpop.f32.mrb[0].mxu0 }
 0x154   :  { %v129_v27 = vpop.f32.mrb[1].mxu0 }
 0x155   :  { %v131_v28 = vpop.f32.mrb[2].mxu0 }
 0x156   :  { %v132_v29 = vpop.f32.mrb[3].mxu0 }
 0x157   :  { %v168_v2 = vpop.f32.mrb[0].mxu1 }
 0x158   :  { %v170_v30 = vpop.f32.mrb[1].mxu1 }
 0x159   :  { %v172_v31 = vpop.f32.mrb[2].mxu1 }
 0x15a   :  { %v173_v32 = vpop.f32.mrb[3].mxu1 }
 0x15b   :  { %v209_v33 = vpop.f32.mrb[4].mxu0 }
 0x15c   :  { %v211_v34 = vpop.f32.mrb[5].mxu0 }
 0x15d   :  { %v213_v35 = vpop.f32.mrb[6].mxu0 }
 0x15e   :  { %v214_v36 = vpop.f32.mrb[7].mxu0 }
 0x15f   :  { %v271_v37 = vpop.f32.mrb[4].mxu1 }
 0x160   :  { %v272_v38 = vadd.f32 %v271_v37, %v127_v26  ;;  %v273_v39 = vpop.f32.mrb[5].mxu1 }
 0x161   :  { %v274_v40 = vadd.f32 %v273_v39, %v129_v27  ;;  %v275_v41 = vpop.f32.mrb[6].mxu1 }
 0x162   :  { %v276_v42 = vpop.f32.mrb[7].mxu1 }
 0x163   :  { %v312_v43 = vpop.f32.mrb[8].mxu0 }
 0x164   :  { %v313_v44 = vadd.f32 %v312_v43, %v168_v2  ;;  %v314_v45 = vpop.f32.mrb[9].mxu0 }
 0x165   :  { %v315_v46 = vadd.f32 %v314_v45, %v170_v30  ;;  %v316_v47 = vpop.f32.mrb[10].mxu0 }
 0x166   :  { %v317_v48 = vpop.f32.mrb[11].mxu0 }
 0x167   :  { %v353_v49 = vpop.f32.mrb[8].mxu1 }
 0x168   :  { %v354_v50 = vadd.f32 %v353_v49, %v209_v33  ;;  %v355_v51 = vpop.f32.mrb[9].mxu1 }
 0x169   :  { %v356_v52 = vadd.f32 %v355_v51, %v211_v34  ;;  %v357_v53 = vpop.f32.mrb[10].mxu1 }
 0x16a   :  { %v358_v54 = vpop.f32.mrb[11].mxu1 }
 0x16b   :  { %v438_v55 = vpop.f32.mrb[12].mxu0 }
 0x16c   :  { %v527_v56 = vadd.f32 %v438_v55, %v272_v38  ;;  %v440_v57 = vpop.f32.mrb[13].mxu0 }
 0x16d   :  { %v528_v58 = vadd.f32 %v440_v57, %v274_v40  ;;  %v442_v59 = vpop.f32.mrb[14].mxu0 }
 0x16e   :  { %v443_v60 = vpop.f32.mrb[15].mxu0 }
 0x16f   :  { %v479_v61 = vpop.f32.mrb[12].mxu1 }
 0x170   :  { %v529_v62 = vadd.f32 %v479_v61, %v313_v44  ;;  %v481_v63 = vpop.f32.mrb[13].mxu1 }
 0x171   :  { %v530_v0 = vadd.f32 %v481_v63, %v315_v46  ;;  %v483_v1 = vpop.f32.mrb[14].mxu1 }
 0x172   :  { %v484_v3 = vpop.f32.mrb[15].mxu1 }
 0x173   :  { %v520_v4 = vpop.f32.mrb[16].mxu0 }
 0x174   :  { %v531_v5 = vadd.f32 %v520_v4, %v354_v50  ;;  %v522_v6 = vpop.f32.mrb[17].mxu0 }
 0x175   :  { %v532_v7 = vadd.f32 %v522_v6, %v356_v52  ;;  %v524_v8 = vpop.f32.mrb[18].mxu0 }
 0x176   :  { %v525_v9 = vpop.f32.mrb[19].mxu0 }
 0x177   :  { %v611_v10 = vpop.f32.mrb[16].mxu1 }
 0x178   :  { %v700_v11 = vadd.f32 %v611_v10, %v527_v56  ;;  %v613_v12 = vpop.f32.mrb[17].mxu1 }
 0x179   :  { %v701_v13 = vadd.f32 %v613_v12, %v528_v58  ;;  %v615_v14 = vpop.f32.mrb[18].mxu1 }
 0x17a   :  { %v616_v15 = vpop.f32.mrb[19].mxu1 }
 0x17b   :  { %v652_v16 = vpop.f32.mrb[20].mxu0 }
 0x17c   :  { %v702_v17 = vadd.f32 %v652_v16, %v529_v62  ;;  %v654_v18 = vpop.f32.mrb[21].mxu0 }
 0x17d   :  { %v703_v19 = vadd.f32 %v654_v18, %v530_v0  ;;  %v656_v20 = vpop.f32.mrb[22].mxu0 }
 0x17e   :  { %v657_v21 = vpop.f32.mrb[23].mxu0 }
 0x17f   :  { %v693_v22 = vpop.f32.mrb[20].mxu1 }
 0x180   :  { %v704_v23 = vadd.f32 %v693_v22, %v531_v5  ;;  %v695_v24 = vpop.f32.mrb[21].mxu1 }
 0x181   :  { %v705_v25 = vadd.f32 %v695_v24, %v532_v7  ;;  %v697_v26 = vpop.f32.mrb[22].mxu1 }
 0x182   :  { %v698_v27 = vpop.f32.mrb[23].mxu1 }
 0x183   :  { %v784_v28 = vpop.f32.mrb[24].mxu0 }
 0x184   :  { %v873_v29 = vadd.f32 %v784_v28, %v700_v11  ;;  %v786_v2 = vpop.f32.mrb[25].mxu0 }
 0x185   :  { %v874_v30 = vadd.f32 %v786_v2, %v701_v13  ;;  %v788_v31 = vpop.f32.mrb[26].mxu0 }
 0x186   :  { %v789_v32 = vpop.f32.mrb[27].mxu0 }
 0x187   :  { %v825_v33 = vpop.f32.mrb[24].mxu1 }
 0x188   :  { %v875_v34 = vadd.f32 %v825_v33, %v702_v17  ;;  %v827_v35 = vpop.f32.mrb[25].mxu1 }
 0x189   :  { %v876_v36 = vadd.f32 %v827_v35, %v703_v19  ;;  %v829_v37 = vpop.f32.mrb[26].mxu1 }
 0x18a   :  { %v830_v38 = vpop.f32.mrb[27].mxu1 }
 0x18b   :  { %v866_v39 = vpop.f32.mrb[28].mxu0 }
 0x18c   :  { %v877_v40 = vadd.f32 %v866_v39, %v704_v23  ;;  %v868_v41 = vpop.f32.mrb[29].mxu0 }
 0x18d   :  { %v878_v42 = vadd.f32 %v868_v41, %v705_v25  ;;  %v870_v43 = vpop.f32.mrb[30].mxu0 }
 0x18e   :  { %v871_v44 = vpop.f32.mrb[31].mxu0 }
 0x18f   :  { %v957_v45 = vpop.f32.mrb[28].mxu1 }
 0x190   :  { %v1046_v46 = vadd.f32 %v957_v45, %v873_v29  ;;  %v959_v47 = vpop.f32.mrb[29].mxu1 }
 0x191   :  { %v1047_v48 = vadd.f32 %v959_v47, %v874_v30  ;;  %v961_v49 = vpop.f32.mrb[30].mxu1 }
 0x192   :  { %v962_v50 = vpop.f32.mrb[31].mxu1 }
 0x193   :  { %v998_v51 = vpop.f32.mrb[32].mxu0 }
 0x194   :  { %v1048_v52 = vadd.f32 %v998_v51, %v875_v34  ;;  %v1000_v53 = vpop.f32.mrb[33].mxu0 }
 0x195   :  { %v1049_v54 = vadd.f32 %v1000_v53, %v876_v36  ;;  %v1002_v55 = vpop.f32.mrb[34].mxu0  ;;  %v1575_v36 = vpop.permute.xlu0 %1574 }
 0x196   :  { %v1003_v56 = vpop.f32.mrb[35].mxu0 }
 0x197   :  { %v1039_v57 = vpop.f32.mrb[32].mxu1 }
 0x198   :  { %v1050_v58 = vadd.f32 %v1039_v57, %v877_v40  ;;  %v1041_v59 = vpop.f32.mrb[33].mxu1 }
 0x199   :  { %v1051_v60 = vadd.f32 %v1041_v59, %v878_v42  ;;  %v1043_v61 = vpop.f32.mrb[34].mxu1 }
 0x19a   :  { %v1044_v62 = vpop.f32.mrb[35].mxu1 }
 0x19b   :  { %v1130_v63 = vpop.f32.mrb[36].mxu0 }
 0x19c   :  { %v1219_v0 = vadd.f32 %v1130_v63, %v1046_v46  ;;  %v1132_v1 = vpop.f32.mrb[37].mxu0 }
 0x19d   :  { %v1220_v3 = vadd.f32 %v1132_v1, %v1047_v48  ;;  %v1134_v4 = vpop.f32.mrb[38].mxu0 }
 0x19e   :  { %v1135_v5 = vpop.f32.mrb[39].mxu0 }
 0x19f   :  { %v1171_v6 = vpop.f32.mrb[36].mxu1 }
 0x1a0   :  { %v1221_v7 = vadd.f32 %v1171_v6, %v1048_v52  ;;  %v1173_v8 = vpop.f32.mrb[37].mxu1 }
 0x1a1   :  { %v1222_v9 = vadd.f32 %v1173_v8, %v1049_v54  ;;  %v1175_v10 = vpop.f32.mrb[38].mxu1 }
 0x1a2   :  { %v1176_v11 = vpop.f32.mrb[39].mxu1 }
 0x1a3   :  { %v1212_v12 = vpop.f32.mrb[40].mxu0 }
 0x1a4   :  { %v1223_v13 = vadd.f32 %v1212_v12, %v1050_v58  ;;  %v1214_v14 = vpop.f32.mrb[41].mxu0 }
 0x1a5   :  { %v1224_v15 = vadd.f32 %v1214_v14, %v1051_v60  ;;  %v1216_v16 = vpop.f32.mrb[42].mxu0 }
 0x1a6   :  { %v1217_v17 = vpop.f32.mrb[43].mxu0 }
 0x1a7   :  { %v1303_v18 = vpop.f32.mrb[40].mxu1 }
 0x1a8   :  { %v1392_v19 = vadd.f32 %v1303_v18, %v1219_v0  ;;  %v1305_v20 = vpop.f32.mrb[41].mxu1 }
 0x1a9   :  { %v1393_v21 = vadd.f32 %v1305_v20, %v1220_v3  ;;  %v1307_v22 = vpop.f32.mrb[42].mxu1 }
 0x1aa   :  { %v1308_v23 = vpop.f32.mrb[43].mxu1 }
 0x1ab   :  { %v1344_v24 = vpop.f32.mrb[44].mxu0 }
 0x1ac   :  { %v1394_v25 = vadd.f32 %v1344_v24, %v1221_v7  ;;  %v1346_v26 = vpop.f32.mrb[45].mxu0 }
 0x1ad   :  { %v1395_v27 = vadd.f32 %v1346_v26, %v1222_v9  ;;  %v1348_v28 = vpop.f32.mrb[46].mxu0 }
 0x1ae   :  { %v1349_v29 = vpop.f32.mrb[47].mxu0 }
 0x1af   :  { %v1385_v2 = vpop.f32.mrb[44].mxu1 }
 0x1b0   :  { %v1396_v30 = vadd.f32 %v1385_v2, %v1223_v13  ;;  %v1387_v31 = vpop.f32.mrb[45].mxu1 }
 0x1b1   :  { %v1397_v32 = vadd.f32 %v1387_v31, %v1224_v15  ;;  %v1389_v33 = vpop.f32.mrb[46].mxu1 }
 0x1b2   :  { %v1390_v34 = vpop.f32.mrb[47].mxu1 }
 0x1b3   :  { %v1476_v35 = vpop.f32.mrb[48].mxu0 }
 0x1b4   :  { %v1565_v37 = vadd.f32 %v1476_v35, %v1392_v19  ;;  %v1478_v38 = vpop.f32.mrb[49].mxu0 }
 0x1b5   :  { %v1566_v39 = vadd.f32 %v1478_v38, %v1393_v21  ;;  %v1480_v40 = vpop.f32.mrb[50].mxu0 }
 0x1b6   :  { %v1577_v41 = vadd.f32 %v1575_v36, %v1565_v37  ;;  %v1481_v42 = vpop.f32.mrb[51].mxu0 }
 0x1b7   :  { %v1578_v43 = vadd.f32 %v1575_v36, %v1566_v39  ;;  %v1517_v44 = vpop.f32.mrb[48].mxu1 }
 0x1b8   :  { %v1719_v45 = vmul.f32 -1.442695, %v1577_v41  ;;  %v1567_v46 = vadd.f32 %v1517_v44, %v1394_v25  ;;  %v1519_v47 = vpop.f32.mrb[49].mxu1 }
 0x1b9   :  { %v1720_v48 = vmul.f32 -1.442695, %v1578_v43  ;;  %v1568_v49 = vadd.f32 %v1519_v47, %v1395_v27  ;;  %v1521_v50 = vpop.f32.mrb[50].mxu1 }
 0x1ba   :  { %1748 = vpow2.f32 %v1719_v45  ;;  %v1579_v51 = vadd.f32 %v1575_v36, %v1567_v46  ;;  %v1522_v52 = vpop.f32.mrb[51].mxu1 }
 0x1bb   :  { %1750 = vpow2.f32 %v1720_v48  ;;  %v1580_v53 = vadd.f32 %v1575_v36, %v1568_v49  ;;  %v1558_v54 = vpop.f32.mrb[52].mxu0 }
 0x1bc   :  { %v1721_v55 = vmul.f32 -1.442695, %v1579_v51  ;;  %v1569_v56 = vadd.f32 %v1558_v54, %v1396_v30  ;;  %v1560_v57 = vpop.f32.mrb[53].mxu0 }
 0x1bd   :  { %v1722_v58 = vmul.f32 -1.442695, %v1580_v53  ;;  %v1570_v59 = vadd.f32 %v1560_v57, %v1397_v32  ;;  %v1562_v60 = vpop.f32.mrb[54].mxu0 }
 0x1be   :  { %1752 = vpow2.f32 %v1721_v55  ;;  %v1581_v61 = vadd.f32 %v1575_v36, %v1569_v56  ;;  %v1563_v62 = vpop.f32.mrb[55].mxu0 }
 0x1bf   :  { %1754 = vpow2.f32 %v1722_v58  ;;  %v1582_v63 = vadd.f32 %v1575_v36, %v1570_v59 }
 0x1c0   :  { %v1723_v0 = vmul.f32 -1.442695, %v1581_v61 }
 0x1c1   :  { %v1724_v1 = vmul.f32 -1.442695, %v1582_v63 }
 0x1c2   :  { %1756 = vpow2.f32 %v1723_v0 }
 0x1c3   :  { %1758 = vpow2.f32 %v1724_v1 }
 0x1c4   :  { %v1749_v3 = vpop.eup %1748 }
 0x1c5   :  { %v1751_v4 = vpop.eup %1750  ;;  %v1601_v5 = vadd.f32 1.0, %v1749_v3 }
 0x1c6   :  { %v1602_v6 = vadd.f32 1.0, %v1751_v4 }
 0x1c7   :  { %1760 = vrcp.f32 %v1601_v5 }
 0x1c8   :  { %v1753_v7 = vpop.eup %1752  ;;  %1762 = vrcp.f32 %v1602_v6 }
 0x1c9   :  { %v1755_v8 = vpop.eup %1754  ;;  %v1603_v9 = vadd.f32 1.0, %v1753_v7 }
 0x1ca   :  { %v1604_v10 = vadd.f32 1.0, %v1755_v8 }
 0x1cb   :  { %1764 = vrcp.f32 %v1603_v9 }
 0x1cc   :  { %v1757_v11 = vpop.eup %1756  ;;  %1766 = vrcp.f32 %v1604_v10 }
 0x1cd   :  { %v1759_v12 = vpop.eup %1758  ;;  %v1605_v13 = vadd.f32 1.0, %v1757_v11 }
 0x1ce   :  { %v1606_v14 = vadd.f32 1.0, %v1759_v12 }
 0x1cf   :  { %1768 = vrcp.f32 %v1605_v13 }
 0x1d0   :  { %1770 = vrcp.f32 %v1606_v14 }
 0x1d1   :  { %v1761_v15 = vpop.eup %1760 }
 0x1d2   :  { %v1763_v16 = vpop.eup %1762 }
 0x1d3   :  { %v1728_v17 = vpack.c.bf16 %v1763_v16, %v1761_v15 }
 0x1d5   :  { %v1765_v18 = vpop.eup %1764  ;;  %1643 = vst [vmem:[%s2096_s6] sm:$0xff] %v1728_v17 }
 0x1d6   :  { %v1767_v19 = vpop.eup %1766 }
 0x1d7   :  { %v1729_v20 = vpack.c.bf16 %v1767_v19, %v1765_v18 }
 0x1d9   :  { %v1769_v21 = vpop.eup %1768  ;;  %1644 = vst [vmem:[%s2096_s6 + $0x8] sm:$0xff] %v1729_v20 }
 0x1da   :  { %v1771_v22 = vpop.eup %1770 }
 0x1db   :  { %v1730_v23 = vpack.c.bf16 %v1771_v22, %v1769_v21 }
 0x1dd   :  { %1645 = vst [vmem:[%s2096_s6 + $0x10] sm:$0xff] %v1730_v23 }

</bundles_post_ra>
